<compile_context>
chip_gen: v6e
topology: v6e:2x2x1
jax: 0.10.0
libtpu: 0.0.40
codegen_flags: <defaults>
</compile_context>

<pallas_src>
import functools

import jax
import jax.numpy as jnp
from jax.experimental import pallas as pl
from jax.experimental.pallas import tpu as pltpu

TILE_M = 512                       # max row tile for the matmul
_VMEM_LIMIT = 48 * 1024 * 1024     # scoped-VMEM cap handed to Mosaic
_VMEM_BUDGET = 36 * 1024 * 1024    # planning budget (fits v7x's 64 MiB VMEM)


# ---------------------------------------------------------------------------
# Pallas kernels: matmul with fused ReLU prologue and stats / tanh epilogue
# ---------------------------------------------------------------------------
def _make_mm_kernel(fuse_relu, with_stats):
    """Y = relu?(X) @ W, plus either per-tile BN stats or a tanh epilogue."""
    if with_stats:
        def kernel(x_ref, w_ref, y_ref, sum_ref, sq_ref):
            x = x_ref[...]
            if fuse_relu:                       # previous layer's ReLU (VPU, free)
                x = jnp.maximum(x, 0.0)
            y = jnp.dot(x, w_ref[...], preferred_element_type=jnp.float32)
            y_ref[...] = y
            # Per-tile partial sums -> disjoint output blocks (grid axis stays
            # "parallel"); replicated over 8 sublanes to keep the block (8,128)
            # aligned.  Reduced across tiles in the (tiny) JAX wrapper.
            s = jnp.sum(y, axis=0, keepdims=True)
            q = jnp.sum(y * y, axis=0, keepdims=True)
            sum_ref[...] = jnp.broadcast_to(s[:, None, :], sum_ref.shape)
            sq_ref[...] = jnp.broadcast_to(q[:, None, :], sq_ref.shape)
    else:
        def kernel(x_ref, w_ref, y_ref):
            x = x_ref[...]
            if fuse_relu:
                x = jnp.maximum(x, 0.0)
            y = jnp.dot(x, w_ref[...], preferred_element_type=jnp.float32)
            y_ref[...] = jnp.tanh(y)            # fused tanh epilogue (EUP slot)
    return kernel


# ---------------------------------------------------------------------------
# Pallas wrapper
# ---------------------------------------------------------------------------
def _round_up(x, m):
    return ((x + m - 1) // m) * m


def _pick_tile_m(m8, kp, ncp):
    """Largest row tile (<= TILE_M) whose working set fits the VMEM budget."""
    def vmem_bytes(t):
        return (2 * t * kp * 2        # double-buffered X tiles (bf16)
                + 2 * kp * ncp * 2    # resident W (bf16, double-buffered)
                + 2 * t * ncp * 4     # Y tiles (f32)
                + 4 * 8 * ncp * 4)    # stats tiles
    tm = min(TILE_M, m8)
    while tm > 8 and vmem_bytes(tm) > _VMEM_BUDGET:
        nxt = _round_up(max(8, tm // 2), 8)
        if nxt == tm:
            break
        tm = nxt
    return tm


def _conv_matmul(x_mat, w_mat, *, fuse_relu, last):
    """Y = relu?(X) @ W in Pallas.

    Returns (Y[:m, :ncols] f32, per-column sum, per-column sum-of-squares) for
    BN layers, or (tanh(Y)[:m, :ncols], None, None) for the last layer.
    """
    m, k = x_mat.shape
    ncols = w_mat.shape[1]
    kp = _round_up(k, 128)            # lane-aligned contraction
    ncp = _round_up(ncols, 128)       # lane-dense output columns
    m8 = _round_up(m, 8)
    tm = _pick_tile_m(m8, kp, ncp)
    mp = _round_up(m8, tm)
    grid = mp // tm

    # bf16 MXU operands; zero padding is exact (padded rows/cols contribute 0,
    # relu(0) == 0, so BN stats stay correct).
    x = jnp.pad(x_mat.astype(jnp.bfloat16), ((0, mp - m), (0, kp - k)))
    w = jnp.pad(w_mat.astype(jnp.bfloat16), ((0, kp - k), (0, ncp - ncols)))

    kernel = _make_mm_kernel(fuse_relu, with_stats=not last)

    if last:
        out_shape = jax.ShapeDtypeStruct((mp, ncp), jnp.float32)
        out_specs = pl.BlockSpec((tm, ncp), lambda i: (i, 0))
    else:
        out_shape = (
            jax.ShapeDtypeStruct((mp, ncp), jnp.float32),
            jax.ShapeDtypeStruct((grid, 8, ncp), jnp.float32),
            jax.ShapeDtypeStruct((grid, 8, ncp), jnp.float32),
        )
        out_specs = (
            pl.BlockSpec((tm, ncp), lambda i: (i, 0)),
            pl.BlockSpec((1, 8, ncp), lambda i: (i, 0, 0)),
            pl.BlockSpec((1, 8, ncp), lambda i: (i, 0, 0)),
        )

    res = pl.pallas_call(
        kernel,
        out_shape=out_shape,
        grid_spec=pltpu.PrefetchScalarGridSpec(
            num_scalar_prefetch=0,
            grid=(grid,),
            in_specs=[pl.BlockSpec((tm, kp), lambda i: (i, 0)),
                      pl.BlockSpec((kp, ncp), lambda i: (0, 0))],
            out_specs=out_specs),
        compiler_params=pltpu.CompilerParams(
            dimension_semantics=("parallel",),      # no accumulator -> megacore OK
            vmem_limit_bytes=_VMEM_LIMIT),
    )(x, w)

    if last:
        return res[:m, :ncols], None, None
    y, ps, pq = res
    col_sum = jnp.sum(ps[:, 0, :ncols], axis=0)
    col_sq = jnp.sum(pq[:, 0, :ncols], axis=0)
    return y[:m, :ncols], col_sum, col_sq


# ---------------------------------------------------------------------------
# JAX-side layout glue (fused by XLA into the patch-producing fusion)
# ---------------------------------------------------------------------------
def _im2col_3x3(act_nhwc):
    """3x3 windows on the 1-padded input; columns ordered (dh, dw, c_in)."""
    n, h, w, c = act_nhwc.shape
    xp = jnp.pad(act_nhwc, ((0, 0), (1, 1), (1, 1), (0, 0)))
    cols = [xp[:, dh:dh + h, dw:dw + w, :] for dh in range(3) for dw in range(3)]
    return jnp.concatenate(cols, axis=-1).reshape(n * h * w, 9 * c)


def _union_weight(w_pt):
    """ConvTranspose2d(k=4,s=2,p=1) weight (cin,cout,4,4) -> (9*cin, 4*cout).

    Row order (dh, dw, cin) matches _im2col_3x3; column order (ph, pw, cout)
    matches _pixel_shuffle.  Phase (ph, pw) only uses taps dh in {ph, ph+1},
    dw in {pw, pw+1} with kernel index kh = 3 + ph - 2*dh (ditto kw).
    """
    cin, cout = w_pt.shape[0], w_pt.shape[1]
    wm = jnp.zeros((3, 3, cin, 2, 2, cout), w_pt.dtype)
    for ph in range(2):
        for pw in range(2):
            for dh in range(ph, ph + 2):
                for dw in range(pw, pw + 2):
                    kh = 3 + ph - 2 * dh
                    kw = 3 + pw - 2 * dw
                    wm = wm.at[dh, dw, :, ph, pw, :].set(w_pt[:, :, kh, kw])
    return wm.reshape(9 * cin, 4 * cout)


def _pixel_shuffle(y_cols, n, h, w, cout):
    """(n*h*w, 4*cout) with columns (ph, pw, cout) -> NHWC (n, 2h, 2w, cout)."""
    y = y_cols.reshape(n, h, w, 2, 2, cout)
    y = jnp.transpose(y, (0, 1, 3, 2, 4, 5))
    return y.reshape(n, 2 * h, 2 * w, cout)


def _bn_scale_shift(col_sum, col_sq, count, gamma, beta, groups, cout, eps):
    """BatchNorm2d (training mode) scale/shift from per-column sums."""
    s = col_sum.reshape(groups, cout).sum(axis=0)
    q = col_sq.reshape(groups, cout).sum(axis=0)
    mean = s / count
    var = jnp.maximum(q / count - mean * mean, 0.0)   # clamp f32 cancellation
    scale = gamma * jax.lax.rsqrt(var + eps)
    shift = beta - mean * scale
    return scale, shift


# ---------------------------------------------------------------------------
# Generator forward (matches nn.Sequential in the PyTorch module)
# ---------------------------------------------------------------------------
def generator_forward(x_nchw, params, eps=1e-5):
    n, nz, h_in, w_in = x_nchw.shape
    if h_in != 1 or w_in != 1:
        # TODO(synk): general spatial inputs for the first ConvTranspose2d
        # (the DCGAN generator consumes a (N, nz, 1, 1) latent).
        raise NotImplementedError("expected a (N, nz, 1, 1) latent")

    # ---- layer 0: ConvTranspose2d(nz, ngf*8, 4, 1, 0) on a 1x1 latent ------
    # out[n, kh, kw, co] = sum_ci x[n, ci] * w0[ci, co, kh, kw]  ->  one matmul
    # with columns ordered (kh, kw, co).
    x2d = x_nchw.reshape(n, nz).astype(jnp.float32)
    w0 = params["w0"]                                      # (nz, c0, 4, 4)
    c0 = w0.shape[1]
    w0_mat = jnp.transpose(w0, (0, 2, 3, 1)).reshape(nz, 16 * c0)
    y, s, q = _conv_matmul(x2d, w0_mat, fuse_relu=False, last=False)
    scale, shift = _bn_scale_shift(s, q, n * 16, params["gamma0"],
                                   params["beta0"], groups=16, cout=c0, eps=eps)
    y_nhwc = y.reshape(n, 4, 4, c0)
    # BN affine here; the ReLU is fused into the next matmul's prologue.
    act = (y_nhwc * scale + shift).astype(jnp.bfloat16)

    # ---- layers 1..4: ConvTranspose2d(k=4, s=2, p=1) via sub-pixel phases ---
    for li in range(1, 5):
        w_pt = params[f"w{li}"]                            # (cin, cout, 4, 4)
        cout = w_pt.shape[1]
        nb, hh, ww, _ = act.shape
        patches = _im2col_3x3(act)                         # (nb*hh*ww, 9*cin)
        w_mat = _union_weight(w_pt)                        # (9*cin, 4*cout)
        last = li == 4
        y, s, q = _conv_matmul(patches, w_mat, fuse_relu=True, last=last)
        y_nhwc = _pixel_shuffle(y, nb, hh, ww, cout)       # (nb, 2h, 2w, cout)
        if last:
            act = y_nhwc                                   # tanh already applied
        else:
            scale, shift = _bn_scale_shift(
                s, q, nb * (2 * hh) * (2 * ww), params[f"gamma{li}"],
                params[f"beta{li}"], groups=4, cout=cout, eps=eps)
            act = (y_nhwc * scale + shift).astype(jnp.bfloat16)

    return jnp.transpose(act, (0, 3, 1, 2))                # -> NCHW, f32


def init_params(key, input_channels, n_feature_maps):
    nz, ngf = input_channels, n_feature_maps
    chans = [nz, ngf * 8, ngf * 4, ngf * 2, ngf, nz]
    params = {}
    for li in range(5):
        key, k1 = jax.random.split(key)
        cin, cout = chans[li], chans[li + 1]
        # PyTorch ConvTranspose2d weight shape: (C_in, C_out, kH, kW)
        params[f"w{li}"] = 0.02 * jax.random.normal(k1, (cin, cout, 4, 4),
                                                    jnp.float32)
        if li < 4:
            params[f"gamma{li}"] = jnp.ones((cout,), jnp.float32)   # BN weight
            params[f"beta{li}"] = jnp.zeros((cout,), jnp.float32)   # BN bias
    return params


if __name__ == "__main__":
    key = jax.random.PRNGKey(0)
    input_channels, n_feature_maps, batch = 4, 8, 2
    kparam, kx = jax.random.split(key)
    params = init_params(kparam, input_channels, n_feature_maps)

    # DCGAN generator consumes a latent of shape (N, nz, 1, 1)
    x = jax.random.normal(kx, (batch, input_channels, 1, 1), jnp.float32)

    fwd = jax.jit(functools.partial(generator_forward, params=params))
    out = jax.block_until_ready(fwd(x))

    assert out.shape == (batch, input_channels, 64, 64), out.shape
    assert bool(jnp.all(jnp.isfinite(out)))
    assert bool(jnp.all(jnp.abs(out) <= 1.0))  # tanh output range
    print("KERNEL_OK")
</pallas_src>

<mosaic_0001>
module attributes {stable_mosaic.version = 11 : i64} {
  func.func @kernel(%arg0: i32, %arg1: memref<8x128xbf16, #tpu.memory_space<vmem>>, %arg2: memref<128x1024xbf16, #tpu.memory_space<vmem>>, %arg3: memref<8x1024xf32, #tpu.memory_space<vmem>>, %arg4: memref<1x8x1024xf32, #tpu.memory_space<vmem>>, %arg5: memref<1x8x1024xf32, #tpu.memory_space<vmem>>) attributes {dimension_semantics = [#tpu.dimension_semantics<parallel>], iteration_bounds = array<i64: 1>, scalar_prefetch = 0 : i64, scratch_operands = 0 : i64, tpu.core_type = #tpu.core_type<tc>, window_params = [{transform_indices = @transform_0, window_bounds = array<i64: 8, 128>}, {pipeline_mode = #tpu.pipeline_mode<synchronous>, transform_indices = @transform_1, window_bounds = array<i64: 128, 1024>}, {transform_indices = @transform_2, window_bounds = array<i64: 8, 1024>}, {transform_indices = @transform_3, window_bounds = array<i64: 1, 8, 1024>}, {transform_indices = @transform_4, window_bounds = array<i64: 1, 8, 1024>}]} {
    %c0 = arith.constant 0 : index
    %c0_0 = arith.constant 0 : index
    %0 = vector.load %arg1[%c0, %c0_0] : memref<8x128xbf16, #tpu.memory_space<vmem>>, vector<8x128xbf16>
    %c0_1 = arith.constant 0 : index
    %c0_2 = arith.constant 0 : index
    %1 = vector.load %arg2[%c0_1, %c0_2] : memref<128x1024xbf16, #tpu.memory_space<vmem>>, vector<128x1024xbf16>
    %cst = arith.constant dense<0.000000e+00> : vector<8x1024xf32>
    %2 = tpu.matmul %0, %1, %cst {dimension_numbers = #tpu.dot_dimension_numbers<[1], [0], [0], [1], [0, 0, 1, 1], [], []>} : vector<8x128xbf16>, vector<128x1024xbf16>, vector<8x1024xf32> -> vector<8x1024xf32>
    %c0_3 = arith.constant 0 : index
    %c0_4 = arith.constant 0 : index
    %3 = vector.load %arg3[%c0_3, %c0_4] : memref<8x1024xf32, #tpu.memory_space<vmem>>, vector<8x1024xf32>
    tpu.vector_store %arg3[%c0_3, %c0_4], %2 {strides = array<i32>} : memref<8x1024xf32, #tpu.memory_space<vmem>>, vector<8x1024xf32>,
    %cst_5 = arith.constant dense<0.000000e+00> : vector<1024xf32>
    %4 = vector.multi_reduction <add>, %2, %cst_5 [0] : vector<8x1024xf32> to vector<1024xf32>
    %5 = vector.shape_cast %4 : vector<1024xf32> to vector<1x1024xf32>
    %6 = arith.mulf %2, %2 : vector<8x1024xf32>
    %cst_6 = arith.constant dense<0.000000e+00> : vector<1024xf32>
    %7 = vector.multi_reduction <add>, %6, %cst_6 [0] : vector<8x1024xf32> to vector<1024xf32>
    %8 = vector.shape_cast %7 : vector<1024xf32> to vector<1x1024xf32>
    %9 = vector.shape_cast %5 : vector<1x1024xf32> to vector<1x1x1024xf32>
    %10 = vector.shape_cast %9 : vector<1x1x1024xf32> to vector<1x1x1024xf32>
    %11 = vector.broadcast %10 : vector<1x1x1024xf32> to vector<1x8x1024xf32>
    %c0_7 = arith.constant 0 : index
    %c0_8 = arith.constant 0 : index
    %c0_9 = arith.constant 0 : index
    %12 = vector.load %arg4[%c0_7, %c0_8, %c0_9] : memref<1x8x1024xf32, #tpu.memory_space<vmem>>, vector<1x8x1024xf32>
    tpu.vector_store %arg4[%c0_7, %c0_8, %c0_9], %11 {strides = array<i32>} : memref<1x8x1024xf32, #tpu.memory_space<vmem>>, vector<1x8x1024xf32>,
    %13 = vector.shape_cast %8 : vector<1x1024xf32> to vector<1x1x1024xf32>
    %14 = vector.shape_cast %13 : vector<1x1x1024xf32> to vector<1x1x1024xf32>
    %15 = vector.broadcast %14 : vector<1x1x1024xf32> to vector<1x8x1024xf32>
    %c0_10 = arith.constant 0 : index
    %c0_11 = arith.constant 0 : index
    %c0_12 = arith.constant 0 : index
    %16 = vector.load %arg5[%c0_10, %c0_11, %c0_12] : memref<1x8x1024xf32, #tpu.memory_space<vmem>>, vector<1x8x1024xf32>
    tpu.vector_store %arg5[%c0_10, %c0_11, %c0_12], %15 {strides = array<i32>} : memref<1x8x1024xf32, #tpu.memory_space<vmem>>, vector<1x8x1024xf32>,
    return
  }
  func.func @transform_0(%arg0: i32) -> (i32, i32) {
    %c0_i32 = arith.constant 0 : i32
    %c0_i32_0 = arith.constant 0 : i32
    return %arg0, %c0_i32 : i32, i32
  }
  func.func @transform_1(%arg0: i32) -> (i32, i32) {
    %c0_i32 = arith.constant 0 : i32
    %c0_i32_0 = arith.constant 0 : i32
    %c0_i32_1 = arith.constant 0 : i32
    return %c0_i32, %c0_i32_0 : i32, i32
  }
  func.func @transform_2(%arg0: i32) -> (i32, i32) {
    %c0_i32 = arith.constant 0 : i32
    %c0_i32_0 = arith.constant 0 : i32
    return %arg0, %c0_i32 : i32, i32
  }
  func.func @transform_3(%arg0: i32) -> (i32, i32, i32) {
    %c0_i32 = arith.constant 0 : i32
    %c0_i32_0 = arith.constant 0 : i32
    %c0_i32_1 = arith.constant 0 : i32
    return %arg0, %c0_i32, %c0_i32_0 : i32, i32, i32
  }
  func.func @transform_4(%arg0: i32) -> (i32, i32, i32) {
    %c0_i32 = arith.constant 0 : i32
    %c0_i32_0 = arith.constant 0 : i32
    %c0_i32_1 = arith.constant 0 : i32
    return %arg0, %c0_i32, %c0_i32_0 : i32, i32, i32
  }
}

module attributes {stable_mosaic.version = 11 : i64} {
  func.func @kernel(%arg0: i32, %arg1: memref<32x640xbf16, #tpu.memory_space<vmem>>, %arg2: memref<640x128xbf16, #tpu.memory_space<vmem>>, %arg3: memref<32x128xf32, #tpu.memory_space<vmem>>, %arg4: memref<1x8x128xf32, #tpu.memory_space<vmem>>, %arg5: memref<1x8x128xf32, #tpu.memory_space<vmem>>) attributes {dimension_semantics = [#tpu.dimension_semantics<parallel>], iteration_bounds = array<i64: 1>, scalar_prefetch = 0 : i64, scratch_operands = 0 : i64, tpu.core_type = #tpu.core_type<tc>, window_params = [{transform_indices = @transform_0, window_bounds = array<i64: 32, 640>}, {pipeline_mode = #tpu.pipeline_mode<synchronous>, transform_indices = @transform_1, window_bounds = array<i64: 640, 128>}, {transform_indices = @transform_2, window_bounds = array<i64: 32, 128>}, {transform_indices = @transform_3, window_bounds = array<i64: 1, 8, 128>}, {transform_indices = @transform_4, window_bounds = array<i64: 1, 8, 128>}]} {
    %c0 = arith.constant 0 : index
    %c0_0 = arith.constant 0 : index
    %0 = vector.load %arg1[%c0, %c0_0] : memref<32x640xbf16, #tpu.memory_space<vmem>>, vector<32x640xbf16>
    %cst = arith.constant 0.000000e+00 : bf16
    %1 = vector.broadcast %cst : bf16 to vector<32x640xbf16>
    %2 = arith.maximumf %0, %1 : vector<32x640xbf16>
    %c0_1 = arith.constant 0 : index
    %c0_2 = arith.constant 0 : index
    %3 = vector.load %arg2[%c0_1, %c0_2] : memref<640x128xbf16, #tpu.memory_space<vmem>>, vector<640x128xbf16>
    %cst_3 = arith.constant dense<0.000000e+00> : vector<32x128xf32>
    %4 = tpu.matmul %2, %3, %cst_3 {dimension_numbers = #tpu.dot_dimension_numbers<[1], [0], [0], [1], [0, 0, 1, 1], [], []>} : vector<32x640xbf16>, vector<640x128xbf16>, vector<32x128xf32> -> vector<32x128xf32>
    %c0_4 = arith.constant 0 : index
    %c0_5 = arith.constant 0 : index
    %5 = vector.load %arg3[%c0_4, %c0_5] : memref<32x128xf32, #tpu.memory_space<vmem>>, vector<32x128xf32>
    tpu.vector_store %arg3[%c0_4, %c0_5], %4 {strides = array<i32>} : memref<32x128xf32, #tpu.memory_space<vmem>>, vector<32x128xf32>,
    %cst_6 = arith.constant dense<0.000000e+00> : vector<128xf32>
    %6 = vector.multi_reduction <add>, %4, %cst_6 [0] : vector<32x128xf32> to vector<128xf32>
    %7 = vector.shape_cast %6 : vector<128xf32> to vector<1x128xf32>
    %8 = arith.mulf %4, %4 : vector<32x128xf32>
    %cst_7 = arith.constant dense<0.000000e+00> : vector<128xf32>
    %9 = vector.multi_reduction <add>, %8, %cst_7 [0] : vector<32x128xf32> to vector<128xf32>
    %10 = vector.shape_cast %9 : vector<128xf32> to vector<1x128xf32>
    %11 = vector.shape_cast %7 : vector<1x128xf32> to vector<1x1x128xf32>
    %12 = vector.shape_cast %11 : vector<1x1x128xf32> to vector<1x1x128xf32>
    %13 = vector.broadcast %12 : vector<1x1x128xf32> to vector<1x8x128xf32>
    %c0_8 = arith.constant 0 : index
    %c0_9 = arith.constant 0 : index
    %c0_10 = arith.constant 0 : index
    %14 = vector.load %arg4[%c0_8, %c0_9, %c0_10] : memref<1x8x128xf32, #tpu.memory_space<vmem>>, vector<1x8x128xf32>
    tpu.vector_store %arg4[%c0_8, %c0_9, %c0_10], %13 {strides = array<i32>} : memref<1x8x128xf32, #tpu.memory_space<vmem>>, vector<1x8x128xf32>,
    %15 = vector.shape_cast %10 : vector<1x128xf32> to vector<1x1x128xf32>
    %16 = vector.shape_cast %15 : vector<1x1x128xf32> to vector<1x1x128xf32>
    %17 = vector.broadcast %16 : vector<1x1x128xf32> to vector<1x8x128xf32>
    %c0_11 = arith.constant 0 : index
    %c0_12 = arith.constant 0 : index
    %c0_13 = arith.constant 0 : index
    %18 = vector.load %arg5[%c0_11, %c0_12, %c0_13] : memref<1x8x128xf32, #tpu.memory_space<vmem>>, vector<1x8x128xf32>
    tpu.vector_store %arg5[%c0_11, %c0_12, %c0_13], %17 {strides = array<i32>} : memref<1x8x128xf32, #tpu.memory_space<vmem>>, vector<1x8x128xf32>,
    return
  }
  func.func @transform_0(%arg0: i32) -> (i32, i32) {
    %c0_i32 = arith.constant 0 : i32
    %c0_i32_0 = arith.constant 0 : i32
    return %arg0, %c0_i32 : i32, i32
  }
  func.func @transform_1(%arg0: i32) -> (i32, i32) {
    %c0_i32 = arith.constant 0 : i32
    %c0_i32_0 = arith.constant 0 : i32
    %c0_i32_1 = arith.constant 0 : i32
    return %c0_i32, %c0_i32_0 : i32, i32
  }
  func.func @transform_2(%arg0: i32) -> (i32, i32) {
    %c0_i32 = arith.constant 0 : i32
    %c0_i32_0 = arith.constant 0 : i32
    return %arg0, %c0_i32 : i32, i32
  }
  func.func @transform_3(%arg0: i32) -> (i32, i32, i32) {
    %c0_i32 = arith.constant 0 : i32
    %c0_i32_0 = arith.constant 0 : i32
    %c0_i32_1 = arith.constant 0 : i32
    return %arg0, %c0_i32, %c0_i32_0 : i32, i32, i32
  }
  func.func @transform_4(%arg0: i32) -> (i32, i32, i32) {
    %c0_i32 = arith.constant 0 : i32
    %c0_i32_0 = arith.constant 0 : i32
    %c0_i32_1 = arith.constant 0 : i32
    return %arg0, %c0_i32, %c0_i32_0 : i32, i32, i32
  }
}

module attributes {stable_mosaic.version = 11 : i64} {
  func.func @kernel(%arg0: i32, %arg1: memref<128x384xbf16, #tpu.memory_space<vmem>>, %arg2: memref<384x128xbf16, #tpu.memory_space<vmem>>, %arg3: memref<128x128xf32, #tpu.memory_space<vmem>>, %arg4: memref<1x8x128xf32, #tpu.memory_space<vmem>>, %arg5: memref<1x8x128xf32, #tpu.memory_space<vmem>>) attributes {dimension_semantics = [#tpu.dimension_semantics<parallel>], iteration_bounds = array<i64: 1>, scalar_prefetch = 0 : i64, scratch_operands = 0 : i64, tpu.core_type = #tpu.core_type<tc>, window_params = [{transform_indices = @transform_0, window_bounds = array<i64: 128, 384>}, {pipeline_mode = #tpu.pipeline_mode<synchronous>, transform_indices = @transform_1, window_bounds = array<i64: 384, 128>}, {transform_indices = @transform_2, window_bounds = array<i64: 128, 128>}, {transform_indices = @transform_3, window_bounds = array<i64: 1, 8, 128>}, {transform_indices = @transform_4, window_bounds = array<i64: 1, 8, 128>}]} {
    %c0 = arith.constant 0 : index
    %c0_0 = arith.constant 0 : index
    %0 = vector.load %arg1[%c0, %c0_0] : memref<128x384xbf16, #tpu.memory_space<vmem>>, vector<128x384xbf16>
    %cst = arith.constant 0.000000e+00 : bf16
    %1 = vector.broadcast %cst : bf16 to vector<128x384xbf16>
    %2 = arith.maximumf %0, %1 : vector<128x384xbf16>
    %c0_1 = arith.constant 0 : index
    %c0_2 = arith.constant 0 : index
    %3 = vector.load %arg2[%c0_1, %c0_2] : memref<384x128xbf16, #tpu.memory_space<vmem>>, vector<384x128xbf16>
    %cst_3 = arith.constant dense<0.000000e+00> : vector<128x128xf32>
    %4 = tpu.matmul %2, %3, %cst_3 {dimension_numbers = #tpu.dot_dimension_numbers<[1], [0], [0], [1], [0, 0, 1, 1], [], []>} : vector<128x384xbf16>, vector<384x128xbf16>, vector<128x128xf32> -> vector<128x128xf32>
    %c0_4 = arith.constant 0 : index
    %c0_5 = arith.constant 0 : index
    %5 = vector.load %arg3[%c0_4, %c0_5] : memref<128x128xf32, #tpu.memory_space<vmem>>, vector<128x128xf32>
    tpu.vector_store %arg3[%c0_4, %c0_5], %4 {strides = array<i32>} : memref<128x128xf32, #tpu.memory_space<vmem>>, vector<128x128xf32>,
    %cst_6 = arith.constant dense<0.000000e+00> : vector<128xf32>
    %6 = vector.multi_reduction <add>, %4, %cst_6 [0] : vector<128x128xf32> to vector<128xf32>
    %7 = vector.shape_cast %6 : vector<128xf32> to vector<1x128xf32>
    %8 = arith.mulf %4, %4 : vector<128x128xf32>
    %cst_7 = arith.constant dense<0.000000e+00> : vector<128xf32>
    %9 = vector.multi_reduction <add>, %8, %cst_7 [0] : vector<128x128xf32> to vector<128xf32>
    %10 = vector.shape_cast %9 : vector<128xf32> to vector<1x128xf32>
    %11 = vector.shape_cast %7 : vector<1x128xf32> to vector<1x1x128xf32>
    %12 = vector.shape_cast %11 : vector<1x1x128xf32> to vector<1x1x128xf32>
    %13 = vector.broadcast %12 : vector<1x1x128xf32> to vector<1x8x128xf32>
    %c0_8 = arith.constant 0 : index
    %c0_9 = arith.constant 0 : index
    %c0_10 = arith.constant 0 : index
    %14 = vector.load %arg4[%c0_8, %c0_9, %c0_10] : memref<1x8x128xf32, #tpu.memory_space<vmem>>, vector<1x8x128xf32>
    tpu.vector_store %arg4[%c0_8, %c0_9, %c0_10], %13 {strides = array<i32>} : memref<1x8x128xf32, #tpu.memory_space<vmem>>, vector<1x8x128xf32>,
    %15 = vector.shape_cast %10 : vector<1x128xf32> to vector<1x1x128xf32>
    %16 = vector.shape_cast %15 : vector<1x1x128xf32> to vector<1x1x128xf32>
    %17 = vector.broadcast %16 : vector<1x1x128xf32> to vector<1x8x128xf32>
    %c0_11 = arith.constant 0 : index
    %c0_12 = arith.constant 0 : index
    %c0_13 = arith.constant 0 : index
    %18 = vector.load %arg5[%c0_11, %c0_12, %c0_13] : memref<1x8x128xf32, #tpu.memory_space<vmem>>, vector<1x8x128xf32>
    tpu.vector_store %arg5[%c0_11, %c0_12, %c0_13], %17 {strides = array<i32>} : memref<1x8x128xf32, #tpu.memory_space<vmem>>, vector<1x8x128xf32>,
    return
  }
  func.func @transform_0(%arg0: i32) -> (i32, i32) {
    %c0_i32 = arith.constant 0 : i32
    %c0_i32_0 = arith.constant 0 : i32
    return %arg0, %c0_i32 : i32, i32
  }
  func.func @transform_1(%arg0: i32) -> (i32, i32) {
    %c0_i32 = arith.constant 0 : i32
    %c0_i32_0 = arith.constant 0 : i32
    %c0_i32_1 = arith.constant 0 : i32
    return %c0_i32, %c0_i32_0 : i32, i32
  }
  func.func @transform_2(%arg0: i32) -> (i32, i32) {
    %c0_i32 = arith.constant 0 : i32
    %c0_i32_0 = arith.constant 0 : i32
    return %arg0, %c0_i32 : i32, i32
  }
  func.func @transform_3(%arg0: i32) -> (i32, i32, i32) {
    %c0_i32 = arith.constant 0 : i32
    %c0_i32_0 = arith.constant 0 : i32
    %c0_i32_1 = arith.constant 0 : i32
    return %arg0, %c0_i32, %c0_i32_0 : i32, i32, i32
  }
  func.func @transform_4(%arg0: i32) -> (i32, i32, i32) {
    %c0_i32 = arith.constant 0 : i32
    %c0_i32_0 = arith.constant 0 : i32
    %c0_i32_1 = arith.constant 0 : i32
    return %arg0, %c0_i32, %c0_i32_0 : i32, i32, i32
  }
}

module attributes {stable_mosaic.version = 11 : i64} {
  func.func @kernel(%arg0: i32, %arg1: memref<512x256xbf16, #tpu.memory_space<vmem>>, %arg2: memref<256x128xbf16, #tpu.memory_space<vmem>>, %arg3: memref<512x128xf32, #tpu.memory_space<vmem>>, %arg4: memref<1x8x128xf32, #tpu.memory_space<vmem>>, %arg5: memref<1x8x128xf32, #tpu.memory_space<vmem>>) attributes {dimension_semantics = [#tpu.dimension_semantics<parallel>], iteration_bounds = array<i64: 1>, scalar_prefetch = 0 : i64, scratch_operands = 0 : i64, tpu.core_type = #tpu.core_type<tc>, window_params = [{transform_indices = @transform_0, window_bounds = array<i64: 512, 256>}, {pipeline_mode = #tpu.pipeline_mode<synchronous>, transform_indices = @transform_1, window_bounds = array<i64: 256, 128>}, {transform_indices = @transform_2, window_bounds = array<i64: 512, 128>}, {transform_indices = @transform_3, window_bounds = array<i64: 1, 8, 128>}, {transform_indices = @transform_4, window_bounds = array<i64: 1, 8, 128>}]} {
    %c0 = arith.constant 0 : index
    %c0_0 = arith.constant 0 : index
    %0 = vector.load %arg1[%c0, %c0_0] : memref<512x256xbf16, #tpu.memory_space<vmem>>, vector<512x256xbf16>
    %cst = arith.constant 0.000000e+00 : bf16
    %1 = vector.broadcast %cst : bf16 to vector<512x256xbf16>
    %2 = arith.maximumf %0, %1 : vector<512x256xbf16>
    %c0_1 = arith.constant 0 : index
    %c0_2 = arith.constant 0 : index
    %3 = vector.load %arg2[%c0_1, %c0_2] : memref<256x128xbf16, #tpu.memory_space<vmem>>, vector<256x128xbf16>
    %cst_3 = arith.constant dense<0.000000e+00> : vector<512x128xf32>
    %4 = tpu.matmul %2, %3, %cst_3 {dimension_numbers = #tpu.dot_dimension_numbers<[1], [0], [0], [1], [0, 0, 1, 1], [], []>} : vector<512x256xbf16>, vector<256x128xbf16>, vector<512x128xf32> -> vector<512x128xf32>
    %c0_4 = arith.constant 0 : index
    %c0_5 = arith.constant 0 : index
    %5 = vector.load %arg3[%c0_4, %c0_5] : memref<512x128xf32, #tpu.memory_space<vmem>>, vector<512x128xf32>
    tpu.vector_store %arg3[%c0_4, %c0_5], %4 {strides = array<i32>} : memref<512x128xf32, #tpu.memory_space<vmem>>, vector<512x128xf32>,
    %cst_6 = arith.constant dense<0.000000e+00> : vector<128xf32>
    %6 = vector.multi_reduction <add>, %4, %cst_6 [0] : vector<512x128xf32> to vector<128xf32>
    %7 = vector.shape_cast %6 : vector<128xf32> to vector<1x128xf32>
    %8 = arith.mulf %4, %4 : vector<512x128xf32>
    %cst_7 = arith.constant dense<0.000000e+00> : vector<128xf32>
    %9 = vector.multi_reduction <add>, %8, %cst_7 [0] : vector<512x128xf32> to vector<128xf32>
    %10 = vector.shape_cast %9 : vector<128xf32> to vector<1x128xf32>
    %11 = vector.shape_cast %7 : vector<1x128xf32> to vector<1x1x128xf32>
    %12 = vector.shape_cast %11 : vector<1x1x128xf32> to vector<1x1x128xf32>
    %13 = vector.broadcast %12 : vector<1x1x128xf32> to vector<1x8x128xf32>
    %c0_8 = arith.constant 0 : index
    %c0_9 = arith.constant 0 : index
    %c0_10 = arith.constant 0 : index
    %14 = vector.load %arg4[%c0_8, %c0_9, %c0_10] : memref<1x8x128xf32, #tpu.memory_space<vmem>>, vector<1x8x128xf32>
    tpu.vector_store %arg4[%c0_8, %c0_9, %c0_10], %13 {strides = array<i32>} : memref<1x8x128xf32, #tpu.memory_space<vmem>>, vector<1x8x128xf32>,
    %15 = vector.shape_cast %10 : vector<1x128xf32> to vector<1x1x128xf32>
    %16 = vector.shape_cast %15 : vector<1x1x128xf32> to vector<1x1x128xf32>
    %17 = vector.broadcast %16 : vector<1x1x128xf32> to vector<1x8x128xf32>
    %c0_11 = arith.constant 0 : index
    %c0_12 = arith.constant 0 : index
    %c0_13 = arith.constant 0 : index
    %18 = vector.load %arg5[%c0_11, %c0_12, %c0_13] : memref<1x8x128xf32, #tpu.memory_space<vmem>>, vector<1x8x128xf32>
    tpu.vector_store %arg5[%c0_11, %c0_12, %c0_13], %17 {strides = array<i32>} : memref<1x8x128xf32, #tpu.memory_space<vmem>>, vector<1x8x128xf32>,
    return
  }
  func.func @transform_0(%arg0: i32) -> (i32, i32) {
    %c0_i32 = arith.constant 0 : i32
    %c0_i32_0 = arith.constant 0 : i32
    return %arg0, %c0_i32 : i32, i32
  }
  func.func @transform_1(%arg0: i32) -> (i32, i32) {
    %c0_i32 = arith.constant 0 : i32
    %c0_i32_0 = arith.constant 0 : i32
    %c0_i32_1 = arith.constant 0 : i32
    return %c0_i32, %c0_i32_0 : i32, i32
  }
  func.func @transform_2(%arg0: i32) -> (i32, i32) {
    %c0_i32 = arith.constant 0 : i32
    %c0_i32_0 = arith.constant 0 : i32
    return %arg0, %c0_i32 : i32, i32
  }
  func.func @transform_3(%arg0: i32) -> (i32, i32, i32) {
    %c0_i32 = arith.constant 0 : i32
    %c0_i32_0 = arith.constant 0 : i32
    %c0_i32_1 = arith.constant 0 : i32
    return %arg0, %c0_i32, %c0_i32_0 : i32, i32, i32
  }
  func.func @transform_4(%arg0: i32) -> (i32, i32, i32) {
    %c0_i32 = arith.constant 0 : i32
    %c0_i32_0 = arith.constant 0 : i32
    %c0_i32_1 = arith.constant 0 : i32
    return %arg0, %c0_i32, %c0_i32_0 : i32, i32, i32
  }
}

module attributes {stable_mosaic.version = 11 : i64} {
  func.func @kernel(%arg0: i32, %arg1: memref<512x128xbf16, #tpu.memory_space<vmem>>, %arg2: memref<128x128xbf16, #tpu.memory_space<vmem>>, %arg3: memref<512x128xf32, #tpu.memory_space<vmem>>) attributes {dimension_semantics = [#tpu.dimension_semantics<parallel>], iteration_bounds = array<i64: 4>, scalar_prefetch = 0 : i64, scratch_operands = 0 : i64, tpu.core_type = #tpu.core_type<tc>, window_params = [{transform_indices = @transform_0, window_bounds = array<i64: 512, 128>}, {pipeline_mode = #tpu.pipeline_mode<synchronous>, transform_indices = @transform_1, window_bounds = array<i64: 128, 128>}, {transform_indices = @transform_2, window_bounds = array<i64: 512, 128>}]} {
    %c0 = arith.constant 0 : index
    %c0_0 = arith.constant 0 : index
    %0 = vector.load %arg1[%c0, %c0_0] : memref<512x128xbf16, #tpu.memory_space<vmem>>, vector<512x128xbf16>
    %cst = arith.constant 0.000000e+00 : bf16
    %1 = vector.broadcast %cst : bf16 to vector<512x128xbf16>
    %2 = arith.maximumf %0, %1 : vector<512x128xbf16>
    %c0_1 = arith.constant 0 : index
    %c0_2 = arith.constant 0 : index
    %3 = vector.load %arg2[%c0_1, %c0_2] : memref<128x128xbf16, #tpu.memory_space<vmem>>, vector<128x128xbf16>
    %cst_3 = arith.constant dense<0.000000e+00> : vector<512x128xf32>
    %4 = tpu.matmul %2, %3, %cst_3 {dimension_numbers = #tpu.dot_dimension_numbers<[1], [0], [0], [1], [0, 0, 1, 1], [], []>} : vector<512x128xbf16>, vector<128x128xbf16>, vector<512x128xf32> -> vector<512x128xf32>
    %5 = math.tanh %4 : vector<512x128xf32>
    %c0_4 = arith.constant 0 : index
    %c0_5 = arith.constant 0 : index
    %6 = vector.load %arg3[%c0_4, %c0_5] : memref<512x128xf32, #tpu.memory_space<vmem>>, vector<512x128xf32>
    tpu.vector_store %arg3[%c0_4, %c0_5], %5 {strides = array<i32>} : memref<512x128xf32, #tpu.memory_space<vmem>>, vector<512x128xf32>,
    return
  }
  func.func @transform_0(%arg0: i32) -> (i32, i32) {
    %c0_i32 = arith.constant 0 : i32
    %c0_i32_0 = arith.constant 0 : i32
    return %arg0, %c0_i32 : i32, i32
  }
  func.func @transform_1(%arg0: i32) -> (i32, i32) {
    %c0_i32 = arith.constant 0 : i32
    %c0_i32_0 = arith.constant 0 : i32
    %c0_i32_1 = arith.constant 0 : i32
    return %c0_i32, %c0_i32_0 : i32, i32
  }
  func.func @transform_2(%arg0: i32) -> (i32, i32) {
    %c0_i32 = arith.constant 0 : i32
    %c0_i32_0 = arith.constant 0 : i32
    return %arg0, %c0_i32 : i32, i32
  }
}

</mosaic_0001>

<bundles_post_ra>
// kernel: generator_forward.6
= control target key start
LH: loop header
LB: loop body
LE: loop exit
PB: predicated region body
PF: predicated region fallthrough
CT: control target
= control target key end

     0   :  { %10 = vsyncpa [#allocation3], 0  ;;  %s815_s15 = smov [#allocation2]   ;;  %s901_s0 = inlined_call_operand.vmem [shape: bf16[32,640], index: 0, kind: input, shape index: {}]   ;;  %s902_s1 = inlined_call_operand.hbm [shape: bf16[640,128], index: 1, kind: input, shape index: {}]   ;;  %s903_s2 = inlined_call_operand.vmem [shape: f32[32,128], index: 2, kind: output, shape index: {0}]   ;;  %s904_s3 = inlined_call_operand.vmem [shape: f32[1,8,128], index: 3, kind: output, shape index: {1}]   ;;  %s905_s4 = inlined_call_operand.vmem [shape: f32[1,8,128], index: 4, kind: output, shape index: {2}]  }
   0x1   :  { %s18_s16 = sshll.u32 %s815_s15, 4  ;;  %s19_s16 = int_to_ptr.vmem [resolvable:$true] %s18_s16 }
   0x2   :  { %s801_s17 = scalar_lea.vmem %s19_s16, 5120  ;;  %p806_p1 = scmp.lt.s32.totalorder %s19_s16, %s19_s16 }
   0x3   :  { %p802_p0 = scmp.ne.s32.totalorder %s19_s16, %s801_s17  ;;  %p807_p2 = scmp.lt.s32.totalorder %s801_s17, %s801_s17 }
   0x5   :  { %p808_p3 = por %p807_p2, %p806_p1 }
   0x7   :  { %p809_p4 = pnand %p808_p3, %p802_p0 }
   0x9   :  { %812 = shalt.err (!%p809_p4)
}
   0xa   :  { %s816_s18 = smov 64   ;;  %s817_s19 = smov 4  }
   0xb   :  { %24 = dma.hbm_to_vmem [thread:$0]  %s902_s1, 5120, %s19_s16, [#allocation3], %s816_s18, %s816_s18, %s817_s19  }
   0xc   :  { %813 = dma.done.wait [#allocation3], 5120  }
   0xd   :  { %814 = vsyncadd [#allocation3], 4294962176  ;;  %v753_v0 = vld [vmem:[#allocation2 + $0x78] sm:$0xff]   ;;  %v757_v4 = vld [vmem:[#allocation2 + $0x70] sm:$0xff]   ;;  %v818_v35 = vmov 0  }
   0xe   :  { %v754_v1 = vld [vmem:[#allocation2 + $0xf8] sm:$0xff]   ;;  %663 = vmatprep.subr.bf16.mxu0 %v753_v0  ;;  %v758_v5 = vld [vmem:[#allocation2 + $0xf0] sm:$0xff]   ;;  %v761_v8 = vld [vmem:[#allocation2 + $0x68] sm:$0xff]  }
   0xf   :  { %v755_v2 = vld [vmem:[#allocation2 + $0x38] sm:$0xff]   ;;  %691 = vmatprep.subr.bf16.mxu1 %v754_v1  ;;  %v759_v6 = vld [vmem:[#allocation2 + $0x30] sm:$0xff]   ;;  %v762_v9 = vld [vmem:[#allocation2 + $0xe8] sm:$0xff]  }
  0x10   :  { %v756_v3 = vld [vmem:[#allocation2 + $0xb8] sm:$0xff]   ;;  %664 = vmatpush3.bf16.msra.mxu0 %v755_v2  ;;  %v760_v7 = vld [vmem:[#allocation2 + $0xb0] sm:$0xff]   ;;  %v763_v10 = vld [vmem:[#allocation2 + $0x28] sm:$0xff]  }
  0x11   :  { %692 = vmatpush3.bf16.msra.mxu1 %v756_v3  ;;  %665 = vmatprep.subr.bf16.mxu0 %v757_v4  ;;  %v764_v11 = vld [vmem:[#allocation2 + $0xa8] sm:$0xff]   ;;  %v765_v12 = vld [vmem:[#allocation2 + $0x60] sm:$0xff]   ;;  %v769_v16 = vld [vmem:[#allocation2 + $0x58] sm:$0xff]  }
  0x12   :  { %693 = vmatprep.subr.bf16.mxu1 %v758_v5  ;;  %v766_v13 = vld [vmem:[#allocation2 + $0xe0] sm:$0xff]   ;;  %v770_v17 = vld [vmem:[#allocation2 + $0xd8] sm:$0xff]   ;;  %v773_v20 = vld [vmem:[#allocation2 + $0x50] sm:$0xff]  }
  0x13   :  { %v767_v14 = vld [vmem:[#allocation2 + $0x20] sm:$0xff]   ;;  %v771_v18 = vld [vmem:[#allocation2 + $0x18] sm:$0xff]   ;;  %v774_v21 = vld [vmem:[#allocation2 + $0xd0] sm:$0xff]  }
  0x14   :  { %666 = vmatpush3.bf16.msra.mxu0 %v759_v6  ;;  %v768_v15 = vld [vmem:[#allocation2 + $0xa0] sm:$0xff]   ;;  %v772_v19 = vld [vmem:[#allocation2 + $0x98] sm:$0xff]   ;;  %v775_v22 = vld [vmem:[#allocation2 + $0x10] sm:$0xff]  }
  0x15   :  { %694 = vmatpush3.bf16.msra.mxu1 %v760_v7  ;;  %667 = vmatprep.subr.bf16.mxu0 %v761_v8  ;;  %v776_v23 = vld [vmem:[#allocation2 + $0x90] sm:$0xff]   ;;  %v777_v24 = vld [vmem:[#allocation2 + $0x48] sm:$0xff]   ;;  %v781_v28 = vld [vmem:[#allocation2 + $0x40] sm:$0xff]  }
  0x16   :  { %695 = vmatprep.subr.bf16.mxu1 %v762_v9  ;;  %v778_v25 = vld [vmem:[#allocation2 + $0xc8] sm:$0xff]   ;;  %v782_v29 = vld [vmem:[#allocation2 + $0xc0] sm:$0xff]   ;;  %v32_v33 = vld [vmem:[%s901_s0 + $0x14] sm:$0xff] }
  0x17   :  { %v779_v26 = vld [vmem:[#allocation2 + $0x8] sm:$0xff]   ;;  %v783_v30 = vld [vmem:[#allocation2] sm:$0xff]   ;;  %v44_v37 = vmax.bf16 %v818_v35, %v32_v33  ;;  %v785_v41 = vld [vmem:[#allocation2 + $0x138] sm:$0xff]  }
  0x18   :  { %668 = vmatpush3.bf16.msra.mxu0 %v763_v10  ;;  %v780_v27 = vld [vmem:[#allocation2 + $0x88] sm:$0xff]   ;;  %v784_v31 = vld [vmem:[#allocation2 + $0x80] sm:$0xff]   ;;  %v786_v46 = vld [vmem:[#allocation2 + $0x130] sm:$0xff]  }
  0x19   :  { %696 = vmatpush3.bf16.msra.mxu1 %v764_v11  ;;  %669 = vmatprep.subr.bf16.mxu0 %v765_v12  ;;  %v29_v32 = vld [vmem:[%s901_s0] sm:$0xff]  ;;  %v30_v34 = vld [vmem:[%s901_s0 + $0x8] sm:$0xff]  ;;  %v36_v51 = vld [vmem:[%s901_s0 + $0x30] sm:$0xff] }
  0x1a   :  { %697 = vmatprep.subr.bf16.mxu1 %v766_v13  ;;  %v41_v36 = vmax.bf16 %v818_v35, %v29_v32  ;;  %v33_v38 = vld [vmem:[%s901_s0 + $0x1c] sm:$0xff]  ;;  %v42_v39 = vmax.bf16 %v818_v35, %v30_v34  ;;  %v35_v47 = vld [vmem:[%s901_s0 + $0x28] sm:$0xff]  ;;  %v48_v54 = vmax.bf16 %v818_v35, %v36_v51  ;;  %v31_v59 = vld [vmem:[%s901_s0 + $0x10] sm:$0xf] }
  0x1b   :  { %v45_v40 = vmax.bf16 %v818_v35, %v33_v38  ;;  %v38_v48 = vld [vmem:[%s901_s0 + $0x3c] sm:$0xff]  ;;  %v47_v49 = vmax.bf16 %v818_v35, %v35_v47  ;;  %v39_v52 = vld [vmem:[%s901_s0 + $0x44] sm:$0xff]  ;;  %v43_v62 = vmax.bf16 %v818_v35, %v31_v59  ;;  %v790_v3 = vld [vmem:[#allocation2 + $0x110] sm:$0xff]  }
  0x1c   :  { %670 = vmatpush3.bf16.msra.mxu0 %v767_v14  ;;  %v614_v42 = vcombine.high %v41_v36, %v44_v37  ;;  %v613_v43 = vcombine.low %v41_v36, %v44_v37  ;;  %v50_v50 = vmax.bf16 %v818_v35, %v38_v48  ;;  %v787_v53 = vld [vmem:[#allocation2 + $0x128] sm:$0xff]   ;;  %v51_v55 = vmax.bf16 %v818_v35, %v39_v52  ;;  %v34_v61 = vld [vmem:[%s901_s0 + $0x24] sm:$0xf]  ;;  %v789_v2 = vld [vmem:[#allocation2 + $0x118] sm:$0xff]  }
  0x1d   :  { %698 = vmatpush3.bf16.msra.mxu1 %v768_v15  ;;  %671 = vmatprep.subr.bf16.mxu0 %v769_v16  ;;  %v616_v44 = vcombine.high %v42_v39, %v45_v40  ;;  %v615_v45 = vcombine.low %v42_v39, %v45_v40  ;;  %v788_v63 = vld [vmem:[#allocation2 + $0x120] sm:$0xff]   ;;  %v46_v0 = vmax.bf16 %v818_v35, %v34_v61  ;;  %v791_v4 = vld [vmem:[#allocation2 + $0x108] sm:$0xff]   ;;  %v37_v5 = vld [vmem:[%s901_s0 + $0x38] sm:$0xf] }
  0x1e   :  { %699 = vmatprep.subr.bf16.mxu1 %v770_v17  ;;  %457 = vmatprep.mubr.bf16.mxu0 %v614_v42  ;;  %v619_v56 = vcombine.high %v47_v49, %v50_v50  ;;  %v621_v57 = vcombine.high %v48_v54, %v51_v55  ;;  %v618_v58 = vcombine.low %v47_v49, %v50_v50  ;;  %v40_v6 = vld [vmem:[%s901_s0 + $0x4c] sm:$0xf]  ;;  %v792_v7 = vld [vmem:[#allocation2 + $0x100] sm:$0xff]  }
  0x1f   :  { %506 = vmatprep.mubr.bf16.mxu1 %v616_v44  ;;  %v620_v60 = vcombine.low %v48_v54, %v51_v55  ;;  %v617_v1 = vcombine.low %v43_v62, %v46_v0  ;;  %v49_v8 = vmax.bf16 %v818_v35, %v37_v5  ;;  %v52_v9 = vmax.bf16 %v818_v35, %v40_v6 }
  0x20   :  { %672 = vmatpush3.bf16.msra.mxu0 %v771_v18 }
  0x21   :  { %700 = vmatpush3.bf16.msra.mxu1 %v772_v19  ;;  %673 = vmatprep.subr.bf16.mxu0 %v773_v20  ;;  %v622_v10 = vcombine.low %v49_v8, %v52_v9 }
  0x22   :  { %701 = vmatprep.subr.bf16.mxu1 %v774_v21 }
  0x24   :  { %674 = vmatpush3.bf16.msra.mxu0 %v775_v22 }
  0x25   :  { %702 = vmatpush3.bf16.msra.mxu1 %v776_v23  ;;  %675 = vmatprep.subr.bf16.mxu0 %v777_v24 }
  0x26   :  { %703 = vmatprep.subr.bf16.mxu1 %v778_v25 }
  0x28   :  { %676 = vmatpush3.bf16.msra.mxu0 %v779_v26 }
  0x29   :  { %704 = vmatpush3.bf16.msra.mxu1 %v780_v27  ;;  %677 = vmatprep.subr.bf16.mxu0 %v781_v28 }
  0x2a   :  { %705 = vmatprep.subr.bf16.mxu1 %v782_v29 }
  0x2c   :  { %678 = vmatpush3.bf16.msra.mxu0 %v783_v30 }
  0x2d   :  { %706 = vmatpush3.bf16.msra.mxu1 %v784_v31  ;;  %729 = vmatprep.subr.bf16.mxu0 %v785_v41 }
  0x2f   :  { %458 = vmatmul.mubr.bf16.vlgmr.msra.gmra.mxu0 %v613_v43 }
  0x30   :  { %507 = vmatmul.mubr.bf16.vlgmr.msra.gmra.mxu1 %v615_v45  ;;  %730 = vmatpush3.bf16.msra.mxu0 %v785_v41 }
  0x31   :  { %731 = vmatprep.subr.bf16.mxu0 %v786_v46  ;;  %465 = vmatprep.mubr.bf16.mxu0 %v619_v56 }
  0x32   :  { %514 = vmatprep.mubr.bf16.mxu1 %v621_v57 }
  0x34   :  { %732 = vmatpush3.bf16.msra.mxu0 %v786_v46 }
  0x35   :  { %733 = vmatprep.subr.bf16.mxu0 %v787_v53 }
  0x37   :  { %466 = vmatmul.mubr.bf16.gmra.mxu0 %v618_v58 }
  0x38   :  { %734 = vmatpush3.bf16.msra.mxu0 %v787_v53  ;;  %515 = vmatmul.mubr.bf16.gmra.mxu1 %v620_v60 }
  0x39   :  { %735 = vmatprep.subr.bf16.mxu0 %v788_v63  ;;  %745 = vmatprep.mubr.bf16.mxu0 %v617_v1 }
  0x3c   :  { %736 = vmatpush3.bf16.msra.mxu0 %v788_v63 }
  0x3d   :  { %737 = vmatprep.subr.bf16.mxu0 %v789_v2 }
  0x40   :  { %738 = vmatpush3.bf16.msra.mxu0 %v789_v2 }
  0x41   :  { %739 = vmatprep.subr.bf16.mxu0 %v790_v3 }
  0x44   :  { %740 = vmatpush3.bf16.msra.mxu0 %v790_v3 }
  0x45   :  { %741 = vmatprep.subr.bf16.mxu0 %v791_v4 }
  0x48   :  { %742 = vmatpush3.bf16.msra.mxu0 %v791_v4 }
  0x49   :  { %743 = vmatprep.subr.bf16.mxu0 %v792_v7 }
  0x4c   :  { %744 = vmatpush3.bf16.msra.mxu0 %v792_v7 }
  0x4f   :  { %746 = vmatmul.mubr.bf16.vlgmr.msra.gmra.mxu0 %v622_v10 }
  0xef   :  { %v679_v11 = vpop.f32.mrf.mxu0 }
  0xf0   :  { %v707_v12 = vpop.f32.mrf.mxu1 }
  0xf1   :  { %v680_v13 = vpop.f32.mrf.mxu0 }
  0xf2   :  { %v708_v14 = vpop.f32.mrf.mxu1  ;;  %v681_v29 = vadd.f32 %v680_v13, %v679_v11 }
  0xf3   :  { %v682_v15 = vpop.f32.mrf.mxu0  ;;  %v709_v30 = vadd.f32 %v708_v14, %v707_v12 }
  0xf4   :  { %v710_v16 = vpop.f32.mrf.mxu1 }
  0xf5   :  { %v683_v17 = vpop.f32.mrf.mxu0  ;;  %v509_v38 = vadd.f32 %v709_v30, %v681_v29 }
  0xf6   :  { %v711_v18 = vpop.f32.mrf.mxu1  ;;  %v684_v35 = vadd.f32 %v683_v17, %v682_v15 }
  0xf7   :  { %v685_v19 = vpop.f32.mrf.mxu0  ;;  %v712_v36 = vadd.f32 %v711_v18, %v710_v16 }
  0xf8   :  { %v713_v20 = vpop.f32.mrf.mxu1 }
  0xf9   :  { %v686_v21 = vpop.f32.mrf.mxu0  ;;  %v512_v44 = vadd.f32 %v712_v36, %v684_v35 }
  0xfa   :  { %v714_v22 = vpop.f32.mrf.mxu1  ;;  %v687_v25 = vadd.f32 %v686_v21, %v685_v19 }
  0xfb   :  { %v688_v23 = vpop.f32.mrf.mxu0  ;;  %v715_v26 = vadd.f32 %v714_v22, %v713_v20 }
  0xfc   :  { %v716_v24 = vpop.f32.mrf.mxu1 }
  0xfd   :  { %v689_v27 = vpop.f32.mrf.mxu0  ;;  %v517_v33 = vadd.f32 %v715_v26, %v687_v25 }
  0xfe   :  { %v717_v28 = vpop.f32.mrf.mxu1  ;;  %v690_v31 = vadd.f32 %v689_v27, %v688_v23 }
  0xff   :  { %v718_v32 = vadd.f32 %v717_v28, %v716_v24 }
 0x101   :  { %v520_v41 = vadd.f32 %v718_v32, %v690_v31 }
 0x10f   :  { %v747_v34 = vpop.f32.mrf.mxu0 }
 0x110   :  { %v566_v37 = vadd.f32 %v747_v34, %v517_v33 }
 0x111   :  { %v557_v39 = vpop.f32.mrf.mxu0 }
 0x112   :  { %574 = vst [vmem:[%s903_s2 + $0x10] sm:$0xff] %v566_v37  ;;  %v558_v40 = vadd.f32 %v557_v39, %v509_v38  ;;  %v587_v50 = vmul.f32 %v566_v37, %v566_v37 }
 0x113   :  { %v748_v42 = vpop.f32.mrf.mxu0 }
 0x114   :  { %572 = vst [vmem:[%s903_s2] sm:$0xff] %v558_v40  ;;  %v569_v43 = vadd.f32 %v748_v42, %v520_v41  ;;  %v585_v47 = vmul.f32 %v558_v40, %v558_v40 }
 0x115   :  { %v560_v45 = vpop.f32.mrf.mxu0 }
 0x116   :  { %575 = vst [vmem:[%s903_s2 + $0x18] sm:$0xff] %v569_v43  ;;  %v561_v46 = vadd.f32 %v560_v45, %v512_v44  ;;  %v588_v53 = vmul.f32 %v569_v43, %v569_v43 }
 0x118   :  { %573 = vst [vmem:[%s903_s2 + $0x8] sm:$0xff] %v561_v46  ;;  %v576_v48 = vadd.f32 %v561_v46, %v558_v40  ;;  %v586_v49 = vmul.f32 %v561_v46, %v561_v46 }
 0x11a   :  { %v577_v51 = vadd.f32 %v576_v48, %v566_v37  ;;  %v589_v52 = vadd.f32 %v586_v49, %v585_v47 }
 0x11c   :  { %v578_v54 = vadd.f32 %v577_v51, %v569_v43  ;;  %v590_v55 = vadd.f32 %v589_v52, %v587_v50 }
 0x11e   :  { %v579_v56 = vrot.slane %v578_v54, 4  ;;  %v591_v57 = vadd.f32 %v590_v55, %v588_v53 }
 0x120   :  { %v580_v58 = vadd.f32 %v579_v56, %v578_v54  ;;  %v592_v59 = vrot.slane %v591_v57, 4 }
 0x122   :  { %v581_v60 = vrot.slane %v580_v58, 2  ;;  %v593_v61 = vadd.f32 %v592_v59, %v591_v57 }
 0x124   :  { %v582_v62 = vadd.f32 %v581_v60, %v580_v58  ;;  %v594_v63 = vrot.slane %v593_v61, 2 }
 0x126   :  { %v583_v0 = vrot.slane %v582_v62, 1  ;;  %v595_v1 = vadd.f32 %v594_v63, %v593_v61 }
 0x128   :  { %v584_v2 = vadd.f32 %v583_v0, %v582_v62  ;;  %v596_v3 = vrot.slane %v595_v1, 1 }
 0x12a   :  { %v597_v4 = vadd.f32 %v596_v3, %v595_v1  ;;  %598 = vst [vmem:[%s904_s3] sm:$0xff] %v584_v2 }
 0x12c   :  { %599 = vst [vmem:[%s905_s4] sm:$0xff] %v597_v4 }
 0x12d   :  { %612 = vsyncpa [#allocation3], 1 }

// kernel: generator_forward.5
= control target key start
LH: loop header
LB: loop body
LE: loop exit
PB: predicated region body
PF: predicated region fallthrough
CT: control target
= control target key end

     0   :  { %10 = vsyncpa [#allocation3], 0  ;;  %s809_s15 = smov [#allocation2]   ;;  %s926_s0 = inlined_call_operand.vmem [shape: bf16[8,128], index: 0, kind: input, shape index: {}]   ;;  %s927_s1 = inlined_call_operand.hbm [shape: bf16[128,1024], index: 1, kind: input, shape index: {}]   ;;  %s928_s2 = inlined_call_operand.vmem [shape: f32[8,1024], index: 2, kind: output, shape index: {0}]   ;;  %s929_s3 = inlined_call_operand.vmem [shape: f32[1,8,1024], index: 3, kind: output, shape index: {1}]   ;;  %s930_s4 = inlined_call_operand.vmem [shape: f32[1,8,1024], index: 4, kind: output, shape index: {2}]  }
   0x1   :  { %s18_s16 = sshll.u32 %s809_s15, 4  ;;  %s19_s16 = int_to_ptr.vmem [resolvable:$true] %s18_s16 }
   0x2   :  { %s795_s17 = scalar_lea.vmem %s19_s16, 8192  ;;  %p800_p1 = scmp.lt.s32.totalorder %s19_s16, %s19_s16 }
   0x3   :  { %p796_p0 = scmp.ne.s32.totalorder %s19_s16, %s795_s17  ;;  %p801_p2 = scmp.lt.s32.totalorder %s795_s17, %s795_s17 }
   0x5   :  { %p802_p3 = por %p801_p2, %p800_p1 }
   0x7   :  { %p803_p4 = pnand %p802_p3, %p796_p0 }
   0x9   :  { %806 = shalt.err (!%p803_p4)
}
   0xa   :  { %s810_s18 = smov 512   ;;  %s811_s19 = smov 32  }
   0xb   :  { %24 = dma.hbm_to_vmem [thread:$0]  %s927_s1, 8192, %s19_s16, [#allocation3], %s810_s18, %s810_s18, %s811_s19  }
   0xc   :  { %807 = dma.done.wait [#allocation3], 8192  }
   0xd   :  { %808 = vsyncadd [#allocation3], 4294959104  ;;  %v812_v0 = vmov 0   ;;  %v86_v1 = vld [vmem:[#allocation2 + $0x1c0] sm:$0xff]  ;;  %v87_v3 = vld [vmem:[#allocation2 + $0x1c8] sm:$0xff] }
   0xe   :  { %446 = vmatprep.mubr.bf16.mxu0 %v812_v0  ;;  %487 = vmatprep.mubr.bf16.mxu1 %v812_v0  ;;  %v90_v2 = vld [vmem:[#allocation2 + $0x1e0] sm:$0xff]  ;;  %v91_v5 = vld [vmem:[#allocation2 + $0x1e8] sm:$0xff]  ;;  %v88_v63 = vld [vmem:[#allocation2 + $0x1d0] sm:$0xff] }
   0xf   :  { %v776_v4 = vcombine.high %v86_v1, %v90_v2  ;;  %v775_v6 = vcombine.low %v86_v1, %v90_v2  ;;  %v78_v7 = vld [vmem:[#allocation2 + $0x180] sm:$0xff]  ;;  %v778_v9 = vcombine.high %v87_v3, %v91_v5  ;;  %v777_v10 = vcombine.low %v87_v3, %v91_v5  ;;  %v79_v12 = vld [vmem:[#allocation2 + $0x188] sm:$0xff]  ;;  %v92_v1 = vld [vmem:[#allocation2 + $0x1f0] sm:$0xff] }
  0x10   :  { %v82_v8 = vld [vmem:[#allocation2 + $0x1a0] sm:$0xff]  ;;  %v83_v13 = vld [vmem:[#allocation2 + $0x1a8] sm:$0xff]  ;;  %v89_v2 = vld [vmem:[#allocation2 + $0x1d8] sm:$0xff] }
  0x11   :  { %v768_v11 = vcombine.high %v78_v7, %v82_v8  ;;  %v70_v14 = vld [vmem:[#allocation2 + $0x140] sm:$0xff]  ;;  %414 = vmatprep.subr.bf16.mxu0 %v776_v4  ;;  %v770_v15 = vcombine.high %v79_v12, %v83_v13  ;;  %v71_v17 = vld [vmem:[#allocation2 + $0x148] sm:$0xff]  ;;  %455 = vmatprep.subr.bf16.mxu1 %v778_v9  ;;  %v767_v19 = vcombine.low %v78_v7, %v82_v8  ;;  %v93_v3 = vld [vmem:[#allocation2 + $0x1f8] sm:$0xff] }
  0x12   :  { %v74_v16 = vld [vmem:[#allocation2 + $0x160] sm:$0xff]  ;;  %v75_v18 = vld [vmem:[#allocation2 + $0x168] sm:$0xff]  ;;  %415 = vmatpush1.bf16.msra.mxu0 %v775_v6  ;;  %456 = vmatpush1.bf16.msra.mxu1 %v777_v10  ;;  %v769_v20 = vcombine.low %v79_v12, %v83_v13  ;;  %v780_v6 = vcombine.high %v88_v63, %v92_v1  ;;  %v782_v7 = vcombine.high %v89_v2, %v93_v3  ;;  %v80_v8 = vld [vmem:[#allocation2 + $0x190] sm:$0xff] }
  0x13   :  { %416 = vmatprep.subr.bf16.mxu0 %v768_v11  ;;  %v760_v21 = vcombine.high %v70_v14, %v74_v16  ;;  %457 = vmatprep.subr.bf16.mxu1 %v770_v15  ;;  %v762_v22 = vcombine.high %v71_v17, %v75_v18  ;;  %v62_v23 = vld [vmem:[#allocation2 + $0x100] sm:$0xff]  ;;  %v63_v25 = vld [vmem:[#allocation2 + $0x108] sm:$0xff]  ;;  %v759_v27 = vcombine.low %v70_v14, %v74_v16  ;;  %v84_v9 = vld [vmem:[#allocation2 + $0x1b0] sm:$0xff] }
  0x14   :  { %v66_v24 = vld [vmem:[#allocation2 + $0x120] sm:$0xff]  ;;  %v67_v26 = vld [vmem:[#allocation2 + $0x128] sm:$0xff]  ;;  %v761_v28 = vcombine.low %v71_v17, %v75_v18  ;;  %v81_v10 = vld [vmem:[#allocation2 + $0x198] sm:$0xff]  ;;  %v779_v13 = vcombine.low %v88_v63, %v92_v1  ;;  %v781_v14 = vcombine.low %v89_v2, %v93_v3  ;;  %v772_v15 = vcombine.high %v80_v8, %v84_v9 }
  0x15   :  { %v752_v29 = vcombine.high %v62_v23, %v66_v24  ;;  %v754_v30 = vcombine.high %v63_v25, %v67_v26  ;;  %v54_v31 = vld [vmem:[#allocation2 + $0xc0] sm:$0xff]  ;;  %v55_v33 = vld [vmem:[#allocation2 + $0xc8] sm:$0xff]  ;;  %v751_v35 = vcombine.low %v62_v23, %v66_v24  ;;  %v753_v36 = vcombine.low %v63_v25, %v67_v26  ;;  %v85_v11 = vld [vmem:[#allocation2 + $0x1b8] sm:$0xff] }
  0x16   :  { %417 = vmatpush1.bf16.msra.mxu0 %v767_v19  ;;  %458 = vmatpush1.bf16.msra.mxu1 %v769_v20  ;;  %v58_v32 = vld [vmem:[#allocation2 + $0xe0] sm:$0xff]  ;;  %v59_v34 = vld [vmem:[#allocation2 + $0xe8] sm:$0xff]  ;;  %v774_v16 = vcombine.high %v81_v10, %v85_v11  ;;  %v72_v17 = vld [vmem:[#allocation2 + $0x150] sm:$0xff] }
  0x17   :  { %418 = vmatprep.subr.bf16.mxu0 %v760_v21  ;;  %459 = vmatprep.subr.bf16.mxu1 %v762_v22  ;;  %v744_v37 = vcombine.high %v54_v31, %v58_v32  ;;  %v746_v38 = vcombine.high %v55_v33, %v59_v34  ;;  %v46_v39 = vld [vmem:[#allocation2 + $0x80] sm:$0xff]  ;;  %v47_v41 = vld [vmem:[#allocation2 + $0x88] sm:$0xff]  ;;  %v743_v43 = vcombine.low %v54_v31, %v58_v32  ;;  %v76_v18 = vld [vmem:[#allocation2 + $0x170] sm:$0xff] }
  0x18   :  { %v50_v40 = vld [vmem:[#allocation2 + $0xa0] sm:$0xff]  ;;  %v51_v42 = vld [vmem:[#allocation2 + $0xa8] sm:$0xff]  ;;  %v745_v44 = vcombine.low %v55_v33, %v59_v34  ;;  %v73_v19 = vld [vmem:[#allocation2 + $0x158] sm:$0xff]  ;;  %v771_v21 = vcombine.low %v80_v8, %v84_v9  ;;  %v773_v22 = vcombine.low %v81_v10, %v85_v11  ;;  %v764_v23 = vcombine.high %v72_v17, %v76_v18 }
  0x19   :  { %v736_v45 = vcombine.high %v46_v39, %v50_v40  ;;  %v738_v46 = vcombine.high %v47_v41, %v51_v42  ;;  %v38_v47 = vld [vmem:[#allocation2 + $0x40] sm:$0xff]  ;;  %v39_v49 = vld [vmem:[#allocation2 + $0x48] sm:$0xff]  ;;  %v735_v51 = vcombine.low %v46_v39, %v50_v40  ;;  %v737_v52 = vcombine.low %v47_v41, %v51_v42  ;;  %v77_v20 = vld [vmem:[#allocation2 + $0x178] sm:$0xff] }
  0x1a   :  { %419 = vmatpush1.bf16.msra.mxu0 %v759_v27  ;;  %460 = vmatpush1.bf16.msra.mxu1 %v761_v28  ;;  %v42_v48 = vld [vmem:[#allocation2 + $0x60] sm:$0xff]  ;;  %v43_v50 = vld [vmem:[#allocation2 + $0x68] sm:$0xff]  ;;  %v766_v24 = vcombine.high %v73_v19, %v77_v20  ;;  %v64_v25 = vld [vmem:[#allocation2 + $0x110] sm:$0xff] }
  0x1b   :  { %420 = vmatprep.subr.bf16.mxu0 %v752_v29  ;;  %461 = vmatprep.subr.bf16.mxu1 %v754_v30  ;;  %v728_v53 = vcombine.high %v38_v47, %v42_v48  ;;  %v730_v54 = vcombine.high %v39_v49, %v43_v50  ;;  %v30_v55 = vld [vmem:[#allocation2] sm:$0xff]  ;;  %v31_v57 = vld [vmem:[#allocation2 + $0x8] sm:$0xff]  ;;  %v727_v59 = vcombine.low %v38_v47, %v42_v48  ;;  %v68_v26 = vld [vmem:[#allocation2 + $0x130] sm:$0xff] }
  0x1c   :  { %v34_v56 = vld [vmem:[#allocation2 + $0x20] sm:$0xff]  ;;  %v35_v58 = vld [vmem:[#allocation2 + $0x28] sm:$0xff]  ;;  %v729_v60 = vcombine.low %v39_v49, %v43_v50  ;;  %v65_v27 = vld [vmem:[#allocation2 + $0x118] sm:$0xff]  ;;  %v763_v29 = vcombine.low %v72_v17, %v76_v18  ;;  %v765_v30 = vcombine.low %v73_v19, %v77_v20  ;;  %v756_v31 = vcombine.high %v64_v25, %v68_v26 }
  0x1d   :  { %v720_v61 = vcombine.high %v30_v55, %v34_v56  ;;  %v722_v62 = vcombine.high %v31_v57, %v35_v58  ;;  %v719_v4 = vcombine.low %v30_v55, %v34_v56  ;;  %v721_v5 = vcombine.low %v31_v57, %v35_v58  ;;  %v846_v12 = vld [vmem:[%s926_s0] sm:$0xf]  ;;  %v69_v28 = vld [vmem:[#allocation2 + $0x138] sm:$0xff]  ;;  %v56_v33 = vld [vmem:[#allocation2 + $0xd0] sm:$0xff] }
  0x1e   :  { %421 = vmatpush1.bf16.msra.mxu0 %v751_v35  ;;  %462 = vmatpush1.bf16.msra.mxu1 %v753_v36  ;;  %v758_v32 = vcombine.high %v65_v27, %v69_v28  ;;  %v60_v34 = vld [vmem:[#allocation2 + $0xf0] sm:$0xff]  ;;  %v57_v35 = vld [vmem:[#allocation2 + $0xd8] sm:$0xff] }
  0x1f   :  { %422 = vmatprep.subr.bf16.mxu0 %v744_v37  ;;  %463 = vmatprep.subr.bf16.mxu1 %v746_v38  ;;  %v61_v36 = vld [vmem:[#allocation2 + $0xf8] sm:$0xff]  ;;  %v755_v37 = vcombine.low %v64_v25, %v68_v26  ;;  %v757_v38 = vcombine.low %v65_v27, %v69_v28  ;;  %v748_v39 = vcombine.high %v56_v33, %v60_v34  ;;  %v48_v40 = vld [vmem:[#allocation2 + $0x90] sm:$0xff] }
  0x20   :  { %v52_v41 = vld [vmem:[#allocation2 + $0xb0] sm:$0xff]  ;;  %v49_v42 = vld [vmem:[#allocation2 + $0x98] sm:$0xff] }
  0x21   :  { %v40_v48 = vld [vmem:[#allocation2 + $0x50] sm:$0xff]  ;;  %v41_v50 = vld [vmem:[#allocation2 + $0x58] sm:$0xff] }
  0x22   :  { %423 = vmatpush1.bf16.msra.mxu0 %v743_v43  ;;  %464 = vmatpush1.bf16.msra.mxu1 %v745_v44  ;;  %v53_v43 = vld [vmem:[#allocation2 + $0xb8] sm:$0xff]  ;;  %v747_v44 = vcombine.low %v56_v33, %v60_v34  ;;  %v44_v49 = vld [vmem:[#allocation2 + $0x70] sm:$0xff] }
  0x23   :  { %424 = vmatprep.subr.bf16.mxu0 %v736_v45  ;;  %465 = vmatprep.subr.bf16.mxu1 %v738_v46  ;;  %v749_v45 = vcombine.low %v57_v35, %v61_v36  ;;  %v740_v46 = vcombine.high %v48_v40, %v52_v41  ;;  %v742_v47 = vcombine.high %v49_v42, %v53_v43  ;;  %v32_v56 = vld [vmem:[#allocation2 + $0x10] sm:$0xff]  ;;  %v33_v58 = vld [vmem:[#allocation2 + $0x18] sm:$0xff] }
  0x24   :  { %v36_v57 = vld [vmem:[#allocation2 + $0x30] sm:$0xff] }
  0x25   :  { %v723_v1 = vcombine.low %v32_v56, %v36_v57 }
  0x26   :  { %425 = vmatpush1.bf16.msra.mxu0 %v735_v51  ;;  %466 = vmatpush1.bf16.msra.mxu1 %v737_v52  ;;  %v45_v51 = vld [vmem:[#allocation2 + $0x78] sm:$0xff]  ;;  %v739_v52 = vcombine.low %v48_v40, %v52_v41 }
  0x27   :  { %426 = vmatprep.subr.bf16.mxu0 %v728_v53  ;;  %467 = vmatprep.subr.bf16.mxu1 %v730_v54  ;;  %v741_v53 = vcombine.low %v49_v42, %v53_v43  ;;  %v732_v54 = vcombine.high %v40_v48, %v44_v49  ;;  %v734_v55 = vcombine.high %v41_v50, %v45_v51 }
  0x2a   :  { %427 = vmatpush1.bf16.msra.mxu0 %v727_v59  ;;  %468 = vmatpush1.bf16.msra.mxu1 %v729_v60  ;;  %v37_v59 = vld [vmem:[#allocation2 + $0x38] sm:$0xff]  ;;  %v731_v60 = vcombine.low %v40_v48, %v44_v49 }
  0x2b   :  { %428 = vmatprep.subr.bf16.mxu0 %v720_v61  ;;  %469 = vmatprep.subr.bf16.mxu1 %v722_v62  ;;  %v733_v61 = vcombine.low %v41_v50, %v45_v51  ;;  %v724_v62 = vcombine.high %v32_v56, %v36_v57  ;;  %v726_v63 = vcombine.high %v33_v58, %v37_v59 }
  0x2c   :  { %v725_v2 = vcombine.low %v33_v58, %v37_v59 }
  0x2e   :  { %429 = vmatpush1.bf16.msra.mxu0 %v719_v4  ;;  %470 = vmatpush1.bf16.msra.mxu1 %v721_v5 }
  0x2f   :  { %496 = vmatprep.subr.bf16.mxu0 %v780_v6  ;;  %537 = vmatprep.subr.bf16.mxu1 %v782_v7 }
  0x31   :  { %447 = vmatmul.mubr.bf16.vlgmr.msra.gmra.mxu0 %v846_v12  ;;  %488 = vmatmul.mubr.bf16.vlgmr.msra.gmra.mxu1 %v846_v12 }
  0x32   :  { %497 = vmatpush1.bf16.msra.mxu0 %v779_v13  ;;  %538 = vmatpush1.bf16.msra.mxu1 %v781_v14 }
  0x33   :  { %498 = vmatprep.subr.bf16.mxu0 %v772_v15  ;;  %539 = vmatprep.subr.bf16.mxu1 %v774_v16 }
  0x34   :  { %528 = vmatprep.mubr.bf16.mxu0 %v812_v0  ;;  %569 = vmatprep.mubr.bf16.mxu1 %v812_v0  ;;  %v750_v0 = vcombine.high %v57_v35, %v61_v36 }
  0x36   :  { %499 = vmatpush1.bf16.msra.mxu0 %v771_v21  ;;  %540 = vmatpush1.bf16.msra.mxu1 %v773_v22 }
  0x37   :  { %500 = vmatprep.subr.bf16.mxu0 %v764_v23  ;;  %541 = vmatprep.subr.bf16.mxu1 %v766_v24 }
  0x3a   :  { %501 = vmatpush1.bf16.msra.mxu0 %v763_v29  ;;  %542 = vmatpush1.bf16.msra.mxu1 %v765_v30 }
  0x3b   :  { %502 = vmatprep.subr.bf16.mxu0 %v756_v31  ;;  %543 = vmatprep.subr.bf16.mxu1 %v758_v32 }
  0x3e   :  { %503 = vmatpush1.bf16.msra.mxu0 %v755_v37  ;;  %544 = vmatpush1.bf16.msra.mxu1 %v757_v38 }
  0x3f   :  { %504 = vmatprep.subr.bf16.mxu0 %v748_v39  ;;  %545 = vmatprep.subr.bf16.mxu1 %v750_v0 }
  0x42   :  { %505 = vmatpush1.bf16.msra.mxu0 %v747_v44  ;;  %546 = vmatpush1.bf16.msra.mxu1 %v749_v45 }
  0x43   :  { %506 = vmatprep.subr.bf16.mxu0 %v740_v46  ;;  %547 = vmatprep.subr.bf16.mxu1 %v742_v47 }
  0x46   :  { %507 = vmatpush1.bf16.msra.mxu0 %v739_v52  ;;  %548 = vmatpush1.bf16.msra.mxu1 %v741_v53 }
  0x47   :  { %508 = vmatprep.subr.bf16.mxu0 %v732_v54  ;;  %549 = vmatprep.subr.bf16.mxu1 %v734_v55 }
  0x4a   :  { %509 = vmatpush1.bf16.msra.mxu0 %v731_v60  ;;  %550 = vmatpush1.bf16.msra.mxu1 %v733_v61 }
  0x4b   :  { %510 = vmatprep.subr.bf16.mxu0 %v724_v62  ;;  %551 = vmatprep.subr.bf16.mxu1 %v726_v63 }
  0x4e   :  { %511 = vmatpush1.bf16.msra.mxu0 %v723_v1  ;;  %552 = vmatpush1.bf16.msra.mxu1 %v725_v2 }
  0x51   :  { %529 = vmatmul.mubr.bf16.vlgmr.msra.gmra.mxu0 %v846_v12  ;;  %570 = vmatmul.mubr.bf16.vlgmr.msra.gmra.mxu1 %v846_v12 }
  0xf1   :  { %v448_v3 = vpop.f32.mrf.mxu0  ;;  %v489_v6 = vpop.f32.mrf.mxu1 }
  0xf2   :  { %578 = vst [vmem:[%s928_s2] sm:$0xff] %v448_v3  ;;  %v586_v4 = vrot.slane %v448_v3, 4  ;;  %v634_v5 = vmul.f32 %v448_v3, %v448_v3  ;;  %580 = vst [vmem:[%s928_s2 + $0x10] sm:$0xff] %v489_v6  ;;  %v598_v7 = vrot.slane %v489_v6, 4  ;;  %v636_v8 = vmul.f32 %v489_v6, %v489_v6 }
  0xf3   :  { %v450_v9 = vpop.f32.mrf.mxu0  ;;  %v491_v14 = vpop.f32.mrf.mxu1 }
  0xf4   :  { %v587_v10 = vadd.f32 %v586_v4, %v448_v3  ;;  %v642_v11 = vrot.slane %v634_v5, 4  ;;  %579 = vst [vmem:[%s928_s2 + $0x8] sm:$0xff] %v450_v9  ;;  %v592_v12 = vrot.slane %v450_v9, 4  ;;  %v635_v13 = vmul.f32 %v450_v9, %v450_v9  ;;  %581 = vst [vmem:[%s928_s2 + $0x18] sm:$0xff] %v491_v14 }
  0xf5   :  { %v599_v15 = vadd.f32 %v598_v7, %v489_v6  ;;  %v654_v16 = vrot.slane %v636_v8, 4  ;;  %v604_v17 = vrot.slane %v491_v14, 4  ;;  %v637_v18 = vmul.f32 %v491_v14, %v491_v14  ;;  %v452_v19 = vpop.f32.mrf.mxu0  ;;  %v493_v24 = vpop.f32.mrf.mxu1 }
  0xf6   :  { %v588_v20 = vrot.slane %v587_v10, 2  ;;  %v643_v21 = vadd.f32 %v642_v11, %v634_v5  ;;  %v593_v22 = vadd.f32 %v592_v12, %v450_v9  ;;  %v648_v23 = vrot.slane %v635_v13, 4 }
  0xf7   :  { %v600_v25 = vrot.slane %v599_v15, 2  ;;  %v655_v26 = vadd.f32 %v654_v16, %v636_v8  ;;  %v605_v27 = vadd.f32 %v604_v17, %v491_v14  ;;  %v660_v28 = vrot.slane %v637_v18, 4  ;;  %v453_v29 = vpop.f32.mrf.mxu0  ;;  %v494_v34 = vpop.f32.mrf.mxu1 }
  0xf8   :  { %v589_v30 = vadd.f32 %v588_v20, %v587_v10  ;;  %v644_v31 = vrot.slane %v643_v21, 2  ;;  %v594_v32 = vrot.slane %v593_v22, 2  ;;  %v649_v33 = vadd.f32 %v648_v23, %v635_v13 }
  0xf9   :  { %v601_v35 = vadd.f32 %v600_v25, %v599_v15  ;;  %v656_v36 = vrot.slane %v655_v26, 2  ;;  %v606_v37 = vrot.slane %v605_v27, 2  ;;  %v661_v38 = vadd.f32 %v660_v28, %v637_v18 }
  0xfa   :  { %v590_v39 = vrot.slane %v589_v30, 1  ;;  %v645_v0 = vadd.f32 %v644_v31, %v643_v21  ;;  %v595_v40 = vadd.f32 %v594_v32, %v593_v22  ;;  %v650_v41 = vrot.slane %v649_v33, 2 }
  0xfb   :  { %v602_v42 = vrot.slane %v601_v35, 1  ;;  %v657_v43 = vadd.f32 %v656_v36, %v655_v26  ;;  %v607_v44 = vadd.f32 %v606_v37, %v605_v27  ;;  %v662_v45 = vrot.slane %v661_v38, 2 }
  0xfc   :  { %v591_v46 = vadd.f32 %v590_v39, %v589_v30  ;;  %v646_v47 = vrot.slane %v645_v0, 1  ;;  %v596_v48 = vrot.slane %v595_v40, 1  ;;  %v651_v49 = vadd.f32 %v650_v41, %v649_v33 }
  0xfd   :  { %v603_v50 = vadd.f32 %v602_v42, %v601_v35  ;;  %v658_v51 = vrot.slane %v657_v43, 1  ;;  %v608_v52 = vrot.slane %v607_v44, 1  ;;  %v663_v53 = vadd.f32 %v662_v45, %v661_v38 }
  0xfe   :  { %v647_v54 = vadd.f32 %v646_v47, %v645_v0  ;;  %690 = vst [vmem:[%s929_s3] sm:$0xff] %v591_v46  ;;  %v597_v55 = vadd.f32 %v596_v48, %v595_v40  ;;  %v652_v56 = vrot.slane %v651_v49, 1 }
  0xff   :  { %v659_v57 = vadd.f32 %v658_v51, %v657_v43  ;;  %692 = vst [vmem:[%s929_s3 + $0x10] sm:$0xff] %v603_v50  ;;  %v609_v58 = vadd.f32 %v608_v52, %v607_v44  ;;  %v664_v59 = vrot.slane %v663_v53, 1 }
 0x100   :  { %698 = vst [vmem:[%s930_s4] sm:$0xff] %v647_v54  ;;  %v653_v60 = vadd.f32 %v652_v56, %v651_v49  ;;  %691 = vst [vmem:[%s929_s3 + $0x8] sm:$0xff] %v597_v55 }
 0x101   :  { %700 = vst [vmem:[%s930_s4 + $0x10] sm:$0xff] %v659_v57  ;;  %v665_v61 = vadd.f32 %v664_v59, %v663_v53  ;;  %693 = vst [vmem:[%s929_s3 + $0x18] sm:$0xff] %v609_v58 }
 0x102   :  { %699 = vst [vmem:[%s930_s4 + $0x8] sm:$0xff] %v653_v60 }
 0x103   :  { %701 = vst [vmem:[%s930_s4 + $0x18] sm:$0xff] %v665_v61 }
 0x111   :  { %v530_v62 = vpop.f32.mrf.mxu0  ;;  %v571_v2 = vpop.f32.mrf.mxu1 }
 0x112   :  { %582 = vst [vmem:[%s928_s2 + $0x20] sm:$0xff] %v530_v62  ;;  %v610_v63 = vrot.slane %v530_v62, 4  ;;  %v638_v1 = vmul.f32 %v530_v62, %v530_v62  ;;  %584 = vst [vmem:[%s928_s2 + $0x30] sm:$0xff] %v571_v2  ;;  %v622_v3 = vrot.slane %v571_v2, 4  ;;  %v640_v4 = vmul.f32 %v571_v2, %v571_v2 }
 0x113   :  { %v532_v5 = vpop.f32.mrf.mxu0  ;;  %v573_v10 = vpop.f32.mrf.mxu1 }
 0x114   :  { %v611_v6 = vadd.f32 %v610_v63, %v530_v62  ;;  %v666_v7 = vrot.slane %v638_v1, 4  ;;  %583 = vst [vmem:[%s928_s2 + $0x28] sm:$0xff] %v532_v5  ;;  %v616_v8 = vrot.slane %v532_v5, 4  ;;  %v639_v9 = vmul.f32 %v532_v5, %v532_v5  ;;  %585 = vst [vmem:[%s928_s2 + $0x38] sm:$0xff] %v573_v10 }
 0x115   :  { %v623_v11 = vadd.f32 %v622_v3, %v571_v2  ;;  %v678_v12 = vrot.slane %v640_v4, 4  ;;  %v628_v13 = vrot.slane %v573_v10, 4  ;;  %v641_v14 = vmul.f32 %v573_v10, %v573_v10  ;;  %v534_v15 = vpop.f32.mrf.mxu0  ;;  %v575_v20 = vpop.f32.mrf.mxu1 }
 0x116   :  { %v612_v16 = vrot.slane %v611_v6, 2  ;;  %v667_v17 = vadd.f32 %v666_v7, %v638_v1  ;;  %v617_v18 = vadd.f32 %v616_v8, %v532_v5  ;;  %v672_v19 = vrot.slane %v639_v9, 4 }
 0x117   :  { %v624_v21 = vrot.slane %v623_v11, 2  ;;  %v679_v22 = vadd.f32 %v678_v12, %v640_v4  ;;  %v629_v23 = vadd.f32 %v628_v13, %v573_v10  ;;  %v684_v24 = vrot.slane %v641_v14, 4  ;;  %v535_v25 = vpop.f32.mrf.mxu0  ;;  %v576_v30 = vpop.f32.mrf.mxu1 }
 0x118   :  { %v613_v26 = vadd.f32 %v612_v16, %v611_v6  ;;  %v668_v27 = vrot.slane %v667_v17, 2  ;;  %v618_v28 = vrot.slane %v617_v18, 2  ;;  %v673_v29 = vadd.f32 %v672_v19, %v639_v9 }
 0x119   :  { %v625_v31 = vadd.f32 %v624_v21, %v623_v11  ;;  %v680_v32 = vrot.slane %v679_v22, 2  ;;  %v630_v33 = vrot.slane %v629_v23, 2  ;;  %v685_v34 = vadd.f32 %v684_v24, %v641_v14 }
 0x11a   :  { %v614_v35 = vrot.slane %v613_v26, 1  ;;  %v669_v36 = vadd.f32 %v668_v27, %v667_v17  ;;  %v619_v37 = vadd.f32 %v618_v28, %v617_v18  ;;  %v674_v38 = vrot.slane %v673_v29, 2 }
 0x11b   :  { %v626_v39 = vrot.slane %v625_v31, 1  ;;  %v681_v0 = vadd.f32 %v680_v32, %v679_v22  ;;  %v631_v40 = vadd.f32 %v630_v33, %v629_v23  ;;  %v686_v41 = vrot.slane %v685_v34, 2 }
 0x11c   :  { %v615_v42 = vadd.f32 %v614_v35, %v613_v26  ;;  %v670_v43 = vrot.slane %v669_v36, 1  ;;  %v620_v44 = vrot.slane %v619_v37, 1  ;;  %v675_v45 = vadd.f32 %v674_v38, %v673_v29 }
 0x11d   :  { %v627_v46 = vadd.f32 %v626_v39, %v625_v31  ;;  %v682_v47 = vrot.slane %v681_v0, 1  ;;  %v632_v48 = vrot.slane %v631_v40, 1  ;;  %v687_v49 = vadd.f32 %v686_v41, %v685_v34 }
 0x11e   :  { %v671_v50 = vadd.f32 %v670_v43, %v669_v36  ;;  %694 = vst [vmem:[%s929_s3 + $0x20] sm:$0xff] %v615_v42  ;;  %v621_v51 = vadd.f32 %v620_v44, %v619_v37  ;;  %v676_v52 = vrot.slane %v675_v45, 1 }
 0x11f   :  { %v683_v53 = vadd.f32 %v682_v47, %v681_v0  ;;  %696 = vst [vmem:[%s929_s3 + $0x30] sm:$0xff] %v627_v46  ;;  %v633_v54 = vadd.f32 %v632_v48, %v631_v40  ;;  %v688_v55 = vrot.slane %v687_v49, 1 }
 0x120   :  { %702 = vst [vmem:[%s930_s4 + $0x20] sm:$0xff] %v671_v50  ;;  %v677_v56 = vadd.f32 %v676_v52, %v675_v45  ;;  %695 = vst [vmem:[%s929_s3 + $0x28] sm:$0xff] %v621_v51 }
 0x121   :  { %704 = vst [vmem:[%s930_s4 + $0x30] sm:$0xff] %v683_v53  ;;  %v689_v57 = vadd.f32 %v688_v55, %v687_v49  ;;  %697 = vst [vmem:[%s929_s3 + $0x38] sm:$0xff] %v633_v54 }
 0x122   :  { %703 = vst [vmem:[%s930_s4 + $0x28] sm:$0xff] %v677_v56 }
 0x123   :  { %705 = vst [vmem:[%s930_s4 + $0x38] sm:$0xff] %v689_v57 }
 0x124   :  { %718 = vsyncpa [#allocation3], 1 }

// kernel: generator_forward.7
= control target key start
LH: loop header
LB: loop body
LE: loop exit
PB: predicated region body
PF: predicated region fallthrough
CT: control target
= control target key end

     0   :  { %10 = vsyncpa [#allocation3], 0  ;;  %s906_s15 = smov [#allocation2]   ;;  %s1120_s0 = inlined_call_operand.vmem [shape: bf16[128,384], index: 0, kind: input, shape index: {}]   ;;  %s1121_s1 = inlined_call_operand.hbm [shape: bf16[384,128], index: 1, kind: input, shape index: {}]   ;;  %s1122_s2 = inlined_call_operand.vmem [shape: f32[128,128], index: 2, kind: output, shape index: {0}]   ;;  %s1123_s3 = inlined_call_operand.vmem [shape: f32[1,8,128], index: 3, kind: output, shape index: {1}]   ;;  %s1124_s4 = inlined_call_operand.vmem [shape: f32[1,8,128], index: 4, kind: output, shape index: {2}]  }
   0x1   :  { %s18_s16 = sshll.u32 %s906_s15, 4  ;;  %s19_s16 = int_to_ptr.vmem [resolvable:$true] %s18_s16 }
   0x2   :  { %s892_s17 = scalar_lea.vmem %s19_s16, 3072  ;;  %p897_p1 = scmp.lt.s32.totalorder %s19_s16, %s19_s16 }
   0x3   :  { %p893_p0 = scmp.ne.s32.totalorder %s19_s16, %s892_s17  ;;  %p898_p2 = scmp.lt.s32.totalorder %s892_s17, %s892_s17 }
   0x5   :  { %p899_p3 = por %p898_p2, %p897_p1 }
   0x7   :  { %p900_p4 = pnand %p899_p3, %p893_p0 }
   0x9   :  { %903 = shalt.err (!%p900_p4)
}
   0xa   :  { %s907_s18 = smov 64   ;;  %s908_s19 = smov 4  }
   0xb   :  { %24 = dma.hbm_to_vmem [thread:$0]  %s1121_s1, 3072, %s19_s16, [#allocation3], %s907_s18, %s907_s18, %s908_s19  }
   0xc   :  { %904 = dma.done.wait [#allocation3], 3072  }
   0xd   :  { %905 = vsyncadd [#allocation3], 4294964224  ;;  %v860_v0 = vld [vmem:[#allocation2 + $0x78] sm:$0xff]   ;;  %v863_v3 = vld [vmem:[#allocation2 + $0x70] sm:$0xff]   ;;  %v909_v25 = vmov 0  }
   0xe   :  { %v861_v1 = vld [vmem:[#allocation2 + $0x38] sm:$0xff]   ;;  %744 = vmatprep.subr.bf16.mxu0 %v860_v0  ;;  %v864_v4 = vld [vmem:[#allocation2 + $0x30] sm:$0xff]   ;;  %v866_v6 = vld [vmem:[#allocation2 + $0x68] sm:$0xff]  }
   0xf   :  { %v862_v2 = vld [vmem:[#allocation2 + $0xb8] sm:$0xff]   ;;  %745 = vmatpush3.bf16.msra.mxu0 %v861_v1  ;;  %v865_v5 = vld [vmem:[#allocation2 + $0xb0] sm:$0xff]   ;;  %v867_v7 = vld [vmem:[#allocation2 + $0x28] sm:$0xff]  }
  0x10   :  { %824 = vmatprep.subr.bf16.mxu1 %v862_v2  ;;  %746 = vmatprep.subr.bf16.mxu0 %v863_v3  ;;  %v868_v8 = vld [vmem:[#allocation2 + $0xa8] sm:$0xff]   ;;  %v869_v9 = vld [vmem:[#allocation2 + $0x60] sm:$0xff]   ;;  %v872_v12 = vld [vmem:[#allocation2 + $0x58] sm:$0xff]  }
  0x11   :  { %825 = vmatpush3.bf16.msra.mxu1 %v862_v2  ;;  %v870_v10 = vld [vmem:[#allocation2 + $0x20] sm:$0xff]   ;;  %v874_v13 = vld [vmem:[#allocation2 + $0x98] sm:$0xff]   ;;  %v875_v15 = vld [vmem:[#allocation2 + $0x50] sm:$0xff]  }
  0x12   :  { %826 = vmatprep.subr.bf16.mxu1 %v865_v5  ;;  %v871_v11 = vld [vmem:[#allocation2 + $0xa0] sm:$0xff]   ;;  %v873_v14 = vld [vmem:[#allocation2 + $0x18] sm:$0xff]   ;;  %v877_v16 = vld [vmem:[#allocation2 + $0x90] sm:$0xff]  }
  0x13   :  { %747 = vmatpush3.bf16.msra.mxu0 %v864_v4  ;;  %v876_v17 = vld [vmem:[#allocation2 + $0x10] sm:$0xff]   ;;  %v878_v18 = vld [vmem:[#allocation2 + $0x48] sm:$0xff]   ;;  %v881_v21 = vld [vmem:[#allocation2 + $0x40] sm:$0xff]  }
  0x14   :  { %748 = vmatprep.subr.bf16.mxu0 %v866_v6  ;;  %v879_v19 = vld [vmem:[#allocation2 + $0x8] sm:$0xff]   ;;  %v29_v22 = vld [vmem:[%s1120_s0] sm:$0xff]  ;;  %v32_v28 = vld [vmem:[%s1120_s0 + $0x14] sm:$0xf] }
  0x15   :  { %827 = vmatpush3.bf16.msra.mxu1 %v865_v5  ;;  %v880_v20 = vld [vmem:[#allocation2 + $0x88] sm:$0xff]   ;;  %v61_v26 = vmax.bf16 %v909_v25, %v29_v22  ;;  %v34_v30 = vld [vmem:[%s1120_s0 + $0x20] sm:$0xf]  ;;  %v64_v33 = vmax.bf16 %v909_v25, %v32_v28  ;;  %v33_v34 = vld [vmem:[%s1120_s0 + $0x18] sm:$0xff] }
  0x16   :  { %828 = vmatprep.subr.bf16.mxu1 %v868_v8  ;;  %v31_v23 = vld [vmem:[%s1120_s0 + $0xc] sm:$0xff]  ;;  %v30_v24 = vld [vmem:[%s1120_s0 + $0x8] sm:$0xf]  ;;  %v883_v32 = vld [vmem:[#allocation2 + $0x80] sm:$0xff]   ;;  %v65_v38 = vmax.bf16 %v909_v25, %v33_v34  ;;  %v66_v43 = vmax.bf16 %v909_v25, %v34_v30 }
  0x17   :  { %749 = vmatpush3.bf16.msra.mxu0 %v867_v7  ;;  %v63_v27 = vmax.bf16 %v909_v25, %v31_v23  ;;  %v62_v29 = vmax.bf16 %v909_v25, %v30_v24  ;;  %v36_v31 = vld [vmem:[%s1120_s0 + $0x2c] sm:$0xf]  ;;  %v35_v35 = vld [vmem:[%s1120_s0 + $0x24] sm:$0xff]  ;;  %v38_v40 = vld [vmem:[%s1120_s0 + $0x38] sm:$0xf] }
  0x18   :  { %750 = vmatprep.subr.bf16.mxu0 %v869_v9  ;;  %v882_v36 = vld [vmem:[#allocation2] sm:$0xff]   ;;  %v67_v39 = vmax.bf16 %v909_v25, %v35_v35  ;;  %v68_v44 = vmax.bf16 %v909_v25, %v36_v31  ;;  %v70_v45 = vmax.bf16 %v909_v25, %v38_v40  ;;  %v37_v50 = vld [vmem:[%s1120_s0 + $0x30] sm:$0xff]  ;;  %v44_v54 = vld [vmem:[%s1120_s0 + $0x5c] sm:$0xf] }
  0x19   :  { %829 = vmatpush3.bf16.msra.mxu1 %v868_v8  ;;  %v697_v37 = vcombine.high %v61_v26, %v63_v27  ;;  %v40_v41 = vld [vmem:[%s1120_s0 + $0x44] sm:$0xf]  ;;  %v698_v42 = vcombine.low %v62_v29, %v64_v33  ;;  %v696_v46 = vcombine.low %v61_v26, %v63_v27  ;;  %v39_v51 = vld [vmem:[%s1120_s0 + $0x3c] sm:$0xff]  ;;  %v42_v53 = vld [vmem:[%s1120_s0 + $0x50] sm:$0xf]  ;;  %v69_v57 = vmax.bf16 %v909_v25, %v37_v50 }
  0x1a   :  { %830 = vmatprep.subr.bf16.mxu1 %v871_v11  ;;  %v72_v47 = vmax.bf16 %v909_v25, %v40_v41  ;;  %v700_v48 = vcombine.high %v65_v38, %v67_v39  ;;  %v701_v49 = vcombine.low %v66_v43, %v68_v44  ;;  %v46_v55 = vld [vmem:[%s1120_s0 + $0x68] sm:$0xf]  ;;  %v48_v56 = vld [vmem:[%s1120_s0 + $0x74] sm:$0xf]  ;;  %v71_v58 = vmax.bf16 %v909_v25, %v39_v51  ;;  %v50_v5 = vld [vmem:[%s1120_s0 + $0x80] sm:$0xf] }
  0x1b   :  { %751 = vmatpush3.bf16.msra.mxu0 %v870_v10  ;;  %445 = vmatprep.mubr.bf16.mxu0 %v697_v37  ;;  %v74_v59 = vmax.bf16 %v909_v25, %v42_v53  ;;  %v76_v60 = vmax.bf16 %v909_v25, %v44_v54  ;;  %v78_v61 = vmax.bf16 %v909_v25, %v46_v55  ;;  %v41_v2 = vld [vmem:[%s1120_s0 + $0x48] sm:$0xff]  ;;  %v43_v3 = vld [vmem:[%s1120_s0 + $0x54] sm:$0xff]  ;;  %v56_v8 = vld [vmem:[%s1120_s0 + $0xa4] sm:$0xf] }
  0x1c   :  { %752 = vmatprep.subr.bf16.mxu0 %v872_v12  ;;  %840 = vmatprep.mubr.bf16.mxu1 %v698_v42  ;;  %v704_v52 = vcombine.low %v70_v45, %v72_v47  ;;  %v80_v62 = vmax.bf16 %v909_v25, %v48_v56  ;;  %v699_v63 = vcombine.low %v65_v38, %v67_v39  ;;  %v52_v6 = vld [vmem:[%s1120_s0 + $0x8c] sm:$0xf]  ;;  %v54_v7 = vld [vmem:[%s1120_s0 + $0x98] sm:$0xf]  ;;  %v60_v22 = vld [vmem:[%s1120_s0 + $0xbc] sm:$0xf] }
  0x1d   :  { %831 = vmatpush3.bf16.msra.mxu1 %v871_v11  ;;  %v703_v0 = vcombine.high %v69_v57, %v71_v58  ;;  %v707_v1 = vcombine.low %v74_v59, %v76_v60  ;;  %v73_v9 = vmax.bf16 %v909_v25, %v41_v2  ;;  %v75_v10 = vmax.bf16 %v909_v25, %v43_v3  ;;  %v49_v30 = vld [vmem:[%s1120_s0 + $0x78] sm:$0xff]  ;;  %v51_v31 = vld [vmem:[%s1120_s0 + $0x84] sm:$0xff]  ;;  %v53_v37 = vld [vmem:[%s1120_s0 + $0x90] sm:$0xff] }
  0x1e   :  { %832 = vmatprep.subr.bf16.mxu1 %v874_v13  ;;  %v710_v4 = vcombine.low %v78_v61, %v80_v62  ;;  %v82_v11 = vmax.bf16 %v909_v25, %v50_v5  ;;  %v84_v12 = vmax.bf16 %v909_v25, %v52_v6  ;;  %v92_v27 = vmax.bf16 %v909_v25, %v60_v22  ;;  %v55_v38 = vld [vmem:[%s1120_s0 + $0x9c] sm:$0xff]  ;;  %v57_v43 = vld [vmem:[%s1120_s0 + $0xa8] sm:$0xff]  ;;  %v59_v44 = vld [vmem:[%s1120_s0 + $0xb4] sm:$0xff] }
  0x1f   :  { %753 = vmatpush3.bf16.msra.mxu0 %v873_v14  ;;  %v88_v14 = vmax.bf16 %v909_v25, %v56_v8  ;;  %v705_v28 = vcombine.low %v73_v9, %v75_v10  ;;  %v81_v33 = vmax.bf16 %v909_v25, %v49_v30  ;;  %v83_v34 = vmax.bf16 %v909_v25, %v51_v31 }
  0x20   :  { %754 = vmatprep.subr.bf16.mxu0 %v875_v15  ;;  %v702_v15 = vcombine.low %v69_v57, %v71_v58  ;;  %v85_v39 = vmax.bf16 %v909_v25, %v53_v37  ;;  %v87_v40 = vmax.bf16 %v909_v25, %v55_v38  ;;  %v89_v45 = vmax.bf16 %v909_v25, %v57_v43 }
  0x21   :  { %833 = vmatpush3.bf16.msra.mxu1 %v874_v13  ;;  %v86_v13 = vmax.bf16 %v909_v25, %v54_v7  ;;  %v711_v41 = vcombine.low %v81_v33, %v83_v34 }
  0x22   :  { %834 = vmatprep.subr.bf16.mxu1 %v877_v16  ;;  %v715_v42 = vcombine.high %v85_v39, %v87_v40  ;;  %v714_v47 = vcombine.low %v85_v39, %v87_v40 }
  0x23   :  { %755 = vmatpush3.bf16.msra.mxu0 %v876_v17  ;;  %v45_v17 = vld [vmem:[%s1120_s0 + $0x60] sm:$0xff] }
  0x24   :  { %756 = vmatprep.subr.bf16.mxu0 %v878_v18  ;;  %v47_v18 = vld [vmem:[%s1120_s0 + $0x6c] sm:$0xff]  ;;  %v77_v23 = vmax.bf16 %v909_v25, %v45_v17 }
  0x25   :  { %835 = vmatpush3.bf16.msra.mxu1 %v877_v16  ;;  %v706_v16 = vcombine.high %v73_v9, %v75_v10  ;;  %v79_v24 = vmax.bf16 %v909_v25, %v47_v18 }
  0x26   :  { %836 = vmatprep.subr.bf16.mxu1 %v880_v20 }
  0x27   :  { %757 = vmatpush3.bf16.msra.mxu0 %v879_v19  ;;  %v713_v19 = vcombine.low %v82_v11, %v84_v12  ;;  %v709_v29 = vcombine.high %v77_v23, %v79_v24  ;;  %v708_v35 = vcombine.low %v77_v23, %v79_v24 }
  0x28   :  { %758 = vmatprep.subr.bf16.mxu0 %v881_v21  ;;  %v58_v21 = vld [vmem:[%s1120_s0 + $0xb0] sm:$0xf] }
  0x29   :  { %837 = vmatpush3.bf16.msra.mxu1 %v880_v20  ;;  %v716_v20 = vcombine.low %v86_v13, %v88_v14  ;;  %v90_v26 = vmax.bf16 %v909_v25, %v58_v21 }
  0x2a   :  { %838 = vmatprep.subr.bf16.mxu1 %v883_v32 }
  0x2b   :  { %759 = vmatpush3.bf16.msra.mxu0 %v882_v36  ;;  %v712_v36 = vcombine.high %v81_v33, %v83_v34 }
  0x2d   :  { %839 = vmatpush3.bf16.msra.mxu1 %v883_v32  ;;  %v719_v32 = vcombine.low %v90_v26, %v92_v27 }
  0x2e   :  { %446 = vmatmul.mubr.bf16.vlgmr.msra.gmra.mxu0 %v696_v46  ;;  %v91_v46 = vmax.bf16 %v909_v25, %v59_v44 }
  0x2f   :  { %453 = vmatprep.mubr.bf16.mxu0 %v700_v48 }
  0x30   :  { %841 = vmatmul.mubr.bf16.vlgmr.msra.gmra.mxu1 %v701_v49  ;;  %v718_v48 = vcombine.high %v89_v45, %v91_v46  ;;  %v717_v49 = vcombine.low %v89_v45, %v91_v46 }
  0x31   :  { %844 = vmatprep.mubr.bf16.mxu1 %v704_v52 }
  0x36   :  { %454 = vmatmul.mubr.bf16.gmra.mxu0 %v699_v63 }
  0x37   :  { %461 = vmatprep.mubr.bf16.mxu0 %v703_v0 }
  0x38   :  { %845 = vmatmul.mubr.bf16.gmra.mxu1 %v707_v1 }
  0x39   :  { %848 = vmatprep.mubr.bf16.mxu1 %v710_v4 }
  0x3e   :  { %462 = vmatmul.mubr.bf16.gmra.mxu0 %v702_v15 }
  0x3f   :  { %469 = vmatprep.mubr.bf16.mxu0 %v706_v16 }
  0x40   :  { %849 = vmatmul.mubr.bf16.gmra.mxu1 %v713_v19 }
  0x41   :  { %852 = vmatprep.mubr.bf16.mxu1 %v716_v20 }
  0x46   :  { %470 = vmatmul.mubr.bf16.gmra.mxu0 %v705_v28 }
  0x47   :  { %477 = vmatprep.mubr.bf16.mxu0 %v709_v29 }
  0x48   :  { %853 = vmatmul.mubr.bf16.gmra.mxu1 %v719_v32 }
  0x4e   :  { %478 = vmatmul.mubr.bf16.gmra.mxu0 %v708_v35 }
  0x4f   :  { %485 = vmatprep.mubr.bf16.mxu0 %v712_v36 }
  0x56   :  { %486 = vmatmul.mubr.bf16.gmra.mxu0 %v711_v41 }
  0x57   :  { %493 = vmatprep.mubr.bf16.mxu0 %v715_v42 }
  0x5e   :  { %494 = vmatmul.mubr.bf16.gmra.mxu0 %v714_v47 }
  0x5f   :  { %501 = vmatprep.mubr.bf16.mxu0 %v718_v48 }
  0x66   :  { %502 = vmatmul.mubr.bf16.gmra.mxu0 %v717_v49 }
  0xee   :  { %v760_v50 = vpop.f32.mrf.mxu0 }
  0xf0   :  { %v761_v51 = vpop.f32.mrf.mxu0  ;;  %v842_v52 = vpop.f32.mrf.mxu1 }
  0xf1   :  { %v762_v53 = vadd.f32 %v761_v51, %v760_v50 }
  0xf2   :  { %v763_v54 = vpop.f32.mrf.mxu0  ;;  %v544_v55 = vpop.f32.mrf.mxu1 }
  0xf3   :  { %v545_v56 = vadd.f32 %v762_v53, %v544_v55 }
  0xf4   :  { %v764_v57 = vpop.f32.mrf.mxu0  ;;  %v843_v58 = vpop.f32.mrf.mxu1 }
  0xf5   :  { %607 = vst [vmem:[%s1122_s2] sm:$0xff] %v545_v56  ;;  %v765_v25 = vadd.f32 %v764_v57, %v763_v54  ;;  %v644_v37 = vmul.f32 %v545_v56, %v545_v56 }
  0xf6   :  { %v766_v59 = vpop.f32.mrf.mxu0  ;;  %v547_v60 = vpop.f32.mrf.mxu1 }
  0xf7   :  { %v548_v61 = vadd.f32 %v765_v25, %v547_v60 }
  0xf8   :  { %v767_v62 = vpop.f32.mrf.mxu0  ;;  %v846_v63 = vpop.f32.mrf.mxu1 }
  0xf9   :  { %608 = vst [vmem:[%s1122_s2 + $0x8] sm:$0xff] %v548_v61  ;;  %v768_v0 = vadd.f32 %v767_v62, %v766_v59  ;;  %v645_v33 = vmul.f32 %v548_v61, %v548_v61  ;;  %v623_v38 = vadd.f32 %v548_v61, %v545_v56 }
  0xfa   :  { %v769_v1 = vpop.f32.mrf.mxu0  ;;  %v560_v4 = vpop.f32.mrf.mxu1 }
  0xfb   :  { %v553_v2 = vadd.f32 %v842_v52, %v768_v0  ;;  %v660_v42 = vadd.f32 %v645_v33, %v644_v37 }
  0xfc   :  { %v770_v3 = vpop.f32.mrf.mxu0  ;;  %v847_v9 = vpop.f32.mrf.mxu1 }
  0xfd   :  { %609 = vst [vmem:[%s1122_s2 + $0x10] sm:$0xff] %v553_v2  ;;  %v771_v5 = vadd.f32 %v770_v3, %v769_v1  ;;  %v646_v39 = vmul.f32 %v553_v2, %v553_v2  ;;  %v624_v43 = vadd.f32 %v623_v38, %v553_v2 }
  0xfe   :  { %v772_v6 = vpop.f32.mrf.mxu0  ;;  %v563_v14 = vpop.f32.mrf.mxu1 }
  0xff   :  { %v556_v7 = vadd.f32 %v843_v58, %v771_v5  ;;  %v661_v47 = vadd.f32 %v660_v42, %v646_v39 }
 0x100   :  { %v773_v8 = vpop.f32.mrf.mxu0  ;;  %v850_v19 = vpop.f32.mrf.mxu1 }
 0x101   :  { %610 = vst [vmem:[%s1122_s2 + $0x18] sm:$0xff] %v556_v7  ;;  %v774_v10 = vadd.f32 %v773_v8, %v772_v6  ;;  %v647_v44 = vmul.f32 %v556_v7, %v556_v7  ;;  %v625_v48 = vadd.f32 %v624_v43, %v556_v7 }
 0x102   :  { %v775_v11 = vpop.f32.mrf.mxu0  ;;  %v576_v24 = vpop.f32.mrf.mxu1 }
 0x103   :  { %v561_v12 = vadd.f32 %v774_v10, %v560_v4  ;;  %v662_v54 = vadd.f32 %v661_v47, %v647_v44 }
 0x104   :  { %v776_v13 = vpop.f32.mrf.mxu0  ;;  %v851_v30 = vpop.f32.mrf.mxu1 }
 0x105   :  { %611 = vst [vmem:[%s1122_s2 + $0x20] sm:$0xff] %v561_v12  ;;  %v777_v15 = vadd.f32 %v776_v13, %v775_v11  ;;  %v648_v49 = vmul.f32 %v561_v12, %v561_v12  ;;  %v626_v53 = vadd.f32 %v625_v48, %v561_v12 }
 0x106   :  { %v778_v16 = vpop.f32.mrf.mxu0  ;;  %v579_v36 = vpop.f32.mrf.mxu1 }
 0x107   :  { %v564_v17 = vadd.f32 %v777_v15, %v563_v14  ;;  %v663_v58 = vadd.f32 %v662_v54, %v648_v49 }
 0x108   :  { %v779_v18 = vpop.f32.mrf.mxu0  ;;  %v854_v52 = vpop.f32.mrf.mxu1 }
 0x109   :  { %612 = vst [vmem:[%s1122_s2 + $0x28] sm:$0xff] %v564_v17  ;;  %v780_v20 = vadd.f32 %v779_v18, %v778_v16  ;;  %v649_v55 = vmul.f32 %v564_v17, %v564_v17  ;;  %v627_v25 = vadd.f32 %v626_v53, %v564_v17 }
 0x10a   :  { %v781_v21 = vpop.f32.mrf.mxu0  ;;  %v592_v62 = vpop.f32.mrf.mxu1 }
 0x10b   :  { %v569_v22 = vadd.f32 %v846_v63, %v780_v20  ;;  %v664_v63 = vadd.f32 %v663_v58, %v649_v55 }
 0x10c   :  { %v782_v23 = vpop.f32.mrf.mxu0 }
 0x10d   :  { %613 = vst [vmem:[%s1122_s2 + $0x30] sm:$0xff] %v569_v22  ;;  %v783_v26 = vadd.f32 %v782_v23, %v781_v21  ;;  %v650_v59 = vmul.f32 %v569_v22, %v569_v22  ;;  %v628_v0 = vadd.f32 %v627_v25, %v569_v22 }
 0x10e   :  { %v784_v27 = vpop.f32.mrf.mxu0 }
 0x10f   :  { %v572_v28 = vadd.f32 %v847_v9, %v783_v26  ;;  %v665_v4 = vadd.f32 %v664_v63, %v650_v59  ;;  %v855_v9 = vpop.f32.mrf.mxu1 }
 0x110   :  { %v785_v29 = vpop.f32.mrf.mxu0 }
 0x111   :  { %614 = vst [vmem:[%s1122_s2 + $0x38] sm:$0xff] %v572_v28  ;;  %v786_v31 = vadd.f32 %v785_v29, %v784_v27  ;;  %v651_v1 = vmul.f32 %v572_v28, %v572_v28  ;;  %v629_v5 = vadd.f32 %v628_v0, %v572_v28 }
 0x112   :  { %v787_v32 = vpop.f32.mrf.mxu0 }
 0x113   :  { %v577_v34 = vadd.f32 %v786_v31, %v576_v24  ;;  %v666_v11 = vadd.f32 %v665_v4, %v651_v1 }
 0x114   :  { %v788_v35 = vpop.f32.mrf.mxu0 }
 0x115   :  { %615 = vst [vmem:[%s1122_s2 + $0x40] sm:$0xff] %v577_v34  ;;  %v789_v40 = vadd.f32 %v788_v35, %v787_v32  ;;  %v652_v6 = vmul.f32 %v577_v34, %v577_v34  ;;  %v630_v10 = vadd.f32 %v629_v5, %v577_v34 }
 0x116   :  { %v790_v41 = vpop.f32.mrf.mxu0 }
 0x117   :  { %v580_v45 = vadd.f32 %v789_v40, %v579_v36  ;;  %v667_v15 = vadd.f32 %v666_v11, %v652_v6 }
 0x118   :  { %v791_v46 = vpop.f32.mrf.mxu0 }
 0x119   :  { %616 = vst [vmem:[%s1122_s2 + $0x48] sm:$0xff] %v580_v45  ;;  %v792_v50 = vadd.f32 %v791_v46, %v790_v41  ;;  %v653_v12 = vmul.f32 %v580_v45, %v580_v45  ;;  %v631_v16 = vadd.f32 %v630_v10, %v580_v45 }
 0x11a   :  { %v793_v51 = vpop.f32.mrf.mxu0 }
 0x11b   :  { %v585_v56 = vadd.f32 %v850_v19, %v792_v50  ;;  %v595_v19 = vpop.f32.mrf.mxu1  ;;  %v668_v21 = vadd.f32 %v667_v15, %v653_v12 }
 0x11c   :  { %v794_v57 = vpop.f32.mrf.mxu0 }
 0x11d   :  { %617 = vst [vmem:[%s1122_s2 + $0x50] sm:$0xff] %v585_v56  ;;  %v795_v60 = vadd.f32 %v794_v57, %v793_v51  ;;  %v654_v17 = vmul.f32 %v585_v56, %v585_v56  ;;  %v632_v22 = vadd.f32 %v631_v16, %v585_v56 }
 0x11e   :  { %v796_v61 = vpop.f32.mrf.mxu0 }
 0x11f   :  { %v588_v2 = vadd.f32 %v851_v30, %v795_v60  ;;  %v669_v27 = vadd.f32 %v668_v21, %v654_v17 }
 0x120   :  { %v797_v3 = vpop.f32.mrf.mxu0 }
 0x121   :  { %618 = vst [vmem:[%s1122_s2 + $0x58] sm:$0xff] %v588_v2  ;;  %v798_v7 = vadd.f32 %v797_v3, %v796_v61  ;;  %v655_v23 = vmul.f32 %v588_v2, %v588_v2  ;;  %v633_v28 = vadd.f32 %v632_v22, %v588_v2 }
 0x122   :  { %v799_v8 = vpop.f32.mrf.mxu0 }
 0x123   :  { %v593_v13 = vadd.f32 %v798_v7, %v592_v62  ;;  %v670_v33 = vadd.f32 %v669_v27, %v655_v23 }
 0x124   :  { %v800_v14 = vpop.f32.mrf.mxu0 }
 0x125   :  { %619 = vst [vmem:[%s1122_s2 + $0x60] sm:$0xff] %v593_v13  ;;  %v801_v18 = vadd.f32 %v800_v14, %v799_v8  ;;  %v656_v29 = vmul.f32 %v593_v13, %v593_v13  ;;  %v634_v32 = vadd.f32 %v633_v28, %v593_v13 }
 0x126   :  { %v802_v20 = vpop.f32.mrf.mxu0 }
 0x127   :  { %v596_v24 = vadd.f32 %v801_v18, %v595_v19  ;;  %v671_v37 = vadd.f32 %v670_v33, %v656_v29 }
 0x128   :  { %v803_v26 = vpop.f32.mrf.mxu0 }
 0x129   :  { %620 = vst [vmem:[%s1122_s2 + $0x68] sm:$0xff] %v596_v24  ;;  %v804_v30 = vadd.f32 %v803_v26, %v802_v20  ;;  %v657_v34 = vmul.f32 %v596_v24, %v596_v24  ;;  %v635_v38 = vadd.f32 %v634_v32, %v596_v24 }
 0x12a   :  { %v805_v31 = vpop.f32.mrf.mxu0 }
 0x12b   :  { %v601_v35 = vadd.f32 %v854_v52, %v804_v30  ;;  %v672_v41 = vadd.f32 %v671_v37, %v657_v34 }
 0x12c   :  { %v806_v36 = vpop.f32.mrf.mxu0 }
 0x12d   :  { %621 = vst [vmem:[%s1122_s2 + $0x70] sm:$0xff] %v601_v35  ;;  %v658_v39 = vmul.f32 %v601_v35, %v601_v35  ;;  %v807_v40 = vadd.f32 %v806_v36, %v805_v31  ;;  %v636_v42 = vadd.f32 %v635_v38, %v601_v35 }
 0x12f   :  { %v604_v43 = vadd.f32 %v855_v9, %v807_v40  ;;  %v673_v44 = vadd.f32 %v672_v41, %v658_v39 }
 0x131   :  { %622 = vst [vmem:[%s1122_s2 + $0x78] sm:$0xff] %v604_v43  ;;  %v637_v45 = vadd.f32 %v636_v42, %v604_v43  ;;  %v659_v46 = vmul.f32 %v604_v43, %v604_v43 }
 0x133   :  { %v638_v47 = vrot.slane %v637_v45, 4  ;;  %v674_v48 = vadd.f32 %v673_v44, %v659_v46 }
 0x135   :  { %v639_v49 = vadd.f32 %v638_v47, %v637_v45  ;;  %v675_v50 = vrot.slane %v674_v48, 4 }
 0x137   :  { %v640_v51 = vrot.slane %v639_v49, 2  ;;  %v676_v52 = vadd.f32 %v675_v50, %v674_v48 }
 0x139   :  { %v641_v53 = vadd.f32 %v640_v51, %v639_v49  ;;  %v677_v54 = vrot.slane %v676_v52, 2 }
 0x13b   :  { %v642_v55 = vrot.slane %v641_v53, 1  ;;  %v678_v56 = vadd.f32 %v677_v54, %v676_v52 }
 0x13d   :  { %v643_v57 = vadd.f32 %v642_v55, %v641_v53  ;;  %v679_v58 = vrot.slane %v678_v56, 1 }
 0x13f   :  { %v680_v25 = vadd.f32 %v679_v58, %v678_v56  ;;  %681 = vst [vmem:[%s1123_s3] sm:$0xff] %v643_v57 }
 0x141   :  { %682 = vst [vmem:[%s1124_s4] sm:$0xff] %v680_v25 }
 0x142   :  { %695 = vsyncpa [#allocation3], 1 }

// kernel: generator_forward.8
= control target key start
LH: loop header
LB: loop body
LE: loop exit
PB: predicated region body
PF: predicated region fallthrough
CT: control target
= control target key end

     0   :  { %v2550_v0 = vmov 0   ;;  %s2545_s1 = inlined_call_operand.vmem [shape: bf16[256,128], index: 1, kind: input, shape index: {}]   ;;  %s2546_s0 = inlined_call_operand.vmem [shape: bf16[512,256], index: 0, kind: input, shape index: {}]   ;;  %s2547_s2 = inlined_call_operand.vmem [shape: f32[512,128], index: 2, kind: output, shape index: {0}]   ;;  %s2548_s3 = inlined_call_operand.vmem [shape: f32[1,8,128], index: 3, kind: output, shape index: {1}]   ;;  %s2549_s4 = inlined_call_operand.vmem [shape: f32[1,8,128], index: 4, kind: output, shape index: {2}]  }
   0x1   :  { %591 = vmatprep.subr.bf16.mxu0 %v2550_v0  ;;  %v1273_v1 = vld [vmem:[%s2545_s1 + $0x38] sm:$0xff]   ;;  %1240 = vmatprep.subr.bf16.mxu1 %v2550_v0  ;;  %v1274_v2 = vld [vmem:[%s2545_s1 + $0x30] sm:$0xff]   ;;  %v1275_v3 = vld [vmem:[%s2545_s1 + $0x28] sm:$0xff]  }
   0x2   :  { %592 = vmatpush1.bf16.msra.mxu0 %v1273_v1  ;;  %1256 = vmatpush1.bf16.msra.mxu1 %v1273_v1  ;;  %v1276_v4 = vld [vmem:[%s2545_s1 + $0x20] sm:$0xff]   ;;  %v1277_v5 = vld [vmem:[%s2545_s1 + $0x18] sm:$0xff]   ;;  %v16_v7 = vld [vmem:[%s2546_s0 + $0x8] sm:$0xff] }
   0x3   :  { %593 = vmatprep.subr.bf16.mxu0 %v2550_v0  ;;  %1241 = vmatprep.subr.bf16.mxu1 %v2550_v0  ;;  %v15_v6 = vld [vmem:[%s2546_s0] sm:$0xff]  ;;  %v1350_v9 = vmax.bf16 %v2550_v0, %v16_v7  ;;  %v1278_v10 = vld [vmem:[%s2545_s1 + $0x10] sm:$0xff]   ;;  %v24_v13 = vld [vmem:[%s2546_s0 + $0x48] sm:$0xff] }
   0x4   :  { %v1347_v8 = vmax.bf16 %v2550_v0, %v15_v6  ;;  %v23_v11 = vld [vmem:[%s2546_s0 + $0x40] sm:$0xff]  ;;  %v25_v14 = vld [vmem:[%s2546_s0 + $0x50] sm:$0xff]  ;;  %v26_v15 = vld [vmem:[%s2546_s0 + $0x58] sm:$0xff]  ;;  %v1384_v20 = vmax.bf16 %v2550_v0, %v24_v13 }
   0x5   :  { %v27_v16 = vld [vmem:[%s2546_s0 + $0x60] sm:$0xff]  ;;  %v28_v17 = vld [vmem:[%s2546_s0 + $0x68] sm:$0xff]  ;;  %v1381_v19 = vmax.bf16 %v2550_v0, %v23_v11  ;;  %v1387_v21 = vmax.bf16 %v2550_v0, %v25_v14  ;;  %v1390_v22 = vmax.bf16 %v2550_v0, %v26_v15  ;;  %v29_v25 = vld [vmem:[%s2546_s0 + $0x70] sm:$0xff] }
   0x6   :  { %594 = vmatpush1.bf16.msra.mxu0 %v1274_v2  ;;  %1257 = vmatpush1.bf16.msra.mxu1 %v1274_v2  ;;  %v1161_v12 = vcombine.high %v1347_v8, %v1350_v9  ;;  %v1279_v18 = vld [vmem:[%s2545_s1 + $0x8] sm:$0xff]   ;;  %v1393_v23 = vmax.bf16 %v2550_v0, %v27_v16  ;;  %v1396_v24 = vmax.bf16 %v2550_v0, %v28_v17  ;;  %v30_v26 = vld [vmem:[%s2546_s0 + $0x78] sm:$0xff]  ;;  %v47_v27 = vld [vmem:[%s2546_s0 + $0x100] sm:$0xff] }
   0x7   :  { %595 = vmatprep.subr.bf16.mxu0 %v2550_v0  ;;  %1242 = vmatprep.subr.bf16.mxu1 %v2550_v0  ;;  %v48_v29 = vld [vmem:[%s2546_s0 + $0x108] sm:$0xff]  ;;  %v31_v30 = vld [vmem:[%s2546_s0 + $0x80] sm:$0xff]  ;;  %v1431_v37 = vmax.bf16 %v2550_v0, %v29_v25  ;;  %v1434_v38 = vmax.bf16 %v2550_v0, %v30_v26  ;;  %v1437_v39 = vmax.bf16 %v2550_v0, %v47_v27  ;;  %v33_v44 = vld [vmem:[%s2546_s0 + $0x90] sm:$0xff]  ;;  %v2567_v25 = vmov 0  }
   0x8   :  { %623 = vmatprep.mubr.bf16.mxu0 %v1161_v12  ;;  %v32_v31 = vld [vmem:[%s2546_s0 + $0x88] sm:$0xff]  ;;  %v1280_v40 = vld [vmem:[%s2545_s1] sm:$0xff]   ;;  %v1443_v41 = vmax.bf16 %v2550_v0, %v48_v29  ;;  %v1446_v42 = vmax.bf16 %v2550_v0, %v31_v30  ;;  %v34_v45 = vld [vmem:[%s2546_s0 + $0x98] sm:$0xff]  ;;  %v1476_v53 = vmax.bf16 %v2550_v0, %v33_v44  ;;  %v1160_v47 = vcombine.low %v1347_v8, %v1350_v9 }
   0x9   :  { %v1449_v43 = vmax.bf16 %v2550_v0, %v32_v31  ;;  %v35_v48 = vld [vmem:[%s2546_s0 + $0xa0] sm:$0xff]  ;;  %v36_v49 = vld [vmem:[%s2546_s0 + $0xa8] sm:$0xff]  ;;  %v1479_v54 = vmax.bf16 %v2550_v0, %v34_v45  ;;  %v1281_v55 = vld [vmem:[%s2545_s1 + $0x78] sm:$0xff]  }
   0xa   :  { %596 = vmatpush1.bf16.msra.mxu0 %v1275_v3  ;;  %1258 = vmatpush1.bf16.msra.mxu1 %v1275_v3  ;;  %v1193_v50 = vcombine.high %v1437_v39, %v1443_v41  ;;  %v1485_v56 = vmax.bf16 %v2550_v0, %v35_v48  ;;  %v1488_v57 = vmax.bf16 %v2550_v0, %v36_v49  ;;  %v37_v58 = vld [vmem:[%s2546_s0 + $0xb0] sm:$0xff]  ;;  %v38_v60 = vld [vmem:[%s2546_s0 + $0xb8] sm:$0xff]  ;;  %v55_v61 = vld [vmem:[%s2546_s0 + $0x140] sm:$0xff] }
   0xb   :  { %597 = vmatprep.subr.bf16.mxu0 %v2550_v0  ;;  %1243 = vmatprep.subr.bf16.mxu1 %v2550_v0  ;;  %v56_v62 = vld [vmem:[%s2546_s0 + $0x148] sm:$0xff]  ;;  %v39_v2 = vld [vmem:[%s2546_s0 + $0xc0] sm:$0xff]  ;;  %v1282_v3 = vld [vmem:[%s2545_s1 + $0x70] sm:$0xff]   ;;  %v1525_v7 = vmax.bf16 %v2550_v0, %v38_v60 }
   0xc   :  { %751 = vmatprep.mubr.bf16.mxu1 %v1193_v50  ;;  %v40_v6 = vld [vmem:[%s2546_s0 + $0xc8] sm:$0xff]  ;;  %v1531_v11 = vmax.bf16 %v2550_v0, %v56_v62  ;;  %v57_v12 = vld [vmem:[%s2546_s0 + $0x150] sm:$0xff]  ;;  %v58_v13 = vld [vmem:[%s2546_s0 + $0x158] sm:$0xff]  ;;  %v1545_v15 = vmax.bf16 %v2550_v0, %v39_v2 }
   0xd   :  { %v41_v14 = vld [vmem:[%s2546_s0 + $0xd0] sm:$0xff]  ;;  %v42_v16 = vld [vmem:[%s2546_s0 + $0xd8] sm:$0xff]  ;;  %v1559_v27 = vmax.bf16 %v2550_v0, %v40_v6  ;;  %v1562_v29 = vmax.bf16 %v2550_v0, %v57_v12  ;;  %v1565_v30 = vmax.bf16 %v2550_v0, %v58_v13  ;;  %v60_v44 = vld [vmem:[%s2546_s0 + $0x168] sm:$0xff] }
   0xe   :  { %598 = vmatpush1.bf16.msra.mxu0 %v1276_v4  ;;  %1259 = vmatpush1.bf16.msra.mxu1 %v1276_v4  ;;  %v1568_v31 = vmax.bf16 %v2550_v0, %v41_v14  ;;  %v1283_v45 = vld [vmem:[%s2545_s1 + $0x68] sm:$0xff]   ;;  %v1580_v48 = vmax.bf16 %v2550_v0, %v42_v16  ;;  %v1586_v50 = vmax.bf16 %v2550_v0, %v60_v44  ;;  %v43_v12 = vld [vmem:[%s2546_s0 + $0xe0] sm:$0xff]  ;;  %v1286_v2 = vld [vmem:[%s2545_s1 + $0x50] sm:$0xff]  }
   0xf   :  { %599 = vmatprep.subr.bf16.mxu0 %v2550_v0  ;;  %1244 = vmatprep.subr.bf16.mxu1 %v2550_v0  ;;  %v44_v13 = vld [vmem:[%s2546_s0 + $0xe8] sm:$0xff]  ;;  %v1284_v14 = vld [vmem:[%s2545_s1 + $0x60] sm:$0xff]   ;;  %v1616_v16 = vmax.bf16 %v2550_v0, %v43_v12  ;;  %v62_v12 = vld [vmem:[%s2546_s0 + $0x178] sm:$0xff] }
  0x10   :  { %2562 = vst [vmem:[#allocation2_spill] sm:$0xff] %v1580_v48  ;;  %v1640_v44 = vmax.bf16 %v2550_v0, %v62_v12  ;;  %v45_v12 = vld [vmem:[%s2546_s0 + $0xf0] sm:$0xff]  ;;  %v50_v4 = vld [vmem:[%s2546_s0 + $0x118] sm:$0xff]  ;;  %v63_v59 = vld [vmem:[%s2546_s0 + $0x180] sm:$0xff] }
  0x11   :  { %2563 = vst [vmem:[#allocation3_spill] sm:$0xff] %v1616_v16  ;;  %v49_v17 = vld [vmem:[%s2546_s0 + $0x110] sm:$0xff]  ;;  %v1670_v1 = vmax.bf16 %v2550_v0, %v45_v12  ;;  %v66_v9 = vld [vmem:[%s2546_s0 + $0x198] sm:$0xff]  ;;  %v68_v6 = vld [vmem:[%s2546_s0 + $0x1a8] sm:$0xff] }
  0x12   :  { %600 = vmatpush1.bf16.msra.mxu0 %v1277_v5  ;;  %1260 = vmatpush1.bf16.msra.mxu1 %v1277_v5  ;;  %v1519_v5 = vmax.bf16 %v2550_v0, %v37_v58  ;;  %v1691_v12 = vmax.bf16 %v2550_v0, %v49_v17  ;;  %v1706_v17 = vmax.bf16 %v2550_v0, %v63_v59  ;;  %v65_v8 = vld [vmem:[%s2546_s0 + $0x190] sm:$0xff]  ;;  %v72_v34 = vld [vmem:[%s2546_s0 + $0x1c8] sm:$0xff]  ;;  %v74_v26 = vld [vmem:[%s2546_s0 + $0x1d8] sm:$0xff] }
  0x13   :  { %601 = vmatprep.subr.bf16.mxu0 %v2550_v0  ;;  %1245 = vmatprep.subr.bf16.mxu1 %v2550_v0  ;;  %2565 = vst [vmem:[#allocation5_spill] sm:$0xff] %v1670_v1  ;;  %v69_v36 = vld [vmem:[%s2546_s0 + $0x1b0] sm:$0xff]  ;;  %v1792_v33 = vmax.bf16 %v2550_v0, %v72_v34  ;;  %v75_v32 = vld [vmem:[%s2546_s0 + $0x1e0] sm:$0xff]  ;;  %v1828_v28 = vmax.bf16 %v2567_v25, %v74_v26 }
  0x14   :  { %v73_v60 = vld [vmem:[%s2546_s0 + $0x1d0] sm:$0xff] }
  0x15   :  { %v1825_v1 = vmax.bf16 %v2567_v25, %v73_v60 }
  0x16   :  { %602 = vmatpush1.bf16.msra.mxu0 %v1278_v10  ;;  %1261 = vmatpush1.bf16.msra.mxu1 %v1278_v10  ;;  %v1528_v10 = vmax.bf16 %v2550_v0, %v55_v61  ;;  %v71_v61 = vld [vmem:[%s2546_s0 + $0x1c0] sm:$0xff] }
  0x17   :  { %603 = vmatprep.subr.bf16.mxu0 %v2550_v0  ;;  %1246 = vmatprep.subr.bf16.mxu1 %v2550_v0 }
  0x1a   :  { %604 = vmatpush1.bf16.msra.mxu0 %v1279_v18  ;;  %1262 = vmatpush1.bf16.msra.mxu1 %v1279_v18  ;;  %v18_v18 = vld [vmem:[%s2546_s0 + $0x18] sm:$0xff] }
  0x1b   :  { %605 = vmatprep.subr.bf16.mxu0 %v2550_v0  ;;  %1247 = vmatprep.subr.bf16.mxu1 %v2550_v0  ;;  %v1685_v51 = vmax.bf16 %v2550_v0, %v18_v18  ;;  %v1287_v18 = vld [vmem:[%s2545_s1 + $0x48] sm:$0xff]  }
  0x1e   :  { %606 = vmatpush1.bf16.msra.mxu0 %v1280_v40  ;;  %1263 = vmatpush1.bf16.msra.mxu1 %v1280_v40  ;;  %v59_v40 = vld [vmem:[%s2546_s0 + $0x160] sm:$0xff] }
  0x1f   :  { %607 = vmatprep.subr.bf16.mxu0 %v2550_v0  ;;  %1248 = vmatprep.subr.bf16.mxu1 %v2550_v0  ;;  %v1583_v49 = vmax.bf16 %v2550_v0, %v59_v40  ;;  %v1619_v40 = vmax.bf16 %v2550_v0, %v44_v13  ;;  %v1285_v13 = vld [vmem:[%s2545_s1 + $0x58] sm:$0xff]  }
  0x21   :  { %2564 = vst [vmem:[#allocation4_spill] sm:$0xff] %v1619_v40  ;;  %v1831_v40 = vmax.bf16 %v2567_v25, %v75_v32 }
  0x22   :  { %608 = vmatpush2.bf16.msra.mxu0 %v1281_v55  ;;  %1264 = vmatpush2.bf16.msra.mxu1 %v1281_v55  ;;  %v46_v55 = vld [vmem:[%s2546_s0 + $0xf8] sm:$0xff] }
  0x23   :  { %609 = vmatprep.subr.bf16.mxu0 %v2550_v0  ;;  %1249 = vmatprep.subr.bf16.mxu1 %v2550_v0  ;;  %v1673_v63 = vmax.bf16 %v2550_v0, %v46_v55  ;;  %v19_v55 = vld [vmem:[%s2546_s0 + $0x20] sm:$0xff] }
  0x24   :  { %v1719_v58 = vmax.bf16 %v2550_v0, %v19_v55  ;;  %v67_v55 = vld [vmem:[%s2546_s0 + $0x1a0] sm:$0xff] }
  0x25   :  { %2566 = vst [vmem:[#allocation6_spill] sm:$0xff] %v1673_v63  ;;  %v1750_v59 = vmax.bf16 %v2550_v0, %v67_v55  ;;  %v1767_v55 = vmax.bf16 %v2550_v0, %v68_v6  ;;  %v76_v6 = vld [vmem:[%s2546_s0 + $0x1e8] sm:$0xff]  ;;  %v78_v63 = vld [vmem:[%s2546_s0 + $0x1f8] sm:$0xff] }
  0x26   :  { %610 = vmatpush2.bf16.msra.mxu0 %v1282_v3  ;;  %1265 = vmatpush2.bf16.msra.mxu1 %v1282_v3  ;;  %v1770_v3 = vmax.bf16 %v2550_v0, %v69_v36  ;;  %v1834_v16 = vmax.bf16 %v2567_v25, %v76_v6  ;;  %v1843_v60 = vmax.bf16 %v2567_v25, %v78_v63 }
  0x27   :  { %611 = vmatprep.subr.bf16.mxu0 %v2550_v0  ;;  %1250 = vmatprep.subr.bf16.mxu1 %v2550_v0 }
  0x2a   :  { %612 = vmatpush2.bf16.msra.mxu0 %v1283_v45  ;;  %1266 = vmatpush2.bf16.msra.mxu1 %v1283_v45  ;;  %v61_v45 = vld [vmem:[%s2546_s0 + $0x170] sm:$0xff] }
  0x2b   :  { %613 = vmatprep.subr.bf16.mxu0 %v2550_v0  ;;  %1251 = vmatprep.subr.bf16.mxu1 %v2550_v0  ;;  %v1637_v62 = vmax.bf16 %v2550_v0, %v61_v45  ;;  %v1694_v45 = vmax.bf16 %v2550_v0, %v50_v4 }
  0x2d   :  { %v1195_v46 = vcombine.high %v1691_v12, %v1694_v45 }
  0x2e   :  { %614 = vmatpush2.bf16.msra.mxu0 %v1284_v14  ;;  %1267 = vmatpush2.bf16.msra.mxu1 %v1284_v14  ;;  %v17_v14 = vld [vmem:[%s2546_s0 + $0x10] sm:$0xff] }
  0x2f   :  { %615 = vmatprep.subr.bf16.mxu0 %v2550_v0  ;;  %1252 = vmatprep.subr.bf16.mxu1 %v2550_v0  ;;  %v1682_v52 = vmax.bf16 %v2550_v0, %v17_v14  ;;  %v64_v14 = vld [vmem:[%s2546_s0 + $0x188] sm:$0xff] }
  0x30   :  { %v1709_v4 = vmax.bf16 %v2550_v0, %v64_v14  ;;  %v1192_v14 = vcombine.low %v1437_v39, %v1443_v41  ;;  %v1741_v39 = vmax.bf16 %v2550_v0, %v65_v8  ;;  %v1744_v41 = vmax.bf16 %v2550_v0, %v66_v9  ;;  %v20_v8 = vld [vmem:[%s2546_s0 + $0x28] sm:$0xff]  ;;  %v51_v9 = vld [vmem:[%s2546_s0 + $0x120] sm:$0xff] }
  0x31   :  { %v84_v34 = vmax.bf16 %v2567_v25, %v20_v8  ;;  %v115_v48 = vmax.bf16 %v2567_v25, %v51_v9  ;;  %v1194_v9 = vcombine.low %v1691_v12, %v1694_v45 }
  0x32   :  { %616 = vmatpush2.bf16.msra.mxu0 %v1285_v13  ;;  %1268 = vmatpush2.bf16.msra.mxu1 %v1285_v13  ;;  %v1288_v13 = vld [vmem:[%s2545_s1 + $0x40] sm:$0xff]  }
  0x33   :  { %617 = vmatprep.subr.bf16.mxu0 %v2550_v0  ;;  %1253 = vmatprep.subr.bf16.mxu1 %v2550_v0  ;;  %v1165_v6 = vcombine.high %v1719_v58, %v84_v34  ;;  %v1164_v8 = vcombine.low %v1719_v58, %v84_v34  ;;  %v2571_v58 = vcombine.low %v1528_v10, %v1531_v11 }
  0x34   :  { %v2573_v34 = vcombine.high %v1562_v29, %v1565_v30 }
  0x36   :  { %618 = vmatpush2.bf16.msra.mxu0 %v1286_v2  ;;  %1269 = vmatpush2.bf16.msra.mxu1 %v1286_v2  ;;  %v1163_v2 = vcombine.high %v1682_v52, %v1685_v51 }
  0x37   :  { %619 = vmatprep.subr.bf16.mxu0 %v2550_v0  ;;  %1254 = vmatprep.subr.bf16.mxu1 %v2550_v0 }
  0x3a   :  { %620 = vmatpush2.bf16.msra.mxu0 %v1287_v18  ;;  %1270 = vmatpush2.bf16.msra.mxu1 %v1287_v18  ;;  %v70_v18 = vld [vmem:[%s2546_s0 + $0x1b8] sm:$0xff] }
  0x3b   :  { %621 = vmatprep.subr.bf16.mxu0 %v2550_v0  ;;  %1255 = vmatprep.subr.bf16.mxu1 %v2550_v0  ;;  %v1773_v35 = vmax.bf16 %v2550_v0, %v70_v18  ;;  %v1789_v18 = vmax.bf16 %v2550_v0, %v71_v61  ;;  %v52_v61 = vld [vmem:[%s2546_s0 + $0x128] sm:$0xff]  ;;  %v77_v0 = vld [vmem:[%s2546_s0 + $0x1f0] sm:$0xff] }
  0x3c   :  { %v116_v36 = vmax.bf16 %v2567_v25, %v52_v61  ;;  %v22_v61 = vld [vmem:[%s2546_s0 + $0x38] sm:$0xff] }
  0x3d   :  { %v86_v45 = vmax.bf16 %v2567_v25, %v22_v61 }
  0x3e   :  { %622 = vmatpush2.bf16.msra.mxu0 %v1288_v13  ;;  %1271 = vmatpush2.bf16.msra.mxu1 %v1288_v13  ;;  %v1837_v13 = vmax.bf16 %v2567_v25, %v77_v0  ;;  %v1196_v0 = vcombine.low %v115_v48, %v116_v36 }
  0x41   :  { %624 = vmatmul.mubr.bf16.vlgmr.msra.gmra.mxu0 %v1160_v47  ;;  %752 = vmatmul.mubr.bf16.vlgmr.msra.gmra.mxu1 %v1192_v14  ;;  %v1162_v14 = vcombine.low %v1682_v52, %v1685_v51  ;;  %v53_v47 = vld [vmem:[%s2546_s0 + $0x130] sm:$0xff]  ;;  %v54_v51 = vld [vmem:[%s2546_s0 + $0x138] sm:$0xff] }
  0x42   :  { %631 = vmatprep.mubr.bf16.mxu0 %v1163_v2  ;;  %759 = vmatprep.mubr.bf16.mxu1 %v1195_v46  ;;  %v21_v46 = vld [vmem:[%s2546_s0 + $0x30] sm:$0xff]  ;;  %v1197_v2 = vcombine.high %v115_v48, %v116_v36  ;;  %v117_v12 = vmax.bf16 %v2567_v25, %v53_v47  ;;  %v118_v63 = vmax.bf16 %v2567_v25, %v54_v51  ;;  %v2616_v47 = vld [vmem:[#allocation6_spill] sm:$0xff] }
  0x43   :  { %v85_v52 = vmax.bf16 %v2567_v25, %v21_v46  ;;  %v2569_v25 = vcombine.high %v1528_v10, %v1531_v11  ;;  %v2570_v48 = vcombine.low %v1381_v19, %v1384_v20  ;;  %v2572_v36 = vcombine.high %v1387_v21, %v1390_v22 }
  0x44   :  { %v1199_v32 = vcombine.high %v117_v12, %v118_v63  ;;  %v1198_v46 = vcombine.low %v117_v12, %v118_v63  ;;  %v2577_v10 = vcombine.high %v1583_v49, %v1586_v50  ;;  %v2578_v11 = vcombine.low %v1393_v23, %v1396_v24  ;;  %v2615_v63 = vld [vmem:[#allocation5_spill] sm:$0xff] }
  0x45   :  { %v1167_v26 = vcombine.high %v85_v52, %v86_v45 }
  0x49   :  { %632 = vmatmul.mubr.bf16.gmra.mxu0 %v1162_v14  ;;  %760 = vmatmul.mubr.bf16.gmra.mxu1 %v1194_v9  ;;  %v1166_v14 = vcombine.low %v85_v52, %v86_v45  ;;  %v2568_v9 = vcombine.high %v1381_v19, %v1384_v20  ;;  %v2575_v19 = vcombine.low %v1562_v29, %v1565_v30 }
  0x4a   :  { %639 = vmatprep.mubr.bf16.mxu0 %v1165_v6  ;;  %767 = vmatprep.mubr.bf16.mxu1 %v1197_v2  ;;  %v2576_v20 = vcombine.high %v1393_v23, %v1396_v24  ;;  %v2581_v29 = vcombine.high %v1637_v62, %v1640_v44  ;;  %v2582_v30 = vcombine.low %v1431_v37, %v1434_v38 }
  0x4b   :  { %v2583_v23 = vcombine.low %v1637_v62, %v1640_v44  ;;  %v2584_v24 = vcombine.high %v1446_v42, %v1449_v43  ;;  %v2589_v62 = vcombine.high %v1741_v39, %v1744_v41  ;;  %v2590_v44 = vcombine.low %v1476_v53, %v1479_v54 }
  0x4c   :  { %v2619_v6 = vcombine.low %v2615_v63, %v2616_v47  ;;  %v2620_v2 = vcombine.low %v1837_v13, %v1843_v60 }
  0x51   :  { %640 = vmatmul.mubr.bf16.gmra.mxu0 %v1164_v8  ;;  %768 = vmatmul.mubr.bf16.gmra.mxu1 %v1196_v0  ;;  %v2610_v0 = vld [vmem:[#allocation4_spill] sm:$0xff] }
  0x52   :  { %647 = vmatprep.mubr.bf16.mxu0 %v1167_v26  ;;  %775 = vmatprep.mubr.bf16.mxu1 %v1199_v32  ;;  %v2574_v32 = vcombine.low %v1387_v21, %v1390_v22  ;;  %v2579_v21 = vcombine.low %v1583_v49, %v1586_v50  ;;  %v2580_v22 = vcombine.high %v1431_v37, %v1434_v38 }
  0x53   :  { %v2585_v49 = vcombine.high %v1706_v17, %v1709_v4  ;;  %v2586_v50 = vcombine.low %v1446_v42, %v1449_v43  ;;  %v2587_v37 = vcombine.low %v1706_v17, %v1709_v4  ;;  %v2588_v38 = vcombine.high %v1476_v53, %v1479_v54 }
  0x54   :  { %v2591_v42 = vcombine.low %v1741_v39, %v1744_v41  ;;  %v2592_v43 = vcombine.high %v1485_v56, %v1488_v57  ;;  %v2593_v17 = vcombine.high %v1750_v59, %v1767_v55  ;;  %v2594_v4 = vcombine.low %v1485_v56, %v1488_v57 }
  0x55   :  { %v2595_v53 = vcombine.low %v1750_v59, %v1767_v55  ;;  %v2596_v54 = vcombine.high %v1519_v5, %v1525_v7  ;;  %v2597_v39 = vcombine.high %v1770_v3, %v1773_v35  ;;  %v2598_v41 = vcombine.low %v1519_v5, %v1525_v7  ;;  %v2604_v7 = vld [vmem:[#allocation2_spill] sm:$0xff] }
  0x56   :  { %v2599_v56 = vcombine.low %v1770_v3, %v1773_v35  ;;  %v2600_v57 = vcombine.high %v1545_v15, %v1559_v27  ;;  %v2601_v59 = vcombine.high %v1789_v18, %v1792_v33  ;;  %v2602_v55 = vcombine.low %v1545_v15, %v1559_v27  ;;  %v2609_v27 = vld [vmem:[#allocation3_spill] sm:$0xff] }
  0x57   :  { %v2603_v5 = vcombine.low %v1789_v18, %v1792_v33  ;;  %v2605_v35 = vcombine.high %v1568_v31, %v2604_v7  ;;  %v2606_v3 = vcombine.high %v1825_v1, %v1828_v28  ;;  %v2607_v26 = vcombine.low %v1568_v31, %v2604_v7 }
  0x58   :  { %v2608_v15 = vcombine.low %v1825_v1, %v1828_v28  ;;  %v2611_v33 = vcombine.high %v2609_v27, %v2610_v0  ;;  %v2612_v18 = vcombine.high %v1831_v40, %v1834_v16  ;;  %v2613_v8 = vcombine.low %v2609_v27, %v2610_v0 }
  0x59   :  { %648 = vmatmul.mubr.bf16.gmra.mxu0 %v1166_v14  ;;  %776 = vmatmul.mubr.bf16.gmra.mxu1 %v1198_v46  ;;  %v2614_v31 = vcombine.low %v1831_v40, %v1834_v16  ;;  %v2617_v28 = vcombine.high %v2615_v63, %v2616_v47  ;;  %v2618_v1 = vcombine.high %v1837_v13, %v1843_v60 }
  0x5a   :  { %655 = vmatprep.mubr.bf16.mxu0 %v2568_v9  ;;  %783 = vmatprep.mubr.bf16.mxu1 %v2569_v25 }
  0x61   :  { %656 = vmatmul.mubr.bf16.gmra.mxu0 %v2570_v48  ;;  %784 = vmatmul.mubr.bf16.gmra.mxu1 %v2571_v58 }
  0x62   :  { %663 = vmatprep.mubr.bf16.mxu0 %v2572_v36  ;;  %791 = vmatprep.mubr.bf16.mxu1 %v2573_v34 }
  0x69   :  { %664 = vmatmul.mubr.bf16.gmra.mxu0 %v2574_v32  ;;  %792 = vmatmul.mubr.bf16.gmra.mxu1 %v2575_v19 }
  0x6a   :  { %671 = vmatprep.mubr.bf16.mxu0 %v2576_v20  ;;  %799 = vmatprep.mubr.bf16.mxu1 %v2577_v10 }
  0x71   :  { %672 = vmatmul.mubr.bf16.gmra.mxu0 %v2578_v11  ;;  %800 = vmatmul.mubr.bf16.gmra.mxu1 %v2579_v21 }
  0x72   :  { %679 = vmatprep.mubr.bf16.mxu0 %v2580_v22  ;;  %807 = vmatprep.mubr.bf16.mxu1 %v2581_v29 }
  0x79   :  { %680 = vmatmul.mubr.bf16.gmra.mxu0 %v2582_v30  ;;  %808 = vmatmul.mubr.bf16.gmra.mxu1 %v2583_v23 }
  0x7a   :  { %687 = vmatprep.mubr.bf16.mxu0 %v2584_v24  ;;  %815 = vmatprep.mubr.bf16.mxu1 %v2585_v49 }
  0x81   :  { %688 = vmatmul.mubr.bf16.gmra.mxu0 %v2586_v50  ;;  %816 = vmatmul.mubr.bf16.gmra.mxu1 %v2587_v37 }
  0x82   :  { %695 = vmatprep.mubr.bf16.mxu0 %v2588_v38  ;;  %823 = vmatprep.mubr.bf16.mxu1 %v2589_v62 }
  0x89   :  { %696 = vmatmul.mubr.bf16.gmra.mxu0 %v2590_v44  ;;  %824 = vmatmul.mubr.bf16.gmra.mxu1 %v2591_v42 }
  0x8a   :  { %703 = vmatprep.mubr.bf16.mxu0 %v2592_v43  ;;  %831 = vmatprep.mubr.bf16.mxu1 %v2593_v17 }
  0x91   :  { %704 = vmatmul.mubr.bf16.gmra.mxu0 %v2594_v4  ;;  %832 = vmatmul.mubr.bf16.gmra.mxu1 %v2595_v53 }
  0x92   :  { %711 = vmatprep.mubr.bf16.mxu0 %v2596_v54  ;;  %839 = vmatprep.mubr.bf16.mxu1 %v2597_v39 }
  0x99   :  { %712 = vmatmul.mubr.bf16.gmra.mxu0 %v2598_v41  ;;  %840 = vmatmul.mubr.bf16.gmra.mxu1 %v2599_v56 }
  0x9a   :  { %719 = vmatprep.mubr.bf16.mxu0 %v2600_v57  ;;  %847 = vmatprep.mubr.bf16.mxu1 %v2601_v59 }
  0xa1   :  { %720 = vmatmul.mubr.bf16.gmra.mxu0 %v2602_v55  ;;  %848 = vmatmul.mubr.bf16.gmra.mxu1 %v2603_v5 }
  0xa2   :  { %727 = vmatprep.mubr.bf16.mxu0 %v2605_v35  ;;  %855 = vmatprep.mubr.bf16.mxu1 %v2606_v3 }
  0xa9   :  { %728 = vmatmul.mubr.bf16.gmra.mxu0 %v2607_v26  ;;  %856 = vmatmul.mubr.bf16.gmra.mxu1 %v2608_v15 }
  0xaa   :  { %735 = vmatprep.mubr.bf16.mxu0 %v2611_v33  ;;  %863 = vmatprep.mubr.bf16.mxu1 %v2612_v18 }
  0xb1   :  { %736 = vmatmul.mubr.bf16.gmra.mxu0 %v2613_v8  ;;  %864 = vmatmul.mubr.bf16.gmra.mxu1 %v2614_v31 }
  0xb2   :  { %743 = vmatprep.mubr.bf16.mxu0 %v2617_v28  ;;  %871 = vmatprep.mubr.bf16.mxu1 %v2618_v1 }
  0xb9   :  { %744 = vmatmul.mubr.bf16.gmra.mxu0 %v2619_v6  ;;  %872 = vmatmul.mubr.bf16.gmra.mxu1 %v2620_v2 }
 0x101   :  { %v2023_v61 = vpop.f32.mrf.mxu0  ;;  %v2025_v16 = vpop.f32.mrf.mxu1 }
 0x102   :  { %880 = vst [vmem:[%s2547_s2] sm:$0xff] %v2023_v61  ;;  %912 = vst [vmem:[%s2547_s2 + $0x100] sm:$0xff] %v2025_v16 }
 0x103   :  { %v627_v40 = vpop.f32.mrf.mxu0  ;;  %v755_v51 = vpop.f32.mrf.mxu1 }
 0x105   :  { %v2035_v52 = vpop.f32.mrf.mxu0  ;;  %v2037_v13 = vpop.f32.mrf.mxu1 }
 0x106   :  { %881 = vst [vmem:[%s2547_s2 + $0x8] sm:$0xff] %v2035_v52  ;;  %913 = vst [vmem:[%s2547_s2 + $0x108] sm:$0xff] %v2037_v13  ;;  %v1014_v40 = vmul.f32 %v2035_v52, %v2035_v52 }
 0x107   :  { %v630_v60 = vpop.f32.mrf.mxu0  ;;  %v758_v45 = vpop.f32.mrf.mxu1 }
 0x108   :  { %v1013_v45 = vmul.f32 %v2023_v61, %v2023_v61 }
 0x109   :  { %v2047_v12 = vpop.f32.mrf.mxu0  ;;  %v2049_v14 = vpop.f32.mrf.mxu1 }
 0x10a   :  { %882 = vst [vmem:[%s2547_s2 + $0x10] sm:$0xff] %v2047_v12  ;;  %914 = vst [vmem:[%s2547_s2 + $0x110] sm:$0xff] %v2049_v14 }
 0x10b   :  { %v635_v46 = vpop.f32.mrf.mxu0  ;;  %v763_v9 = vpop.f32.mrf.mxu1 }
 0x10c   :  { %v944_v46 = vadd.f32 %v2035_v52, %v2023_v61  ;;  %v1015_v9 = vmul.f32 %v2047_v12, %v2047_v12 }
 0x10d   :  { %v2059_v25 = vpop.f32.mrf.mxu0  ;;  %v2061_v48 = vpop.f32.mrf.mxu1 }
 0x10e   :  { %883 = vst [vmem:[%s2547_s2 + $0x18] sm:$0xff] %v2059_v25  ;;  %915 = vst [vmem:[%s2547_s2 + $0x118] sm:$0xff] %v2061_v48  ;;  %v1016_v61 = vmul.f32 %v2059_v25, %v2059_v25 }
 0x10f   :  { %v638_v58 = vpop.f32.mrf.mxu0  ;;  %v766_v36 = vpop.f32.mrf.mxu1 }
 0x111   :  { %v2071_v34 = vpop.f32.mrf.mxu0  ;;  %v2073_v32 = vpop.f32.mrf.mxu1 }
 0x112   :  { %884 = vst [vmem:[%s2547_s2 + $0x20] sm:$0xff] %v2071_v34  ;;  %916 = vst [vmem:[%s2547_s2 + $0x120] sm:$0xff] %v2073_v32 }
 0x113   :  { %v643_v19 = vpop.f32.mrf.mxu0  ;;  %v771_v20 = vpop.f32.mrf.mxu1 }
 0x114   :  { %v1077_v19 = vadd.f32 %v1014_v40, %v1013_v45  ;;  %v945_v20 = vadd.f32 %v944_v46, %v2047_v12 }
 0x115   :  { %v2083_v10 = vpop.f32.mrf.mxu0  ;;  %v2085_v11 = vpop.f32.mrf.mxu1 }
 0x116   :  { %885 = vst [vmem:[%s2547_s2 + $0x28] sm:$0xff] %v2083_v10  ;;  %917 = vst [vmem:[%s2547_s2 + $0x128] sm:$0xff] %v2085_v11 }
 0x117   :  { %v646_v21 = vpop.f32.mrf.mxu0  ;;  %v774_v22 = vpop.f32.mrf.mxu1 }
 0x118   :  { %v1078_v22 = vadd.f32 %v1077_v19, %v1015_v9 }
 0x119   :  { %v2095_v29 = vpop.f32.mrf.mxu0  ;;  %v2097_v30 = vpop.f32.mrf.mxu1 }
 0x11a   :  { %886 = vst [vmem:[%s2547_s2 + $0x30] sm:$0xff] %v2095_v29  ;;  %918 = vst [vmem:[%s2547_s2 + $0x130] sm:$0xff] %v2097_v30 }
 0x11b   :  { %v651_v23 = vpop.f32.mrf.mxu0  ;;  %v779_v24 = vpop.f32.mrf.mxu1 }
 0x11c   :  { %v946_v23 = vadd.f32 %v945_v20, %v2059_v25  ;;  %v1017_v24 = vmul.f32 %v2071_v34, %v2071_v34  ;;  %v1018_v25 = vmul.f32 %v2083_v10, %v2083_v10 }
 0x11d   :  { %v2107_v49 = vpop.f32.mrf.mxu0  ;;  %v2109_v50 = vpop.f32.mrf.mxu1 }
 0x11e   :  { %887 = vst [vmem:[%s2547_s2 + $0x38] sm:$0xff] %v2107_v49  ;;  %919 = vst [vmem:[%s2547_s2 + $0x138] sm:$0xff] %v2109_v50 }
 0x11f   :  { %v654_v37 = vpop.f32.mrf.mxu0  ;;  %v782_v38 = vpop.f32.mrf.mxu1 }
 0x120   :  { %v1079_v38 = vadd.f32 %v1078_v22, %v1016_v61 }
 0x121   :  { %v2119_v62 = vpop.f32.mrf.mxu0  ;;  %v2121_v44 = vpop.f32.mrf.mxu1 }
 0x122   :  { %888 = vst [vmem:[%s2547_s2 + $0x40] sm:$0xff] %v2119_v62  ;;  %920 = vst [vmem:[%s2547_s2 + $0x140] sm:$0xff] %v2121_v44 }
 0x123   :  { %v659_v42 = vpop.f32.mrf.mxu0  ;;  %v787_v43 = vpop.f32.mrf.mxu1 }
 0x124   :  { %v947_v42 = vadd.f32 %v946_v23, %v2071_v34 }
 0x125   :  { %v2131_v17 = vpop.f32.mrf.mxu0  ;;  %v2133_v4 = vpop.f32.mrf.mxu1 }
 0x126   :  { %889 = vst [vmem:[%s2547_s2 + $0x48] sm:$0xff] %v2131_v17  ;;  %921 = vst [vmem:[%s2547_s2 + $0x148] sm:$0xff] %v2133_v4 }
 0x127   :  { %v662_v53 = vpop.f32.mrf.mxu0  ;;  %v790_v54 = vpop.f32.mrf.mxu1 }
 0x128   :  { %v1080_v54 = vadd.f32 %v1079_v38, %v1017_v24 }
 0x129   :  { %v2143_v39 = vpop.f32.mrf.mxu0  ;;  %v2145_v41 = vpop.f32.mrf.mxu1 }
 0x12a   :  { %890 = vst [vmem:[%s2547_s2 + $0x50] sm:$0xff] %v2143_v39  ;;  %922 = vst [vmem:[%s2547_s2 + $0x150] sm:$0xff] %v2145_v41 }
 0x12b   :  { %v667_v56 = vpop.f32.mrf.mxu0  ;;  %v795_v57 = vpop.f32.mrf.mxu1 }
 0x12c   :  { %v948_v56 = vadd.f32 %v947_v42, %v2083_v10  ;;  %v1019_v57 = vmul.f32 %v2095_v29, %v2095_v29  ;;  %v1020_v10 = vmul.f32 %v2107_v49, %v2107_v49 }
 0x12d   :  { %v2155_v59 = vpop.f32.mrf.mxu0  ;;  %v2157_v55 = vpop.f32.mrf.mxu1 }
 0x12e   :  { %891 = vst [vmem:[%s2547_s2 + $0x58] sm:$0xff] %v2155_v59  ;;  %923 = vst [vmem:[%s2547_s2 + $0x158] sm:$0xff] %v2157_v55 }
 0x12f   :  { %v670_v5 = vpop.f32.mrf.mxu0  ;;  %v798_v7 = vpop.f32.mrf.mxu1 }
 0x130   :  { %v1081_v7 = vadd.f32 %v1080_v54, %v1018_v25 }
 0x131   :  { %v2167_v35 = vpop.f32.mrf.mxu0  ;;  %v2169_v3 = vpop.f32.mrf.mxu1 }
 0x132   :  { %892 = vst [vmem:[%s2547_s2 + $0x60] sm:$0xff] %v2167_v35  ;;  %924 = vst [vmem:[%s2547_s2 + $0x160] sm:$0xff] %v2169_v3 }
 0x133   :  { %v675_v26 = vpop.f32.mrf.mxu0  ;;  %v803_v15 = vpop.f32.mrf.mxu1 }
 0x134   :  { %v949_v26 = vadd.f32 %v948_v56, %v2095_v29 }
 0x135   :  { %v2179_v27 = vpop.f32.mrf.mxu0  ;;  %v2181_v0 = vpop.f32.mrf.mxu1 }
 0x136   :  { %893 = vst [vmem:[%s2547_s2 + $0x68] sm:$0xff] %v2179_v27  ;;  %925 = vst [vmem:[%s2547_s2 + $0x168] sm:$0xff] %v2181_v0 }
 0x137   :  { %v678_v33 = vpop.f32.mrf.mxu0  ;;  %v806_v18 = vpop.f32.mrf.mxu1 }
 0x138   :  { %v1082_v18 = vadd.f32 %v1081_v7, %v1019_v57 }
 0x139   :  { %v2191_v8 = vpop.f32.mrf.mxu0  ;;  %v2193_v31 = vpop.f32.mrf.mxu1 }
 0x13a   :  { %894 = vst [vmem:[%s2547_s2 + $0x70] sm:$0xff] %v2191_v8  ;;  %926 = vst [vmem:[%s2547_s2 + $0x170] sm:$0xff] %v2193_v31 }
 0x13b   :  { %v683_v63 = vpop.f32.mrf.mxu0  ;;  %v811_v47 = vpop.f32.mrf.mxu1 }
 0x13c   :  { %v950_v63 = vadd.f32 %v949_v26, %v2107_v49  ;;  %v1021_v47 = vmul.f32 %v2119_v62, %v2119_v62  ;;  %v1022_v49 = vmul.f32 %v2131_v17, %v2131_v17 }
 0x13d   :  { %v2203_v28 = vpop.f32.mrf.mxu0  ;;  %v2205_v1 = vpop.f32.mrf.mxu1 }
 0x13e   :  { %895 = vst [vmem:[%s2547_s2 + $0x78] sm:$0xff] %v2203_v28  ;;  %927 = vst [vmem:[%s2547_s2 + $0x178] sm:$0xff] %v2205_v1  ;;  %v951_v40 = vadd.f32 %v950_v63, %v2119_v62 }
 0x13f   :  { %v686_v6 = vpop.f32.mrf.mxu0  ;;  %v814_v2 = vpop.f32.mrf.mxu1 }
 0x140   :  { %v1083_v2 = vadd.f32 %v1082_v18, %v1020_v10 }
 0x141   :  { %v2217_v51 = vpop.f32.mrf.mxu0  ;;  %v2219_v60 = vpop.f32.mrf.mxu1 }
 0x142   :  { %896 = vst [vmem:[%s2547_s2 + $0x80] sm:$0xff] %v2217_v51  ;;  %928 = vst [vmem:[%s2547_s2 + $0x180] sm:$0xff] %v2219_v60  ;;  %v1084_v9 = vadd.f32 %v1083_v2, %v1021_v47 }
 0x143   :  { %v691_v58 = vpop.f32.mrf.mxu0  ;;  %v819_v36 = vpop.f32.mrf.mxu1 }
 0x144   :  { %v952_v58 = vadd.f32 %v951_v40, %v2131_v17  ;;  %v1023_v36 = vmul.f32 %v2143_v39, %v2143_v39  ;;  %v1085_v20 = vadd.f32 %v1084_v9, %v1022_v49  ;;  %v1024_v17 = vmul.f32 %v2155_v59, %v2155_v59 }
 0x145   :  { %v2238_v52 = vpop.f32.mrf.mxu0  ;;  %v2240_v21 = vpop.f32.mrf.mxu1 }
 0x146   :  { %897 = vst [vmem:[%s2547_s2 + $0x88] sm:$0xff] %v2238_v52  ;;  %929 = vst [vmem:[%s2547_s2 + $0x188] sm:$0xff] %v2240_v21  ;;  %v953_v61 = vadd.f32 %v952_v58, %v2143_v39  ;;  %v1086_v24 = vadd.f32 %v1085_v20, %v1023_v36 }
 0x147   :  { %v694_v12 = vpop.f32.mrf.mxu0  ;;  %v822_v37 = vpop.f32.mrf.mxu1 }
 0x148   :  { %v954_v12 = vadd.f32 %v953_v61, %v2155_v59  ;;  %v1025_v37 = vmul.f32 %v2167_v35, %v2167_v35  ;;  %v1087_v42 = vadd.f32 %v1086_v24, %v1024_v17  ;;  %v1026_v59 = vmul.f32 %v2179_v27, %v2179_v27 }
 0x149   :  { %v2256_v43 = vpop.f32.mrf.mxu0  ;;  %v2258_v53 = vpop.f32.mrf.mxu1 }
 0x14a   :  { %898 = vst [vmem:[%s2547_s2 + $0x90] sm:$0xff] %v2256_v43  ;;  %930 = vst [vmem:[%s2547_s2 + $0x190] sm:$0xff] %v2258_v53  ;;  %v955_v25 = vadd.f32 %v954_v12, %v2167_v35  ;;  %v1088_v57 = vadd.f32 %v1087_v42, %v1025_v37 }
 0x14b   :  { %v699_v34 = vpop.f32.mrf.mxu0  ;;  %v827_v5 = vpop.f32.mrf.mxu1 }
 0x14c   :  { %v956_v34 = vadd.f32 %v955_v25, %v2179_v27  ;;  %v1027_v5 = vmul.f32 %v2191_v8, %v2191_v8  ;;  %v1089_v26 = vadd.f32 %v1088_v57, %v1026_v59  ;;  %v1028_v27 = vmul.f32 %v2203_v28, %v2203_v28 }
 0x14d   :  { %v2274_v15 = vpop.f32.mrf.mxu0  ;;  %v2276_v33 = vpop.f32.mrf.mxu1 }
 0x14e   :  { %899 = vst [vmem:[%s2547_s2 + $0x98] sm:$0xff] %v2274_v15  ;;  %931 = vst [vmem:[%s2547_s2 + $0x198] sm:$0xff] %v2276_v33  ;;  %v957_v10 = vadd.f32 %v956_v34, %v2191_v8  ;;  %v1090_v47 = vadd.f32 %v1089_v26, %v1027_v5 }
 0x14f   :  { %v702_v29 = vpop.f32.mrf.mxu0  ;;  %v830_v6 = vpop.f32.mrf.mxu1 }
 0x150   :  { %v958_v29 = vadd.f32 %v957_v10, %v2203_v28  ;;  %v1029_v6 = vmul.f32 %v2217_v51, %v2217_v51  ;;  %v1091_v40 = vadd.f32 %v1090_v47, %v1028_v27  ;;  %v1030_v28 = vmul.f32 %v2238_v52, %v2238_v52 }
 0x151   :  { %v2292_v45 = vpop.f32.mrf.mxu0  ;;  %v2294_v46 = vpop.f32.mrf.mxu1 }
 0x152   :  { %900 = vst [vmem:[%s2547_s2 + $0xa0] sm:$0xff] %v2292_v45  ;;  %932 = vst [vmem:[%s2547_s2 + $0x1a0] sm:$0xff] %v2294_v46  ;;  %v959_v49 = vadd.f32 %v958_v29, %v2217_v51  ;;  %v1092_v36 = vadd.f32 %v1091_v40, %v1029_v6 }
 0x153   :  { %v707_v62 = vpop.f32.mrf.mxu0  ;;  %v835_v19 = vpop.f32.mrf.mxu1 }
 0x154   :  { %v960_v62 = vadd.f32 %v959_v49, %v2238_v52  ;;  %v1031_v19 = vmul.f32 %v2256_v43, %v2256_v43  ;;  %v1093_v61 = vadd.f32 %v1092_v36, %v1030_v28  ;;  %v1032_v52 = vmul.f32 %v2274_v15, %v2274_v15 }
 0x155   :  { %v2310_v22 = vpop.f32.mrf.mxu0  ;;  %v2312_v23 = vpop.f32.mrf.mxu1 }
 0x156   :  { %901 = vst [vmem:[%s2547_s2 + $0xa8] sm:$0xff] %v2310_v22  ;;  %933 = vst [vmem:[%s2547_s2 + $0x1a8] sm:$0xff] %v2312_v23  ;;  %v961_v17 = vadd.f32 %v960_v62, %v2256_v43  ;;  %v1094_v37 = vadd.f32 %v1093_v61, %v1031_v19 }
 0x157   :  { %v710_v39 = vpop.f32.mrf.mxu0  ;;  %v838_v38 = vpop.f32.mrf.mxu1 }
 0x158   :  { %v962_v39 = vadd.f32 %v961_v17, %v2274_v15  ;;  %v1033_v38 = vmul.f32 %v2292_v45, %v2292_v45  ;;  %v1095_v25 = vadd.f32 %v1094_v37, %v1032_v52  ;;  %v1034_v15 = vmul.f32 %v2310_v22, %v2310_v22 }
 0x159   :  { %v713_v54 = vpop.f32.mrf.mxu0  ;;  %v2328_v56 = vpop.f32.mrf.mxu1 }
 0x15a   :  { %902 = vst [vmem:[%s2547_s2 + $0xb0] sm:$0xff] %v713_v54  ;;  %934 = vst [vmem:[%s2547_s2 + $0x1b0] sm:$0xff] %v2328_v56  ;;  %v963_v59 = vadd.f32 %v962_v39, %v2292_v45  ;;  %v1096_v5 = vadd.f32 %v1095_v25, %v1033_v38 }
 0x15b   :  { %v715_v35 = vpop.f32.mrf.mxu0  ;;  %v843_v7 = vpop.f32.mrf.mxu1 }
 0x15c   :  { %v964_v35 = vadd.f32 %v963_v59, %v2310_v22  ;;  %v1035_v7 = vmul.f32 %v713_v54, %v713_v54  ;;  %v1097_v10 = vadd.f32 %v1096_v5, %v1034_v15 }
 0x15d   :  { %v716_v18 = vpop.f32.mrf.mxu0  ;;  %v2343_v63 = vpop.f32.mrf.mxu1 }
 0x15e   :  { %903 = vst [vmem:[%s2547_s2 + $0xb8] sm:$0xff] %v716_v18  ;;  %935 = vst [vmem:[%s2547_s2 + $0x1b8] sm:$0xff] %v2343_v63  ;;  %v965_v27 = vadd.f32 %v964_v35, %v713_v54  ;;  %v1036_v47 = vmul.f32 %v716_v18, %v716_v18 }
 0x15f   :  { %v718_v8 = vpop.f32.mrf.mxu0  ;;  %v846_v2 = vpop.f32.mrf.mxu1 }
 0x160   :  { %v1098_v8 = vadd.f32 %v1097_v10, %v1035_v7  ;;  %v966_v22 = vadd.f32 %v965_v27, %v716_v18 }
 0x161   :  { %v721_v9 = vpop.f32.mrf.mxu0  ;;  %v2358_v58 = vpop.f32.mrf.mxu1 }
 0x162   :  { %904 = vst [vmem:[%s2547_s2 + $0xc0] sm:$0xff] %v721_v9  ;;  %936 = vst [vmem:[%s2547_s2 + $0x1c0] sm:$0xff] %v2358_v58  ;;  %v1037_v2 = vmul.f32 %v721_v9, %v721_v9  ;;  %v1099_v28 = vadd.f32 %v1098_v8, %v1036_v47  ;;  %v967_v54 = vadd.f32 %v966_v22, %v721_v9 }
 0x163   :  { %v723_v51 = vpop.f32.mrf.mxu0  ;;  %v851_v20 = vpop.f32.mrf.mxu1 }
 0x164   :  { %v1100_v51 = vadd.f32 %v1099_v28, %v1037_v2 }
 0x165   :  { %v724_v24 = vpop.f32.mrf.mxu0  ;;  %v2373_v12 = vpop.f32.mrf.mxu1 }
 0x166   :  { %905 = vst [vmem:[%s2547_s2 + $0xc8] sm:$0xff] %v724_v24  ;;  %937 = vst [vmem:[%s2547_s2 + $0x1c8] sm:$0xff] %v2373_v12  ;;  %v1038_v36 = vmul.f32 %v724_v24, %v724_v24  ;;  %v968_v18 = vadd.f32 %v967_v54, %v724_v24 }
 0x167   :  { %v726_v43 = vpop.f32.mrf.mxu0  ;;  %v854_v42 = vpop.f32.mrf.mxu1 }
 0x168   :  { %v1101_v52 = vadd.f32 %v1100_v51, %v1038_v36 }
 0x169   :  { %v729_v57 = vpop.f32.mrf.mxu0  ;;  %v2388_v34 = vpop.f32.mrf.mxu1 }
 0x16a   :  { %906 = vst [vmem:[%s2547_s2 + $0xd0] sm:$0xff] %v729_v57  ;;  %938 = vst [vmem:[%s2547_s2 + $0x1d0] sm:$0xff] %v2388_v34  ;;  %v1039_v20 = vmul.f32 %v729_v57, %v729_v57  ;;  %v969_v9 = vadd.f32 %v968_v18, %v729_v57 }
 0x16b   :  { %v731_v45 = vpop.f32.mrf.mxu0  ;;  %v859_v26 = vpop.f32.mrf.mxu1 }
 0x16c   :  { %v1102_v43 = vadd.f32 %v1101_v52, %v1039_v20  ;;  %v1046_v20 = vmul.f32 %v2037_v13, %v2037_v13  ;;  %v1047_v52 = vmul.f32 %v2049_v14, %v2049_v14 }
 0x16d   :  { %v732_v29 = vpop.f32.mrf.mxu0  ;;  %v2398_v6 = vpop.f32.mrf.mxu1 }
 0x16e   :  { %907 = vst [vmem:[%s2547_s2 + $0xd8] sm:$0xff] %v732_v29  ;;  %939 = vst [vmem:[%s2547_s2 + $0x1d8] sm:$0xff] %v2398_v6  ;;  %v1040_v37 = vmul.f32 %v732_v29, %v732_v29  ;;  %v970_v24 = vadd.f32 %v969_v9, %v732_v29 }
 0x16f   :  { %v734_v40 = vpop.f32.mrf.mxu0  ;;  %v862_v49 = vpop.f32.mrf.mxu1 }
 0x170   :  { %v1103_v15 = vadd.f32 %v1102_v43, %v1040_v37 }
 0x171   :  { %v737_v62 = vpop.f32.mrf.mxu0  ;;  %v2407_v19 = vpop.f32.mrf.mxu1 }
 0x172   :  { %908 = vst [vmem:[%s2547_s2 + $0xe0] sm:$0xff] %v737_v62  ;;  %940 = vst [vmem:[%s2547_s2 + $0x1e0] sm:$0xff] %v2407_v19  ;;  %v1041_v42 = vmul.f32 %v737_v62, %v737_v62  ;;  %v971_v57 = vadd.f32 %v970_v24, %v737_v62  ;;  %v1045_v62 = vmul.f32 %v2025_v16, %v2025_v16 }
 0x173   :  { %v739_v61 = vpop.f32.mrf.mxu0  ;;  %v867_v17 = vpop.f32.mrf.mxu1 }
 0x174   :  { %v1104_v45 = vadd.f32 %v1103_v15, %v1041_v42 }
 0x175   :  { %v740_v39 = vpop.f32.mrf.mxu0  ;;  %v2416_v38 = vpop.f32.mrf.mxu1 }
 0x176   :  { %909 = vst [vmem:[%s2547_s2 + $0xe8] sm:$0xff] %v740_v39  ;;  %941 = vst [vmem:[%s2547_s2 + $0x1e8] sm:$0xff] %v2416_v38  ;;  %v1042_v5 = vmul.f32 %v740_v39, %v740_v39  ;;  %v972_v26 = vadd.f32 %v971_v57, %v740_v39  ;;  %v1048_v39 = vmul.f32 %v2061_v48, %v2061_v48 }
 0x177   :  { %v742_v25 = vpop.f32.mrf.mxu0  ;;  %v870_v59 = vpop.f32.mrf.mxu1 }
 0x178   :  { %v1105_v29 = vadd.f32 %v1104_v45, %v1042_v5 }
 0x179   :  { %v745_v35 = vpop.f32.mrf.mxu0  ;;  %v2425_v7 = vpop.f32.mrf.mxu1 }
 0x17a   :  { %910 = vst [vmem:[%s2547_s2 + $0xf0] sm:$0xff] %v745_v35  ;;  %v1043_v10 = vmul.f32 %v745_v35, %v745_v35  ;;  %942 = vst [vmem:[%s2547_s2 + $0x1f0] sm:$0xff] %v2425_v7  ;;  %v973_v8 = vadd.f32 %v972_v26, %v745_v35 }
 0x17b   :  { %v747_v27 = vpop.f32.mrf.mxu0  ;;  %v875_v47 = vpop.f32.mrf.mxu1 }
 0x17c   :  { %v1106_v40 = vadd.f32 %v1105_v29, %v1043_v10 }
 0x17d   :  { %v748_v22 = vpop.f32.mrf.mxu0  ;;  %v2434_v2 = vpop.f32.mrf.mxu1 }
 0x17e   :  { %911 = vst [vmem:[%s2547_s2 + $0xf8] sm:$0xff] %v748_v22  ;;  %v974_v49 = vadd.f32 %v973_v8, %v748_v22  ;;  %v1044_v28 = vmul.f32 %v748_v22, %v748_v22  ;;  %943 = vst [vmem:[%s2547_s2 + $0x1f8] sm:$0xff] %v2434_v2 }
 0x17f   :  { %v750_v54 = vpop.f32.mrf.mxu0  ;;  %v878_v36 = vpop.f32.mrf.mxu1 }
 0x180   :  { %v975_v51 = vadd.f32 %v974_v49, %v2025_v16  ;;  %v1107_v18 = vadd.f32 %v1106_v40, %v1044_v28  ;;  %v1049_v16 = vmul.f32 %v2073_v32, %v2073_v32 }
 0x182   :  { %v976_v61 = vadd.f32 %v975_v51, %v2037_v13  ;;  %v1108_v17 = vadd.f32 %v1107_v18, %v1045_v62  ;;  %v1050_v13 = vmul.f32 %v2085_v11, %v2085_v11 }
 0x184   :  { %v977_v9 = vadd.f32 %v976_v61, %v2049_v14  ;;  %v1109_v37 = vadd.f32 %v1108_v17, %v1046_v20  ;;  %v1051_v14 = vmul.f32 %v2097_v30, %v2097_v30 }
 0x186   :  { %v978_v43 = vadd.f32 %v977_v9, %v2061_v48  ;;  %v1110_v24 = vadd.f32 %v1109_v37, %v1047_v52  ;;  %v1052_v48 = vmul.f32 %v2109_v50, %v2109_v50  ;;  %v1062_v52 = vmul.f32 %v2240_v21, %v2240_v21 }
 0x188   :  { %v979_v42 = vadd.f32 %v978_v43, %v2073_v32  ;;  %v1111_v25 = vadd.f32 %v1110_v24, %v1048_v39  ;;  %v1053_v32 = vmul.f32 %v2121_v44, %v2121_v44  ;;  %v1063_v39 = vmul.f32 %v2258_v53, %v2258_v53 }
 0x189   :  { %v1064_v24 = vmul.f32 %v2276_v33, %v2276_v33 }
 0x18a   :  { %v980_v59 = vadd.f32 %v979_v42, %v2085_v11  ;;  %v1112_v15 = vadd.f32 %v1111_v25, %v1049_v16  ;;  %v1054_v11 = vmul.f32 %v2133_v4, %v2133_v4  ;;  %v1065_v42 = vmul.f32 %v2294_v46, %v2294_v46 }
 0x18c   :  { %v981_v57 = vadd.f32 %v980_v59, %v2097_v30  ;;  %v1113_v5 = vadd.f32 %v1112_v15, %v1050_v13  ;;  %v1055_v30 = vmul.f32 %v2145_v41, %v2145_v41  ;;  %v1066_v13 = vmul.f32 %v2312_v23, %v2312_v23 }
 0x18d   :  { %v1067_v15 = vmul.f32 %v2328_v56, %v2328_v56 }
 0x18e   :  { %v982_v35 = vadd.f32 %v981_v57, %v2109_v50  ;;  %v1114_v45 = vadd.f32 %v1113_v5, %v1051_v14  ;;  %v1056_v50 = vmul.f32 %v2157_v55, %v2157_v55  ;;  %v1068_v57 = vmul.f32 %v2343_v63, %v2343_v63 }
 0x190   :  { %v1115_v26 = vadd.f32 %v1114_v45, %v1052_v48  ;;  %v983_v10 = vadd.f32 %v982_v35, %v2121_v44  ;;  %v1057_v44 = vmul.f32 %v2169_v3, %v2169_v3  ;;  %v1069_v48 = vmul.f32 %v2358_v58, %v2358_v58 }
 0x191   :  { %v1070_v45 = vmul.f32 %v2373_v12, %v2373_v12 }
 0x192   :  { %v984_v27 = vadd.f32 %v983_v10, %v2133_v4  ;;  %v1116_v47 = vadd.f32 %v1115_v26, %v1053_v32  ;;  %v1058_v4 = vmul.f32 %v2181_v0, %v2181_v0  ;;  %v1071_v26 = vmul.f32 %v2388_v34, %v2388_v34 }
 0x194   :  { %v985_v29 = vadd.f32 %v984_v27, %v2145_v41  ;;  %v1117_v8 = vadd.f32 %v1116_v47, %v1054_v11  ;;  %v1059_v41 = vmul.f32 %v2193_v31, %v2193_v31  ;;  %v1072_v11 = vmul.f32 %v2398_v6, %v2398_v6 }
 0x195   :  { %v1073_v47 = vmul.f32 %v2407_v19, %v2407_v19 }
 0x196   :  { %v986_v22 = vadd.f32 %v985_v29, %v2157_v55  ;;  %v1118_v40 = vadd.f32 %v1117_v8, %v1055_v30  ;;  %v1060_v55 = vmul.f32 %v2205_v1, %v2205_v1  ;;  %v1074_v29 = vmul.f32 %v2416_v38, %v2416_v38 }
 0x198   :  { %v987_v49 = vadd.f32 %v986_v22, %v2169_v3  ;;  %v1119_v28 = vadd.f32 %v1118_v40, %v1056_v50  ;;  %v1061_v3 = vmul.f32 %v2219_v60, %v2219_v60  ;;  %v1075_v50 = vmul.f32 %v2425_v7, %v2425_v7 }
 0x199   :  { %v1076_v40 = vmul.f32 %v2434_v2, %v2434_v2 }
 0x19a   :  { %v988_v54 = vadd.f32 %v987_v49, %v2181_v0  ;;  %v1120_v36 = vadd.f32 %v1119_v28, %v1057_v44 }
 0x19c   :  { %v989_v62 = vadd.f32 %v988_v54, %v2193_v31  ;;  %v1121_v51 = vadd.f32 %v1120_v36, %v1058_v4 }
 0x19e   :  { %v990_v18 = vadd.f32 %v989_v62, %v2205_v1  ;;  %v1122_v20 = vadd.f32 %v1121_v51, %v1059_v41 }
 0x1a0   :  { %v991_v61 = vadd.f32 %v990_v18, %v2219_v60  ;;  %v1123_v17 = vadd.f32 %v1122_v20, %v1060_v55 }
 0x1a2   :  { %v992_v0 = vadd.f32 %v991_v61, %v2240_v21  ;;  %v1124_v9 = vadd.f32 %v1123_v17, %v1061_v3 }
 0x1a4   :  { %v1125_v31 = vadd.f32 %v1124_v9, %v1062_v52  ;;  %v993_v37 = vadd.f32 %v992_v0, %v2258_v53 }
 0x1a6   :  { %v1126_v1 = vadd.f32 %v1125_v31, %v1063_v39  ;;  %v994_v43 = vadd.f32 %v993_v37, %v2276_v33 }
 0x1a8   :  { %v1127_v60 = vadd.f32 %v1126_v1, %v1064_v24  ;;  %v995_v16 = vadd.f32 %v994_v43, %v2294_v46 }
 0x1aa   :  { %v1128_v21 = vadd.f32 %v1127_v60, %v1065_v42  ;;  %v996_v25 = vadd.f32 %v995_v16, %v2312_v23 }
 0x1ac   :  { %v1129_v59 = vadd.f32 %v1128_v21, %v1066_v13  ;;  %v997_v53 = vadd.f32 %v996_v25, %v2328_v56 }
 0x1ae   :  { %v1130_v14 = vadd.f32 %v1129_v59, %v1067_v15  ;;  %v998_v33 = vadd.f32 %v997_v53, %v2343_v63 }
 0x1b0   :  { %v1131_v5 = vadd.f32 %v1130_v14, %v1068_v57  ;;  %v999_v46 = vadd.f32 %v998_v33, %v2358_v58 }
 0x1b2   :  { %v1132_v35 = vadd.f32 %v1131_v5, %v1069_v48  ;;  %v1000_v23 = vadd.f32 %v999_v46, %v2373_v12 }
 0x1b4   :  { %v1133_v32 = vadd.f32 %v1132_v35, %v1070_v45  ;;  %v1001_v56 = vadd.f32 %v1000_v23, %v2388_v34 }
 0x1b6   :  { %v1134_v10 = vadd.f32 %v1133_v32, %v1071_v26  ;;  %v1002_v63 = vadd.f32 %v1001_v56, %v2398_v6 }
 0x1b8   :  { %v1135_v27 = vadd.f32 %v1134_v10, %v1072_v11  ;;  %v1003_v58 = vadd.f32 %v1002_v63, %v2407_v19 }
 0x1ba   :  { %v1136_v30 = vadd.f32 %v1135_v27, %v1073_v47  ;;  %v1004_v12 = vadd.f32 %v1003_v58, %v2416_v38 }
 0x1bc   :  { %v1137_v8 = vadd.f32 %v1136_v30, %v1074_v29  ;;  %v1005_v34 = vadd.f32 %v1004_v12, %v2425_v7 }
 0x1be   :  { %v1138_v22 = vadd.f32 %v1137_v8, %v1075_v50  ;;  %v1006_v6 = vadd.f32 %v1005_v34, %v2434_v2 }
 0x1c0   :  { %v1007_v44 = vrot.slane %v1006_v6, 4  ;;  %v1139_v19 = vadd.f32 %v1138_v22, %v1076_v40 }
 0x1c2   :  { %v1008_v49 = vadd.f32 %v1007_v44, %v1006_v6  ;;  %v1140_v28 = vrot.slane %v1139_v19, 4 }
 0x1c4   :  { %v1009_v4 = vrot.slane %v1008_v49, 2  ;;  %v1141_v54 = vadd.f32 %v1140_v28, %v1139_v19 }
 0x1c6   :  { %v1010_v36 = vadd.f32 %v1009_v4, %v1008_v49  ;;  %v1142_v38 = vrot.slane %v1141_v54, 2 }
 0x1c8   :  { %v1011_v41 = vrot.slane %v1010_v36, 1  ;;  %v1143_v62 = vadd.f32 %v1142_v38, %v1141_v54 }
 0x1ca   :  { %v1012_v51 = vadd.f32 %v1011_v41, %v1010_v36  ;;  %v1144_v55 = vrot.slane %v1143_v62, 1 }
 0x1cc   :  { %v1145_v18 = vadd.f32 %v1144_v55, %v1143_v62  ;;  %1146 = vst [vmem:[%s2548_s3] sm:$0xff] %v1012_v51 }
 0x1ce   :  { %1147 = vst [vmem:[%s2549_s4] sm:$0xff] %v1145_v18 }

// kernel: generator_forward.9
= control target key start
LH: loop header
LB: loop body
LE: loop exit
PB: predicated region body
PF: predicated region fallthrough
CT: control target
= control target key end

     0   :  { %s1361_s9 = smov 0   ;;  %s1656_s0 = inlined_call_operand.vmem [shape: bf16[2048,128], index: 0, kind: input, shape index: {}]   ;;  %s1657_s1 = inlined_call_operand.vmem [shape: bf16[128,128], index: 1, kind: input, shape index: {}]   ;;  %s1658_s2 = inlined_call_operand.vmem [shape: f32[2048,128], index: 2, kind: output, shape index: {}]  }
   0x1 LB: > { %s1005_s10 = sadd.s32 4294967295, %s1343_s9   ;;  %p1009_p0 = scmp.ge.s32.totalorder %s1343_s9, 1  ;;  %s1343_s9 = sphi %s1361_s9, %s12_s9  }
   0x2   : > { %p113_p1 = scmp.lt.s32.totalorder %s1343_s9, 5 }
   0x4   : > { %p114_p2 = pnand %p1009_p0, %p113_p1 }
   0x5   : > { %s1010_s13 = sshll.u32 (!%p114_p2), %s1005_s10, 6 }
   0x6   : > { %117 = sbr.rel (%p114_p2) target bundleno = 315 (0x13b), region = 28  ;;  %p136_p3 = scmp.lt.s32.totalorder (!%p114_p2), %s1010_s13, 255 }
   0xb   : > { %v1201_v0 = vld [vmem:[%s1657_s1 + $0x38] sm:$0xff]   ;;  %v1202_v1 = vld [vmem:[%s1657_s1 + $0x30] sm:$0xff]   ;;  %s1660_s13 = smov (!%p136_p3, %s1010_s13), 255  ;;  %v1203_v2 = vld [vmem:[%s1657_s1 + $0x28] sm:$0xff]   ;;  %v1345_v7 = vmov 0  }
   0xc   : > { %1096 = vmatprep.subr.bf16.mxu0 %v1201_v0  ;;  %1176 = vmatprep.subr.bf16.mxu1 %v1201_v0  ;;  %s1011_s18 = sshll.u32 %s1660_s13, 2  ;;  %v1204_v3 = vld [vmem:[%s1657_s1 + $0x20] sm:$0xff]   ;;  %v1205_v14 = vld [vmem:[%s1657_s1 + $0x18] sm:$0xff]   ;;  %v1206_v16 = vld [vmem:[%s1657_s1 + $0x10] sm:$0xff]   ;;  %s1013_s4 = sshll.u32 %s1660_s13, 3 }
   0xd   : > { %1097 = vmatpush3.bf16.msra.mxu0 %v1201_v0  ;;  %1184 = vmatpush3.bf16.msra.mxu1 %v1201_v0  ;;  %s1384_s21 = scalar_lea.vmem %s1656_s0, %s1011_s18  ;;  %v1207_v17 = vld [vmem:[%s1657_s1 + $0x8] sm:$0xff]   ;;  %v1208_v27 = vld [vmem:[%s1657_s1] sm:$0xff]   ;;  %s1587_s7 = scalar_lea.vmem %s1658_s2, %s1013_s4 }
   0xe   : > { %1098 = vmatprep.subr.bf16.mxu0 %v1202_v1  ;;  %1177 = vmatprep.subr.bf16.mxu1 %v1202_v1  ;;  %v148_v4 = vld [vmem:[%s1384_s21] sm:$0xf]  ;;  %v149_v5 = vld [vmem:[%s1384_s21 + $0x4] sm:$0xf]  ;;  %v150_v18 = vld [vmem:[%s1384_s21 + $0x8] sm:$0xf] }
   0xf   : > { %v180_v6 = vld [vmem:[%s1384_s21 + $0x80] sm:$0xf]  ;;  %v212_v8 = vmax.bf16 %v1345_v7, %v148_v4  ;;  %v213_v9 = vmax.bf16 %v1345_v7, %v149_v5  ;;  %v181_v10 = vld [vmem:[%s1384_s21 + $0x84] sm:$0xf]  ;;  %v151_v19 = vld [vmem:[%s1384_s21 + $0xc] sm:$0xf]  ;;  %v214_v23 = vmax.bf16 %v1345_v7, %v150_v18 }
  0x10   : > { %v244_v11 = vmax.bf16 %v1345_v7, %v180_v6  ;;  %v245_v12 = vmax.bf16 %v1345_v7, %v181_v10  ;;  %v182_v20 = vld [vmem:[%s1384_s21 + $0x88] sm:$0xf]  ;;  %v183_v21 = vld [vmem:[%s1384_s21 + $0x8c] sm:$0xf]  ;;  %v152_v22 = vld [vmem:[%s1384_s21 + $0x10] sm:$0xf]  ;;  %v215_v28 = vmax.bf16 %v1345_v7, %v151_v19 }
  0x11   : > { %1099 = vmatpush3.bf16.msra.mxu0 %v1202_v1  ;;  %1185 = vmatpush3.bf16.msra.mxu1 %v1202_v1  ;;  %v1014_v13 = vcombine.low %v212_v8, %v213_v9  ;;  %v153_v24 = vld [vmem:[%s1384_s21 + $0x14] sm:$0xf]  ;;  %v184_v25 = vld [vmem:[%s1384_s21 + $0x90] sm:$0xf]  ;;  %v246_v29 = vmax.bf16 %v1345_v7, %v182_v20  ;;  %v247_v30 = vmax.bf16 %v1345_v7, %v183_v21  ;;  %v154_v31 = vld [vmem:[%s1384_s21 + $0x18] sm:$0xf] }
  0x12   : > { %1100 = vmatprep.subr.bf16.mxu0 %v1203_v2  ;;  %1178 = vmatprep.subr.bf16.mxu1 %v1203_v2  ;;  %v1030_v15 = vcombine.low %v244_v11, %v245_v12  ;;  %v185_v26 = vld [vmem:[%s1384_s21 + $0x94] sm:$0xf]  ;;  %v216_v32 = vmax.bf16 %v1345_v7, %v152_v22  ;;  %v217_v33 = vmax.bf16 %v1345_v7, %v153_v24  ;;  %v155_v36 = vld [vmem:[%s1384_s21 + $0x1c] sm:$0xf]  ;;  %v186_v37 = vld [vmem:[%s1384_s21 + $0x98] sm:$0xf] }
  0x13   : > { %1112 = vmatprep.mubr.bf16.mxu0 %v1014_v13  ;;  %v248_v34 = vmax.bf16 %v1345_v7, %v184_v25  ;;  %v249_v35 = vmax.bf16 %v1345_v7, %v185_v26  ;;  %v187_v38 = vld [vmem:[%s1384_s21 + $0x9c] sm:$0xf]  ;;  %v156_v39 = vld [vmem:[%s1384_s21 + $0x20] sm:$0xf]  ;;  %v157_v40 = vld [vmem:[%s1384_s21 + $0x24] sm:$0xf]  ;;  %v1015_v42 = vcombine.low %v214_v23, %v215_v28  ;;  %v1031_v43 = vcombine.low %v246_v29, %v247_v30 }
  0x14   : > { %1144 = vmatprep.mubr.bf16.mxu1 %v1030_v15  ;;  %v174_v41 = vld [vmem:[%s1384_s21 + $0x68] sm:$0xf]  ;;  %v188_v44 = vld [vmem:[%s1384_s21 + $0xa0] sm:$0xf]  ;;  %v189_v45 = vld [vmem:[%s1384_s21 + $0xa4] sm:$0xf]  ;;  %v218_v47 = vmax.bf16 %v1345_v7, %v154_v31  ;;  %v219_v48 = vmax.bf16 %v1345_v7, %v155_v36  ;;  %v250_v49 = vmax.bf16 %v1345_v7, %v186_v37  ;;  %v251_v50 = vmax.bf16 %v1345_v7, %v187_v38 }
  0x15   : > { %1101 = vmatpush3.bf16.msra.mxu0 %v1203_v2  ;;  %1186 = vmatpush3.bf16.msra.mxu1 %v1203_v2  ;;  %v175_v46 = vld [vmem:[%s1384_s21 + $0x6c] sm:$0xf]  ;;  %v206_v51 = vld [vmem:[%s1384_s21 + $0xe8] sm:$0xf]  ;;  %v176_v53 = vld [vmem:[%s1384_s21 + $0x70] sm:$0xf]  ;;  %v1016_v54 = vcombine.low %v216_v32, %v217_v33  ;;  %v1032_v55 = vcombine.low %v248_v34, %v249_v35  ;;  %v220_v56 = vmax.bf16 %v1345_v7, %v156_v39 }
  0x16   : > { %1102 = vmatprep.subr.bf16.mxu0 %v1204_v3  ;;  %1179 = vmatprep.subr.bf16.mxu1 %v1204_v3  ;;  %v207_v52 = vld [vmem:[%s1384_s21 + $0xec] sm:$0xf]  ;;  %v1444_v57 = vmax.bf16 %v1345_v7, %v174_v41  ;;  %v177_v58 = vld [vmem:[%s1384_s21 + $0x74] sm:$0xf]  ;;  %v208_v59 = vld [vmem:[%s1384_s21 + $0xf0] sm:$0xf]  ;;  %v221_v61 = vmax.bf16 %v1345_v7, %v157_v40  ;;  %v252_v62 = vmax.bf16 %v1345_v7, %v188_v44 }
  0x17   : > { %v209_v60 = vld [vmem:[%s1384_s21 + $0xf4] sm:$0xf]  ;;  %v1452_v63 = vmax.bf16 %v1345_v7, %v175_v46  ;;  %v178_v0 = vld [vmem:[%s1384_s21 + $0x78] sm:$0xf]  ;;  %v179_v1 = vld [vmem:[%s1384_s21 + $0x7c] sm:$0xf]  ;;  %v253_v2 = vmax.bf16 %v1345_v7, %v189_v45  ;;  %v1461_v4 = vmax.bf16 %v1345_v7, %v207_v52  ;;  %v1464_v5 = vmax.bf16 %v1345_v7, %v176_v53 }
  0x18   : > { %v210_v6 = vld [vmem:[%s1384_s21 + $0xf8] sm:$0xf]  ;;  %v1470_v9 = vmax.bf16 %v1345_v7, %v177_v58  ;;  %v1473_v10 = vmax.bf16 %v1345_v7, %v208_v59  ;;  %v1476_v11 = vmax.bf16 %v1345_v7, %v209_v60  ;;  %v211_v12 = vld [vmem:[%s1384_s21 + $0xfc] sm:$0xf]  ;;  %v1485_v15 = vmax.bf16 %v1345_v7, %v179_v1  ;;  %v158_v23 = vld [vmem:[%s1384_s21 + $0x28] sm:$0xf] }
  0x19   : > { %1103 = vmatpush3.bf16.msra.mxu0 %v1204_v3  ;;  %1187 = vmatpush3.bf16.msra.mxu1 %v1204_v3  ;;  %v1458_v3 = vmax.bf16 %v1345_v7, %v206_v51  ;;  %v1027_v8 = vcombine.low %v1444_v57, %v1452_v63  ;;  %v1492_v18 = vmax.bf16 %v1345_v7, %v210_v6  ;;  %v159_v24 = vld [vmem:[%s1384_s21 + $0x2c] sm:$0xf]  ;;  %v190_v28 = vld [vmem:[%s1384_s21 + $0xa8] sm:$0xf]  ;;  %v160_v30 = vld [vmem:[%s1384_s21 + $0x30] sm:$0xf] }
  0x1a   : > { %1104 = vmatprep.subr.bf16.mxu0 %v1205_v14  ;;  %1180 = vmatprep.subr.bf16.mxu1 %v1205_v14  ;;  %v1497_v20 = vmax.bf16 %v1345_v7, %v211_v12  ;;  %v1017_v21 = vcombine.low %v218_v47, %v219_v48  ;;  %v1033_v22 = vcombine.low %v250_v49, %v251_v50  ;;  %v191_v29 = vld [vmem:[%s1384_s21 + $0xac] sm:$0xf]  ;;  %v161_v31 = vld [vmem:[%s1384_s21 + $0x34] sm:$0xf]  ;;  %v192_v32 = vld [vmem:[%s1384_s21 + $0xb0] sm:$0xf] }
  0x1b   : > { %v1043_v13 = vcombine.low %v1458_v3, %v1461_v4  ;;  %v1018_v26 = vcombine.low %v220_v56, %v221_v61  ;;  %v193_v33 = vld [vmem:[%s1384_s21 + $0xb4] sm:$0xf]  ;;  %v222_v34 = vmax.bf16 %v1345_v7, %v158_v23  ;;  %v223_v35 = vmax.bf16 %v1345_v7, %v159_v24  ;;  %v162_v44 = vld [vmem:[%s1384_s21 + $0x38] sm:$0xf]  ;;  %v163_v45 = vld [vmem:[%s1384_s21 + $0x3c] sm:$0xf] }
  0x1c   : > { %v1045_v25 = vcombine.low %v1492_v18, %v1497_v20  ;;  %v254_v36 = vmax.bf16 %v1345_v7, %v190_v28  ;;  %v255_v37 = vmax.bf16 %v1345_v7, %v191_v29  ;;  %v224_v38 = vmax.bf16 %v1345_v7, %v160_v30  ;;  %v194_v48 = vld [vmem:[%s1384_s21 + $0xb8] sm:$0xf]  ;;  %v195_v49 = vld [vmem:[%s1384_s21 + $0xbc] sm:$0xf]  ;;  %v164_v50 = vld [vmem:[%s1384_s21 + $0x40] sm:$0xf] }
  0x1d   : > { %1105 = vmatpush3.bf16.msra.mxu0 %v1205_v14  ;;  %1188 = vmatpush3.bf16.msra.mxu1 %v1205_v14  ;;  %v1482_v14 = vmax.bf16 %v1345_v7, %v178_v0  ;;  %v225_v39 = vmax.bf16 %v1345_v7, %v161_v31  ;;  %v256_v40 = vmax.bf16 %v1345_v7, %v192_v32  ;;  %v165_v51 = vld [vmem:[%s1384_s21 + $0x44] sm:$0xf]  ;;  %v196_v52 = vld [vmem:[%s1384_s21 + $0xc0] sm:$0xf]  ;;  %v167_v6 = vld [vmem:[%s1384_s21 + $0x4c] sm:$0xf] }
  0x1e   : > { %1106 = vmatprep.subr.bf16.mxu0 %v1206_v16  ;;  %1181 = vmatprep.subr.bf16.mxu1 %v1206_v16  ;;  %v257_v41 = vmax.bf16 %v1345_v7, %v193_v33  ;;  %v197_v53 = vld [vmem:[%s1384_s21 + $0xc4] sm:$0xf]  ;;  %v258_v56 = vmax.bf16 %v1345_v7, %v194_v48  ;;  %v259_v58 = vmax.bf16 %v1345_v7, %v195_v49  ;;  %v199_v23 = vld [vmem:[%s1384_s21 + $0xcc] sm:$0xf]  ;;  %v168_v24 = vld [vmem:[%s1384_s21 + $0x50] sm:$0xf] }
  0x1f   : > { %v1029_v19 = vcombine.low %v1482_v14, %v1485_v15  ;;  %v1020_v46 = vcombine.low %v224_v38, %v225_v39  ;;  %v228_v59 = vmax.bf16 %v1345_v7, %v164_v50  ;;  %v229_v60 = vmax.bf16 %v1345_v7, %v165_v51  ;;  %v201_v28 = vld [vmem:[%s1384_s21 + $0xd4] sm:$0xf]  ;;  %v170_v39 = vld [vmem:[%s1384_s21 + $0x58] sm:$0xf]  ;;  %v205_v48 = vld [vmem:[%s1384_s21 + $0xe4] sm:$0xf] }
  0x20   : > { %v1036_v47 = vcombine.low %v256_v40, %v257_v41  ;;  %v260_v61 = vmax.bf16 %v1345_v7, %v196_v52  ;;  %v1037_v1 = vcombine.low %v258_v56, %v259_v58  ;;  %v231_v30 = vmax.bf16 %v1345_v7, %v167_v6  ;;  %v171_v40 = vld [vmem:[%s1384_s21 + $0x5c] sm:$0xf] }
  0x21   : > { %1107 = vmatpush3.bf16.msra.mxu0 %v1206_v16  ;;  %1189 = vmatpush3.bf16.msra.mxu1 %v1206_v16  ;;  %v1028_v16 = vcombine.low %v1464_v5, %v1470_v9  ;;  %v1022_v12 = vcombine.low %v228_v59, %v229_v60  ;;  %v263_v32 = vmax.bf16 %v1345_v7, %v199_v23 }
  0x22   : > { %1108 = vmatprep.subr.bf16.mxu0 %v1207_v17  ;;  %1182 = vmatprep.subr.bf16.mxu1 %v1207_v17  ;;  %v232_v33 = vmax.bf16 %v1345_v7, %v168_v24  ;;  %v234_v49 = vmax.bf16 %v1345_v7, %v170_v39  ;;  %v235_v50 = vmax.bf16 %v1345_v7, %v171_v40 }
  0x23   : > { %v269_v56 = vmax.bf16 %v1345_v7, %v205_v48 }
  0x24   : > { %v1025_v58 = vcombine.low %v234_v49, %v235_v50 }
  0x25   : > { %1109 = vmatpush3.bf16.msra.mxu0 %v1207_v17  ;;  %1190 = vmatpush3.bf16.msra.mxu1 %v1207_v17  ;;  %v1044_v17 = vcombine.low %v1473_v10, %v1476_v11 }
  0x26   : > { %1110 = vmatprep.subr.bf16.mxu0 %v1208_v27  ;;  %1183 = vmatprep.subr.bf16.mxu1 %v1208_v27 }
  0x29   : > { %1111 = vmatpush3.bf16.msra.mxu0 %v1208_v27  ;;  %1191 = vmatpush3.bf16.msra.mxu1 %v1208_v27  ;;  %v1034_v27 = vcombine.low %v252_v62, %v253_v2  ;;  %v261_v62 = vmax.bf16 %v1345_v7, %v197_v53  ;;  %v166_v2 = vld [vmem:[%s1384_s21 + $0x48] sm:$0xf] }
  0x2a   : > { %v230_v29 = vmax.bf16 %v1345_v7, %v166_v2 }
  0x2c   : > { %1113 = vmatmul.mubr.bf16.vlgmr.msra.gmra.mxu0 %v1015_v42  ;;  %1145 = vmatmul.mubr.bf16.vlgmr.msra.gmra.mxu1 %v1031_v43  ;;  %v1019_v42 = vcombine.low %v222_v34, %v223_v35  ;;  %v1035_v43 = vcombine.low %v254_v36, %v255_v37  ;;  %v265_v36 = vmax.bf16 %v1345_v7, %v201_v28 }
  0x2d   : > { %1116 = vmatprep.mubr.bf16.mxu0 %v1016_v54  ;;  %1148 = vmatprep.mubr.bf16.mxu1 %v1032_v55  ;;  %v226_v54 = vmax.bf16 %v1345_v7, %v162_v44  ;;  %v227_v55 = vmax.bf16 %v1345_v7, %v163_v45  ;;  %v1023_v37 = vcombine.low %v230_v29, %v231_v30  ;;  %v203_v44 = vld [vmem:[%s1384_s21 + $0xdc] sm:$0xf]  ;;  %v172_v45 = vld [vmem:[%s1384_s21 + $0x60] sm:$0xf] }
  0x2e   : > { %v267_v52 = vmax.bf16 %v1345_v7, %v203_v44  ;;  %v236_v53 = vmax.bf16 %v1345_v7, %v172_v45 }
  0x2f   : > { %v1021_v0 = vcombine.low %v226_v54, %v227_v55 }
  0x34   : > { %1117 = vmatmul.mubr.bf16.gmra.mxu0 %v1017_v21  ;;  %1149 = vmatmul.mubr.bf16.gmra.mxu1 %v1033_v22  ;;  %v1038_v21 = vcombine.low %v260_v61, %v261_v62  ;;  %v198_v22 = vld [vmem:[%s1384_s21 + $0xc8] sm:$0xf] }
  0x35   : > { %1120 = vmatprep.mubr.bf16.mxu0 %v1018_v26  ;;  %1152 = vmatprep.mubr.bf16.mxu1 %v1034_v27  ;;  %v169_v26 = vld [vmem:[%s1384_s21 + $0x54] sm:$0xf]  ;;  %v200_v27 = vld [vmem:[%s1384_s21 + $0xd0] sm:$0xf]  ;;  %v262_v31 = vmax.bf16 %v1345_v7, %v198_v22 }
  0x36   : > { %v233_v34 = vmax.bf16 %v1345_v7, %v169_v26  ;;  %v264_v35 = vmax.bf16 %v1345_v7, %v200_v27 }
  0x37   : > { %v1039_v38 = vcombine.low %v262_v31, %v263_v32 }
  0x38   : > { %v1024_v41 = vcombine.low %v232_v33, %v233_v34 }
  0x3c   : > { %1121 = vmatmul.mubr.bf16.gmra.mxu0 %v1019_v42  ;;  %1153 = vmatmul.mubr.bf16.gmra.mxu1 %v1035_v43  ;;  %v1040_v42 = vcombine.low %v264_v35, %v265_v36  ;;  %v202_v43 = vld [vmem:[%s1384_s21 + $0xd8] sm:$0xf] }
  0x3d   : > { %1124 = vmatprep.mubr.bf16.mxu0 %v1020_v46  ;;  %1156 = vmatprep.mubr.bf16.mxu1 %v1036_v47  ;;  %v173_v46 = vld [vmem:[%s1384_s21 + $0x64] sm:$0xf]  ;;  %v204_v47 = vld [vmem:[%s1384_s21 + $0xe0] sm:$0xf]  ;;  %v266_v51 = vmax.bf16 %v1345_v7, %v202_v43 }
  0x3e   : > { %v237_v54 = vmax.bf16 %v1345_v7, %v173_v46  ;;  %v268_v55 = vmax.bf16 %v1345_v7, %v204_v47 }
  0x3f   : > { %v1041_v59 = vcombine.low %v266_v51, %v267_v52 }
  0x40   : > { %v1026_v60 = vcombine.low %v236_v53, %v237_v54  ;;  %v1042_v61 = vcombine.low %v268_v55, %v269_v56 }
  0x44   : > { %1125 = vmatmul.mubr.bf16.gmra.mxu0 %v1021_v0  ;;  %1157 = vmatmul.mubr.bf16.gmra.mxu1 %v1037_v1 }
  0x45   : > { %1128 = vmatprep.mubr.bf16.mxu0 %v1022_v12  ;;  %1160 = vmatprep.mubr.bf16.mxu1 %v1038_v21 }
  0x4c   : > { %1129 = vmatmul.mubr.bf16.gmra.mxu0 %v1023_v37  ;;  %1161 = vmatmul.mubr.bf16.gmra.mxu1 %v1039_v38 }
  0x4d   : > { %1132 = vmatprep.mubr.bf16.mxu0 %v1024_v41  ;;  %1164 = vmatprep.mubr.bf16.mxu1 %v1040_v42 }
  0x54   : > { %1133 = vmatmul.mubr.bf16.gmra.mxu0 %v1025_v58  ;;  %1165 = vmatmul.mubr.bf16.gmra.mxu1 %v1041_v59 }
  0x55   : > { %1136 = vmatprep.mubr.bf16.mxu0 %v1026_v60  ;;  %1168 = vmatprep.mubr.bf16.mxu1 %v1042_v61 }
  0x5c   : > { %1137 = vmatmul.mubr.bf16.gmra.mxu0 %v1027_v8  ;;  %1169 = vmatmul.mubr.bf16.gmra.mxu1 %v1043_v13 }
  0x5d   : > { %1140 = vmatprep.mubr.bf16.mxu0 %v1028_v16  ;;  %1172 = vmatprep.mubr.bf16.mxu1 %v1044_v17 }
  0x64   : > { %1141 = vmatmul.mubr.bf16.gmra.mxu0 %v1029_v19  ;;  %1173 = vmatmul.mubr.bf16.gmra.mxu1 %v1045_v25 }
  0xec   : > { %v1114_v7 = vpop.f32.mrf.mxu0  ;;  %v1146_v57 = vpop.f32.mrf.mxu1 }
  0xed   : > { %1209 = vtanh.f32 %v1114_v7 }
  0xee   : > { %1211 = vtanh.f32 %v1146_v57  ;;  %v566_v63 = vpop.f32.mrf.mxu0  ;;  %v694_v3 = vpop.f32.mrf.mxu1 }
  0xef   : > { %1213 = vtanh.f32 %v566_v63 }
  0xf0   : > { %1215 = vtanh.f32 %v694_v3  ;;  %v1115_v4 = vpop.f32.mrf.mxu0  ;;  %v1147_v5 = vpop.f32.mrf.mxu1 }
  0xf1   : > { %1217 = vtanh.f32 %v1115_v4 }
  0xf2   : > { %1219 = vtanh.f32 %v1147_v5  ;;  %v569_v8 = vpop.f32.mrf.mxu0  ;;  %v697_v9 = vpop.f32.mrf.mxu1 }
  0xf3   : > { %1221 = vtanh.f32 %v569_v8 }
  0xf4   : > { %1223 = vtanh.f32 %v697_v9  ;;  %v1118_v10 = vpop.f32.mrf.mxu0  ;;  %v1150_v11 = vpop.f32.mrf.mxu1 }
  0xf5   : > { %1225 = vtanh.f32 %v1118_v10 }
  0xf6   : > { %1227 = vtanh.f32 %v1150_v11  ;;  %v582_v13 = vpop.f32.mrf.mxu0  ;;  %v710_v14 = vpop.f32.mrf.mxu1 }
  0xf7   : > { %1229 = vtanh.f32 %v582_v13 }
  0xf8   : > { %1231 = vtanh.f32 %v710_v14  ;;  %v1119_v15 = vpop.f32.mrf.mxu0  ;;  %v1151_v16 = vpop.f32.mrf.mxu1 }
  0xf9   : > { %1233 = vtanh.f32 %v1119_v15 }
  0xfa   : > { %v1210_v17 = vpop.eup %1209  ;;  %1235 = vtanh.f32 %v1151_v16  ;;  %v585_v18 = vpop.f32.mrf.mxu0 }
  0xfb   : > { %v713_v19 = vpop.f32.mrf.mxu1  ;;  %v1212_v20 = vpop.eup %1211  ;;  %887 = vst [vmem:[%s1587_s7 + $0x10] sm:$0xff] %v1210_v17  ;;  %1237 = vtanh.f32 %v585_v18 }
  0xfc   : > { %v1214_v25 = vpop.eup %1213  ;;  %919 = vst [vmem:[%s1587_s7 + $0x110] sm:$0xff] %v1212_v20  ;;  %1239 = vtanh.f32 %v713_v19  ;;  %v1122_v62 = vpop.f32.mrf.mxu0 }
  0xfd   : > { %v1154_v0 = vpop.f32.mrf.mxu1  ;;  %v1216_v1 = vpop.eup %1215  ;;  %885 = vst [vmem:[%s1587_s7] sm:$0xff] %v1214_v25  ;;  %1241 = vtanh.f32 %v1122_v62 }
  0xfe   : > { %v1218_v2 = vpop.eup %1217  ;;  %917 = vst [vmem:[%s1587_s7 + $0x100] sm:$0xff] %v1216_v1  ;;  %1243 = vtanh.f32 %v1154_v0  ;;  %v598_v6 = vpop.f32.mrf.mxu0 }
  0xff   : > { %v726_v12 = vpop.f32.mrf.mxu1  ;;  %v1220_v21 = vpop.eup %1219  ;;  %888 = vst [vmem:[%s1587_s7 + $0x18] sm:$0xff] %v1218_v2  ;;  %1245 = vtanh.f32 %v598_v6 }
 0x100   : > { %v1222_v22 = vpop.eup %1221  ;;  %920 = vst [vmem:[%s1587_s7 + $0x118] sm:$0xff] %v1220_v21  ;;  %1247 = vtanh.f32 %v726_v12  ;;  %v1123_v23 = vpop.f32.mrf.mxu0 }
 0x101   : > { %v1155_v24 = vpop.f32.mrf.mxu1  ;;  %v1224_v26 = vpop.eup %1223  ;;  %886 = vst [vmem:[%s1587_s7 + $0x8] sm:$0xff] %v1222_v22  ;;  %1249 = vtanh.f32 %v1123_v23 }
 0x102   : > { %v1226_v27 = vpop.eup %1225  ;;  %918 = vst [vmem:[%s1587_s7 + $0x108] sm:$0xff] %v1224_v26  ;;  %1251 = vtanh.f32 %v1155_v24  ;;  %v601_v28 = vpop.f32.mrf.mxu0 }
 0x103   : > { %v729_v29 = vpop.f32.mrf.mxu1  ;;  %v1228_v30 = vpop.eup %1227  ;;  %891 = vst [vmem:[%s1587_s7 + $0x30] sm:$0xff] %v1226_v27  ;;  %1253 = vtanh.f32 %v601_v28 }
 0x104   : > { %v1230_v31 = vpop.eup %1229  ;;  %923 = vst [vmem:[%s1587_s7 + $0x130] sm:$0xff] %v1228_v30  ;;  %1255 = vtanh.f32 %v729_v29  ;;  %v1126_v32 = vpop.f32.mrf.mxu0 }
 0x105   : > { %v1158_v33 = vpop.f32.mrf.mxu1  ;;  %v1232_v34 = vpop.eup %1231  ;;  %889 = vst [vmem:[%s1587_s7 + $0x20] sm:$0xff] %v1230_v31  ;;  %1257 = vtanh.f32 %v1126_v32 }
 0x106   : > { %v1234_v35 = vpop.eup %1233  ;;  %921 = vst [vmem:[%s1587_s7 + $0x120] sm:$0xff] %v1232_v34  ;;  %1259 = vtanh.f32 %v1158_v33  ;;  %v614_v36 = vpop.f32.mrf.mxu0 }
 0x107   : > { %v742_v37 = vpop.f32.mrf.mxu1  ;;  %v1236_v38 = vpop.eup %1235  ;;  %892 = vst [vmem:[%s1587_s7 + $0x38] sm:$0xff] %v1234_v35  ;;  %1261 = vtanh.f32 %v614_v36 }
 0x108   : > { %v1238_v39 = vpop.eup %1237  ;;  %924 = vst [vmem:[%s1587_s7 + $0x138] sm:$0xff] %v1236_v38  ;;  %1263 = vtanh.f32 %v742_v37  ;;  %v1127_v40 = vpop.f32.mrf.mxu0 }
 0x109   : > { %v1159_v41 = vpop.f32.mrf.mxu1  ;;  %v1240_v42 = vpop.eup %1239  ;;  %890 = vst [vmem:[%s1587_s7 + $0x28] sm:$0xff] %v1238_v39  ;;  %1265 = vtanh.f32 %v1127_v40 }
 0x10a   : > { %v1242_v43 = vpop.eup %1241  ;;  %922 = vst [vmem:[%s1587_s7 + $0x128] sm:$0xff] %v1240_v42  ;;  %1267 = vtanh.f32 %v1159_v41  ;;  %v617_v44 = vpop.f32.mrf.mxu0 }
 0x10b   : > { %v745_v45 = vpop.f32.mrf.mxu1  ;;  %v1244_v46 = vpop.eup %1243  ;;  %895 = vst [vmem:[%s1587_s7 + $0x50] sm:$0xff] %v1242_v43  ;;  %1269 = vtanh.f32 %v617_v44 }
 0x10c   : > { %v1246_v47 = vpop.eup %1245  ;;  %927 = vst [vmem:[%s1587_s7 + $0x150] sm:$0xff] %v1244_v46  ;;  %1271 = vtanh.f32 %v745_v45  ;;  %v1130_v48 = vpop.f32.mrf.mxu0 }
 0x10d   : > { %v1162_v49 = vpop.f32.mrf.mxu1  ;;  %v1248_v50 = vpop.eup %1247  ;;  %893 = vst [vmem:[%s1587_s7 + $0x40] sm:$0xff] %v1246_v47  ;;  %1273 = vtanh.f32 %v1130_v48 }
 0x10e   : > { %v1250_v51 = vpop.eup %1249  ;;  %925 = vst [vmem:[%s1587_s7 + $0x140] sm:$0xff] %v1248_v50  ;;  %1275 = vtanh.f32 %v1162_v49  ;;  %v630_v52 = vpop.f32.mrf.mxu0 }
 0x10f   : > { %v758_v53 = vpop.f32.mrf.mxu1  ;;  %v1252_v54 = vpop.eup %1251  ;;  %896 = vst [vmem:[%s1587_s7 + $0x58] sm:$0xff] %v1250_v51  ;;  %1277 = vtanh.f32 %v630_v52 }
 0x110   : > { %v1254_v55 = vpop.eup %1253  ;;  %928 = vst [vmem:[%s1587_s7 + $0x158] sm:$0xff] %v1252_v54  ;;  %1279 = vtanh.f32 %v758_v53  ;;  %v1131_v56 = vpop.f32.mrf.mxu0 }
 0x111   : > { %v1163_v58 = vpop.f32.mrf.mxu1  ;;  %v1256_v59 = vpop.eup %1255  ;;  %894 = vst [vmem:[%s1587_s7 + $0x48] sm:$0xff] %v1254_v55  ;;  %1281 = vtanh.f32 %v1131_v56 }
 0x112   : > { %v1258_v60 = vpop.eup %1257  ;;  %926 = vst [vmem:[%s1587_s7 + $0x148] sm:$0xff] %v1256_v59  ;;  %1283 = vtanh.f32 %v1163_v58  ;;  %v633_v61 = vpop.f32.mrf.mxu0 }
 0x113   : > { %v761_v7 = vpop.f32.mrf.mxu1  ;;  %v1260_v57 = vpop.eup %1259  ;;  %899 = vst [vmem:[%s1587_s7 + $0x70] sm:$0xff] %v1258_v60  ;;  %1285 = vtanh.f32 %v633_v61 }
 0x114   : > { %v1262_v63 = vpop.eup %1261  ;;  %931 = vst [vmem:[%s1587_s7 + $0x170] sm:$0xff] %v1260_v57  ;;  %1287 = vtanh.f32 %v761_v7  ;;  %v1134_v3 = vpop.f32.mrf.mxu0 }
 0x115   : > { %v1166_v4 = vpop.f32.mrf.mxu1  ;;  %v1264_v5 = vpop.eup %1263  ;;  %897 = vst [vmem:[%s1587_s7 + $0x60] sm:$0xff] %v1262_v63  ;;  %1289 = vtanh.f32 %v1134_v3 }
 0x116   : > { %v1266_v8 = vpop.eup %1265  ;;  %929 = vst [vmem:[%s1587_s7 + $0x160] sm:$0xff] %v1264_v5  ;;  %1291 = vtanh.f32 %v1166_v4  ;;  %v646_v9 = vpop.f32.mrf.mxu0 }
 0x117   : > { %v774_v10 = vpop.f32.mrf.mxu1  ;;  %v1268_v11 = vpop.eup %1267  ;;  %900 = vst [vmem:[%s1587_s7 + $0x78] sm:$0xff] %v1266_v8  ;;  %1293 = vtanh.f32 %v646_v9 }
 0x118   : > { %v1270_v13 = vpop.eup %1269  ;;  %932 = vst [vmem:[%s1587_s7 + $0x178] sm:$0xff] %v1268_v11  ;;  %1295 = vtanh.f32 %v774_v10  ;;  %v1135_v14 = vpop.f32.mrf.mxu0 }
 0x119   : > { %v1167_v15 = vpop.f32.mrf.mxu1  ;;  %v1272_v16 = vpop.eup %1271  ;;  %898 = vst [vmem:[%s1587_s7 + $0x68] sm:$0xff] %v1270_v13  ;;  %1297 = vtanh.f32 %v1135_v14 }
 0x11a   : > { %v1274_v17 = vpop.eup %1273  ;;  %930 = vst [vmem:[%s1587_s7 + $0x168] sm:$0xff] %v1272_v16  ;;  %1299 = vtanh.f32 %v1167_v15  ;;  %v649_v18 = vpop.f32.mrf.mxu0 }
 0x11b   : > { %v777_v19 = vpop.f32.mrf.mxu1  ;;  %v1276_v20 = vpop.eup %1275  ;;  %903 = vst [vmem:[%s1587_s7 + $0x90] sm:$0xff] %v1274_v17  ;;  %1301 = vtanh.f32 %v649_v18 }
 0x11c   : > { %v1278_v25 = vpop.eup %1277  ;;  %935 = vst [vmem:[%s1587_s7 + $0x190] sm:$0xff] %v1276_v20  ;;  %1303 = vtanh.f32 %v777_v19  ;;  %v1138_v62 = vpop.f32.mrf.mxu0 }
 0x11d   : > { %v1170_v0 = vpop.f32.mrf.mxu1  ;;  %v1280_v1 = vpop.eup %1279  ;;  %901 = vst [vmem:[%s1587_s7 + $0x80] sm:$0xff] %v1278_v25  ;;  %1305 = vtanh.f32 %v1138_v62 }
 0x11e   : > { %v1282_v2 = vpop.eup %1281  ;;  %933 = vst [vmem:[%s1587_s7 + $0x180] sm:$0xff] %v1280_v1  ;;  %1307 = vtanh.f32 %v1170_v0  ;;  %v662_v6 = vpop.f32.mrf.mxu0 }
 0x11f   : > { %v790_v12 = vpop.f32.mrf.mxu1  ;;  %v1284_v21 = vpop.eup %1283  ;;  %904 = vst [vmem:[%s1587_s7 + $0x98] sm:$0xff] %v1282_v2  ;;  %1309 = vtanh.f32 %v662_v6 }
 0x120   : > { %v1286_v22 = vpop.eup %1285  ;;  %936 = vst [vmem:[%s1587_s7 + $0x198] sm:$0xff] %v1284_v21  ;;  %1311 = vtanh.f32 %v790_v12  ;;  %v1139_v23 = vpop.f32.mrf.mxu0 }
 0x121   : > { %v1171_v24 = vpop.f32.mrf.mxu1  ;;  %v1288_v26 = vpop.eup %1287  ;;  %902 = vst [vmem:[%s1587_s7 + $0x88] sm:$0xff] %v1286_v22  ;;  %1313 = vtanh.f32 %v1139_v23 }
 0x122   : > { %v1290_v27 = vpop.eup %1289  ;;  %934 = vst [vmem:[%s1587_s7 + $0x188] sm:$0xff] %v1288_v26  ;;  %1315 = vtanh.f32 %v1171_v24  ;;  %v665_v28 = vpop.f32.mrf.mxu0 }
 0x123   : > { %v793_v29 = vpop.f32.mrf.mxu1  ;;  %v1292_v30 = vpop.eup %1291  ;;  %907 = vst [vmem:[%s1587_s7 + $0xb0] sm:$0xff] %v1290_v27  ;;  %1317 = vtanh.f32 %v665_v28 }
 0x124   : > { %v1294_v31 = vpop.eup %1293  ;;  %939 = vst [vmem:[%s1587_s7 + $0x1b0] sm:$0xff] %v1292_v30  ;;  %1319 = vtanh.f32 %v793_v29  ;;  %v1142_v32 = vpop.f32.mrf.mxu0 }
 0x125   : > { %v1174_v33 = vpop.f32.mrf.mxu1  ;;  %v1296_v34 = vpop.eup %1295  ;;  %905 = vst [vmem:[%s1587_s7 + $0xa0] sm:$0xff] %v1294_v31  ;;  %1321 = vtanh.f32 %v1142_v32 }
 0x126   : > { %v1298_v35 = vpop.eup %1297  ;;  %937 = vst [vmem:[%s1587_s7 + $0x1a0] sm:$0xff] %v1296_v34  ;;  %1323 = vtanh.f32 %v1174_v33  ;;  %v678_v36 = vpop.f32.mrf.mxu0 }
 0x127   : > { %v806_v37 = vpop.f32.mrf.mxu1  ;;  %v1300_v38 = vpop.eup %1299  ;;  %908 = vst [vmem:[%s1587_s7 + $0xb8] sm:$0xff] %v1298_v35  ;;  %1325 = vtanh.f32 %v678_v36 }
 0x128   : > { %v1302_v39 = vpop.eup %1301  ;;  %940 = vst [vmem:[%s1587_s7 + $0x1b8] sm:$0xff] %v1300_v38  ;;  %1327 = vtanh.f32 %v806_v37  ;;  %v1143_v40 = vpop.f32.mrf.mxu0 }
 0x129   : > { %v1175_v41 = vpop.f32.mrf.mxu1  ;;  %v1304_v42 = vpop.eup %1303  ;;  %906 = vst [vmem:[%s1587_s7 + $0xa8] sm:$0xff] %v1302_v39  ;;  %1329 = vtanh.f32 %v1143_v40 }
 0x12a   : > { %v1306_v43 = vpop.eup %1305  ;;  %938 = vst [vmem:[%s1587_s7 + $0x1a8] sm:$0xff] %v1304_v42  ;;  %1331 = vtanh.f32 %v1175_v41  ;;  %v681_v44 = vpop.f32.mrf.mxu0 }
 0x12b   : > { %v809_v45 = vpop.f32.mrf.mxu1  ;;  %v1308_v46 = vpop.eup %1307  ;;  %911 = vst [vmem:[%s1587_s7 + $0xd0] sm:$0xff] %v1306_v43  ;;  %1333 = vtanh.f32 %v681_v44 }
 0x12c   : > { %v1310_v47 = vpop.eup %1309  ;;  %943 = vst [vmem:[%s1587_s7 + $0x1d0] sm:$0xff] %v1308_v46  ;;  %1335 = vtanh.f32 %v809_v45 }
 0x12d   : > { %v1312_v48 = vpop.eup %1311  ;;  %909 = vst [vmem:[%s1587_s7 + $0xc0] sm:$0xff] %v1310_v47 }
 0x12e   : > { %v1314_v49 = vpop.eup %1313  ;;  %941 = vst [vmem:[%s1587_s7 + $0x1c0] sm:$0xff] %v1312_v48 }
 0x12f   : > { %v1316_v50 = vpop.eup %1315  ;;  %912 = vst [vmem:[%s1587_s7 + $0xd8] sm:$0xff] %v1314_v49 }
 0x130   : > { %v1318_v51 = vpop.eup %1317  ;;  %944 = vst [vmem:[%s1587_s7 + $0x1d8] sm:$0xff] %v1316_v50 }
 0x131   : > { %v1320_v52 = vpop.eup %1319  ;;  %910 = vst [vmem:[%s1587_s7 + $0xc8] sm:$0xff] %v1318_v51 }
 0x132   : > { %v1322_v53 = vpop.eup %1321  ;;  %942 = vst [vmem:[%s1587_s7 + $0x1c8] sm:$0xff] %v1320_v52 }
 0x133   : > { %v1324_v54 = vpop.eup %1323  ;;  %915 = vst [vmem:[%s1587_s7 + $0xf0] sm:$0xff] %v1322_v53 }
 0x134   : > { %v1326_v55 = vpop.eup %1325  ;;  %947 = vst [vmem:[%s1587_s7 + $0x1f0] sm:$0xff] %v1324_v54 }
 0x135   : > { %v1328_v56 = vpop.eup %1327  ;;  %913 = vst [vmem:[%s1587_s7 + $0xe0] sm:$0xff] %v1326_v55 }
 0x136   : > { %v1330_v58 = vpop.eup %1329  ;;  %945 = vst [vmem:[%s1587_s7 + $0x1e0] sm:$0xff] %v1328_v56 }
 0x137   : > { %v1332_v59 = vpop.eup %1331  ;;  %916 = vst [vmem:[%s1587_s7 + $0xf8] sm:$0xff] %v1330_v58 }
 0x138   : > { %v1334_v60 = vpop.eup %1333  ;;  %948 = vst [vmem:[%s1587_s7 + $0x1f8] sm:$0xff] %v1332_v59 }
 0x139   : > { %v1336_v61 = vpop.eup %1335  ;;  %914 = vst [vmem:[%s1587_s7 + $0xe8] sm:$0xff] %v1334_v60 }
 0x13a   : > { %946 = vst [vmem:[%s1587_s7 + $0x1e8] sm:$0xff] %v1336_v61 }
 0x13b PF: > { %s12_s9 = sadd.s32 1, %s1343_s9  }
 0x13c   : > { %p9_p4 = scmp.ge.s32.totalorder %s12_s9, 6  }
 0x13e   :  { %11 = sbr.rel (!%p9_p4) target bundleno = 1 (0x1), region = 58 }

</bundles_post_ra>
